<compile_context>
chip_gen: v5e
topology: v5e:2x2
jax: 0.10.0
libtpu: 0.0.40
codegen_flags: <defaults>
</compile_context>

<pallas_src>
import functools

import jax
import jax.numpy as jnp
from jax.experimental import pallas as pl
from jax.experimental.pallas import tpu as pltpu

EPS = 1e-5
LANE = 128
# Fits inside v7x's 64 MiB VMEM with headroom; v5e/v6e have 128 MiB physical.
VMEM_LIMIT = 32 * 1024 * 1024


def _round_up(x, m):
    return (x + m - 1) // m * m


def _pick_row_tile(hout, wout, c_p, n):
    """Pooled rows per grid step.

    Biggest divisor of hout whose tile stays under the target pixel budget
    (scaled down with channel width so blocks fit VMEM), while keeping >= 2
    grid steps total so v7x's two TensorCores both get work.
    """
    max_pix = max(256, (2048 * LANE) // c_p)
    th = 1
    for d in range(1, hout + 1):
        if hout % d == 0 and d * wout <= max_pix:
            th = d
    if n * (hout // th) < 2:
        for d in range(th - 1, 0, -1):
            if hout % d == 0 and n * (hout // d) >= 2:
                return d
    return th


def _pick_chunk_rows(th, wout, cout_p):
    """Rows per M chunk of the accumulation loop (~64 KiB f32 accumulator)."""
    m_target = max(8, 65536 // (4 * cout_p))
    best = 1
    for d in range(1, th + 1):
        if th % d == 0 and d * wout <= m_target:
            best = d
    return best


# ----------------------------- in-kernel helpers -----------------------------

def _pool2x2(raw, rows, wout, cp):
    """2x2 max-pool of a raw bf16 tile.

    raw: (2*rows, wout, 2*cp).  The two W-partners of every pooled column were
    packed into the channel (lane) dim by a free wrapper reshape, so both pool
    directions are cheap: a leading-dim pair max (H) and a 128-aligned lane
    slice + max (W).
    """
    r = raw.reshape(rows, 2, wout, 2 * cp)
    hmax = jnp.maximum(r[:, 0], r[:, 1])                    # (rows, wout, 2*cp)
    # TODO(synk): on v5e (no bf16 VALU) this max lowers through converts; if it
    # shows on the critical path, do the pool max in f32 before the bf16 cast.
    return jnp.maximum(hmax[:, :, :cp], hmax[:, :, cp:])    # (rows, wout, cp)


def _shift_pack(p, wout):
    """Pack the kx=-1/0/+1 column neighbourhoods of p (rows, wout, cp) into the
    lane dim -> (rows, wout, 3*cp); conv zero padding (left/right) is baked in.
    """
    z = jnp.zeros_like(p[:, :1, :])
    left = jnp.concatenate([z, p[:, :wout - 1, :]], axis=1)     # P[y, x-1]
    right = jnp.concatenate([p[:, 1:, :], z], axis=1)           # P[y, x+1]
    return jnp.concatenate([left, p, right], axis=-1)           # (rows, wout, 3*cp)


def _conv3x3_mblocked(shift_ref, w_ref, y_ref, psum_ref, psq_ref,
                      *, th, wout, kdim, cout_p, rows_chunk):
    """3x3 conv as 3 accumulating MXU matmuls (K = kdim = 3*Cin_p) per
    register-resident M chunk; BN partial sums folded in while the chunk is
    live so the accumulator never round-trips VMEM."""
    ps = jnp.zeros((1, cout_p), jnp.float32)
    pq = jnp.zeros((1, cout_p), jnp.float32)
    for r0 in range(0, th, rows_chunk):
        rows = min(rows_chunk, th - r0)
        m = rows * wout
        acc = jnp.zeros((m, cout_p), jnp.float32)
        for ky in range(3):
            # Aligned leading-dim slice only (no sublane relayout per tap).
            lhs = shift_ref[ky + r0:ky + r0 + rows, :, :].reshape(m, kdim)
            acc = acc + jnp.dot(lhs, w_ref[ky],
                                preferred_element_type=jnp.float32)
        y_ref[0, r0:r0 + rows, :, :] = (
            acc.reshape(rows, wout, cout_p).astype(y_ref.dtype))
        ps = ps + jnp.sum(acc, axis=0, keepdims=True)
        pq = pq + jnp.sum(acc * acc, axis=0, keepdims=True)
    psum_ref[0, 0, :, :] = ps
    psq_ref[0, 0, :, :] = pq


# --------------------------------- kernels -----------------------------------

def _pool_conv_stats_kernel(x_mid, x_up, x_dn, w_ref,
                            y_ref, psum_ref, psq_ref, shift_ref,
                            *, th, wout, cin_p, cout_p, rows_chunk):
    """Pass 1: 2x2 maxpool + lane-packed window + conv1 + BN1 partial sums."""
    i = pl.program_id(1)
    nrow = pl.num_programs(1)
    kdim = 3 * cin_p

    # Interior rows (1..th); every row of the scratch is overwritten each step,
    # so no blanket zeroing is needed.
    shift_ref[1:th + 1, :, :] = _shift_pack(
        _pool2x2(x_mid[0], th, wout, cin_p), wout)

    @pl.when(i == 0)
    def _():  # image top border
        shift_ref[0:1, :, :] = jnp.zeros((1, wout, kdim), jnp.bfloat16)

    @pl.when(i > 0)
    def _():  # pooled row just above the tile
        shift_ref[0:1, :, :] = _shift_pack(
            _pool2x2(x_up[0], 1, wout, cin_p), wout)

    @pl.when(i == nrow - 1)
    def _():  # image bottom border
        shift_ref[th + 1:th + 2, :, :] = jnp.zeros((1, wout, kdim), jnp.bfloat16)

    @pl.when(i < nrow - 1)
    def _():  # pooled row just below the tile
        shift_ref[th + 1:th + 2, :, :] = _shift_pack(
            _pool2x2(x_dn[0], 1, wout, cin_p), wout)

    _conv3x3_mblocked(shift_ref, w_ref, y_ref, psum_ref, psq_ref,
                      th=th, wout=wout, kdim=kdim, cout_p=cout_p,
                      rows_chunk=rows_chunk)


def _bn_conv_stats_kernel(y_mid, y_up, y_dn, w_ref, sc_ref, sh_ref,
                          y2_ref, psum_ref, psq_ref, shift_ref,
                          *, th, wout, c_p, rows_chunk):
    """Pass 2: BN1+ReLU (incl. halo rows) + conv2 + BN2 partial sums."""
    i = pl.program_id(1)
    nrow = pl.num_programs(1)
    kdim = 3 * c_p
    scale = sc_ref[...]     # (1, c_p) f32
    shift = sh_ref[...]

    def act(y):             # bf16 conv1 output -> normalized bf16 activation
        return jnp.maximum(y.astype(jnp.float32) * scale + shift,
                           0.0).astype(jnp.bfloat16)

    shift_ref[1:th + 1, :, :] = _shift_pack(act(y_mid[0]), wout)

    @pl.when(i == 0)
    def _():
        shift_ref[0:1, :, :] = jnp.zeros((1, wout, kdim), jnp.bfloat16)

    @pl.when(i > 0)
    def _():
        shift_ref[0:1, :, :] = _shift_pack(act(y_up[0]), wout)

    @pl.when(i == nrow - 1)
    def _():
        shift_ref[th + 1:th + 2, :, :] = jnp.zeros((1, wout, kdim), jnp.bfloat16)

    @pl.when(i < nrow - 1)
    def _():
        shift_ref[th + 1:th + 2, :, :] = _shift_pack(act(y_dn[0]), wout)

    _conv3x3_mblocked(shift_ref, w_ref, y2_ref, psum_ref, psq_ref,
                      th=th, wout=wout, kdim=kdim, cout_p=c_p,
                      rows_chunk=rows_chunk)


def _bn_relu_kernel(y_ref, sc_ref, sh_ref, o_ref):
    """Pass 3: BN2 + ReLU epilogue (in place, see input_output_aliases)."""
    o_ref[...] = jnp.maximum(y_ref[...] * sc_ref[...] + sh_ref[...], 0.0)


# --------------------------------- wrappers ----------------------------------

def _prep_weight(w, cin_p, cout_p):
    """torch (Cout, Cin, 3, 3) -> (3, 3*Cin_p, Cout_p) bf16: ky major, the
    (kx, cin) contraction packed along K to match the lane-packed LHS."""
    cout, cin = w.shape[0], w.shape[1]
    wt = jnp.transpose(w, (2, 3, 1, 0))                       # (3, 3, cin, cout)
    wt = jnp.pad(wt, ((0, 0), (0, 0), (0, cin_p - cin), (0, cout_p - cout)))
    return wt.reshape(3, 3 * cin_p, cout_p).astype(jnp.bfloat16)


def _bn_scale_shift(psum, psq, gamma, beta, count, c_p):
    """Fold BN (training-mode batch stats) + affine into per-channel scale/shift.

    Uses E[x^2]-E[x]^2 from f32 partial sums; activations here are well
    centered so the cancellation is mild (see correctness note).
    """
    s = jnp.sum(psum, axis=(0, 1, 2))
    q = jnp.sum(psq, axis=(0, 1, 2))
    mean = s / count
    var = jnp.maximum(q / count - mean * mean, 0.0)
    g = jnp.pad(gamma, (0, c_p - gamma.shape[0]))
    b = jnp.pad(beta, (0, c_p - beta.shape[0]))
    scale = g * jax.lax.rsqrt(var + EPS)
    shift = b - mean * scale
    return scale.reshape(1, c_p), shift.reshape(1, c_p)


def _conv_pass(kernel, inputs, in_specs, *, grid, th, wout, c_out_p, scratch_c,
               n, hout, out_dtype, flops, bytes_accessed):
    ht = grid[1]
    out_shape = (
        jax.ShapeDtypeStruct((n, hout, wout, c_out_p), out_dtype),   # pre-BN conv out
        jax.ShapeDtypeStruct((n, ht, 1, c_out_p), jnp.float32),      # per-tile sum
        jax.ShapeDtypeStruct((n, ht, 1, c_out_p), jnp.float32),      # per-tile sum sq
    )
    out_specs = (
        pl.BlockSpec((1, th, wout, c_out_p), lambda nn, ii: (nn, ii, 0, 0)),
        pl.BlockSpec((1, 1, 1, c_out_p), lambda nn, ii: (nn, ii, 0, 0)),
        pl.BlockSpec((1, 1, 1, c_out_p), lambda nn, ii: (nn, ii, 0, 0)),
    )
    return pl.pallas_call(
        kernel,
        grid_spec=pltpu.PrefetchScalarGridSpec(
            num_scalar_prefetch=0,
            grid=grid,
            in_specs=in_specs,
            out_specs=out_specs,
            # Lane-packed 3-tap window (interior + 1-row halos), single instance.
            scratch_shapes=[pltpu.VMEM((th + 2, wout, 3 * scratch_c),
                                       jnp.bfloat16)],
        ),
        out_shape=out_shape,
        compiler_params=pltpu.CompilerParams(
            dimension_semantics=("parallel", "parallel"),
            vmem_limit_bytes=VMEM_LIMIT,
        ),
        cost_estimate=pl.CostEstimate(
            flops=int(flops), transcendentals=0,
            bytes_accessed=int(bytes_accessed)),
    )(*inputs)


def down_forward(x_nchw, params):
    """Forward of Down: MaxPool2d(2) -> (Conv3x3 -> BN(train stats) -> ReLU) x 2."""
    n, cin, h, w = x_nchw.shape
    cout = params["w1"].shape[0]
    assert h % 2 == 0 and w % 2 == 0, "MaxPool2d(2) with odd sizes not supported"
    hout, wout = h // 2, w // 2
    # TODO(synk): pooled widths that are not a multiple of 8 need a padded GEMM
    # window (sublane tiling); UNet shapes used here are multiples of 16.
    assert wout % 8 == 0

    cin_p = _round_up(cin, LANE)
    c_p = _round_up(cout, LANE)
    th = _pick_row_tile(hout, wout, c_p, n)   # pooled rows per grid step
    ht = hout // th
    grid = (n, ht)
    count = n * hout * wout
    rows_chunk = _pick_chunk_rows(th, wout, c_p)

    # Layout glue (no compute): NCHW -> NHWC, channel pad to a lane multiple,
    # bf16, then pack the two W-partners of every 2x2 pool window into the
    # channel dim (free reshape) so the whole pool is lane-aligned in-kernel.
    xh = jnp.transpose(x_nchw, (0, 2, 3, 1))
    xh = jnp.pad(xh, ((0, 0), (0, 0), (0, 0), (0, cin_p - cin)))
    xw = xh.astype(jnp.bfloat16).reshape(n, h, wout, 2 * cin_p)

    w1 = _prep_weight(params["w1"], cin_p, c_p)
    w2 = _prep_weight(params["w2"], c_p, c_p)
    # NOTE: conv biases are dropped in the kernel path (exactly cancelled by the
    # training-mode batch-mean subtraction); restore them if eval-mode BN with
    # running statistics is ever wired in.

    # TODO(synk): weight / scale / shift inputs could be single-buffered via
    # pipeline_mode=pl.Buffered(1) on v7x (64 MiB VMEM); skipped for API safety.

    # ---------------- pass 1: maxpool + conv1 + BN1 partial sums ------------
    x_specs = [
        pl.BlockSpec((1, 2 * th, wout, 2 * cin_p), lambda nn, ii: (nn, ii, 0, 0)),
        pl.BlockSpec((1, 2, wout, 2 * cin_p),
                     lambda nn, ii: (nn, jnp.maximum(ii * th - 1, 0), 0, 0)),
        pl.BlockSpec((1, 2, wout, 2 * cin_p),
                     lambda nn, ii: (nn, jnp.minimum((ii + 1) * th, hout - 1), 0, 0)),
        pl.BlockSpec((3, 3 * cin_p, c_p), lambda nn, ii: (0, 0, 0)),
    ]
    k1 = functools.partial(_pool_conv_stats_kernel, th=th, wout=wout,
                           cin_p=cin_p, cout_p=c_p, rows_chunk=rows_chunk)
    y1, ps1, pq1 = _conv_pass(
        k1, (xw, xw, xw, w1), x_specs, grid=grid, th=th, wout=wout,
        c_out_p=c_p, scratch_c=cin_p, n=n, hout=hout, out_dtype=jnp.bfloat16,
        flops=2 * count * 9 * cin_p * c_p,
        bytes_accessed=xw.size * 2 + w1.size * 2 + count * c_p * 2)
    scale1, shift1 = _bn_scale_shift(ps1, pq1, params["g1"], params["beta1"],
                                     count, c_p)

    # ------------- pass 2: BN1 + ReLU + conv2 + BN2 partial sums ------------
    y_specs = [
        pl.BlockSpec((1, th, wout, c_p), lambda nn, ii: (nn, ii, 0, 0)),
        pl.BlockSpec((1, 1, wout, c_p),
                     lambda nn, ii: (nn, jnp.maximum(ii * th - 1, 0), 0, 0)),
        pl.BlockSpec((1, 1, wout, c_p),
                     lambda nn, ii: (nn, jnp.minimum((ii + 1) * th, hout - 1), 0, 0)),
        pl.BlockSpec((3, 3 * c_p, c_p), lambda nn, ii: (0, 0, 0)),
        pl.BlockSpec((1, c_p), lambda nn, ii: (0, 0)),
        pl.BlockSpec((1, c_p), lambda nn, ii: (0, 0)),
    ]
    k2 = functools.partial(_bn_conv_stats_kernel, th=th, wout=wout, c_p=c_p,
                           rows_chunk=rows_chunk)
    y2, ps2, pq2 = _conv_pass(
        k2, (y1, y1, y1, w2, scale1, shift1), y_specs, grid=grid, th=th,
        wout=wout, c_out_p=c_p, scratch_c=c_p, n=n, hout=hout,
        out_dtype=jnp.float32,
        flops=2 * count * 9 * c_p * c_p,
        bytes_accessed=y1.size * 2 + w2.size * 2 + count * c_p * 4)
    scale2, shift2 = _bn_scale_shift(ps2, pq2, params["g2"], params["beta2"],
                                     count, c_p)

    # ----------------------- pass 3: BN2 + ReLU epilogue --------------------
    # TODO(synk): in a full UNet this pass (and the NCHW transpose below) would
    # be deferred into the consumer block's pass 1, exactly as pass 2 consumes
    # BN1, keeping everything NHWC; here the module boundary forces it.
    out = pl.pallas_call(
        _bn_relu_kernel,
        grid_spec=pltpu.PrefetchScalarGridSpec(
            num_scalar_prefetch=0,
            grid=grid,
            in_specs=[
                pl.BlockSpec((1, th, wout, c_p), lambda nn, ii: (nn, ii, 0, 0)),
                pl.BlockSpec((1, c_p), lambda nn, ii: (0, 0)),
                pl.BlockSpec((1, c_p), lambda nn, ii: (0, 0)),
            ],
            out_specs=pl.BlockSpec((1, th, wout, c_p),
                                   lambda nn, ii: (nn, ii, 0, 0)),
        ),
        out_shape=jax.ShapeDtypeStruct((n, hout, wout, c_p), jnp.float32),
        input_output_aliases={0: 0},          # normalize y2 in place
        compiler_params=pltpu.CompilerParams(
            dimension_semantics=("parallel", "parallel"),
            vmem_limit_bytes=VMEM_LIMIT,
        ),
        cost_estimate=pl.CostEstimate(
            flops=2 * count * c_p, transcendentals=0,
            bytes_accessed=2 * count * c_p * 4),
    )(y2, scale2, shift2)

    # glue: drop channel padding, back to NCHW
    return jnp.transpose(out[..., :cout], (0, 3, 1, 2))


# ------------------------------ pure-JAX reference ---------------------------

def ref_forward(x_nchw, params):
    """Reference with PyTorch Down semantics (training-mode BN, conv bias kept).

    Conv operands are cast to bf16 (f32 accumulation) to mirror the MXU
    precision used by the kernels; BN / ReLU stay in f32.
    """
    xn = jnp.transpose(x_nchw, (0, 2, 3, 1))
    pooled = jax.lax.reduce_window(xn, -jnp.inf, jax.lax.max,
                                   (1, 2, 2, 1), (1, 2, 2, 1), "VALID")

    def conv_bn_relu(a, wgt, b, g, beta):
        wt = jnp.transpose(wgt, (2, 3, 1, 0)).astype(jnp.bfloat16)
        y = jax.lax.conv_general_dilated(
            a.astype(jnp.bfloat16), wt, (1, 1), ((1, 1), (1, 1)),
            dimension_numbers=("NHWC", "HWIO", "NHWC"),
            preferred_element_type=jnp.float32) + b
        mean = jnp.mean(y, axis=(0, 1, 2), keepdims=True)
        var = jnp.mean((y - mean) ** 2, axis=(0, 1, 2), keepdims=True)
        return jnp.maximum((y - mean) * jax.lax.rsqrt(var + EPS) * g + beta, 0.0)

    a1 = conv_bn_relu(pooled, params["w1"], params["b1"], params["g1"], params["beta1"])
    a2 = conv_bn_relu(a1, params["w2"], params["b2"], params["g2"], params["beta2"])
    return jnp.transpose(a2, (0, 3, 1, 2))


# ------------------------------------ main ------------------------------------

if __name__ == "__main__":
    N, Cin, H, W = 2, 4, 16, 16
    Cout = 8

    key = jax.random.PRNGKey(0)
    kx, kw1, kb1, kw2, kb2 = jax.random.split(key, 5)

    x = jax.random.normal(kx, (N, Cin, H, W), dtype=jnp.float32)
    params = {
        # Conv2d(Cin, Cout, 3, padding=1) and Conv2d(Cout, Cout, 3, padding=1)
        "w1": 0.1 * jax.random.normal(kw1, (Cout, Cin, 3, 3), dtype=jnp.float32),
        "b1": 0.05 * jax.random.normal(kb1, (Cout,), dtype=jnp.float32),
        "w2": 0.1 * jax.random.normal(kw2, (Cout, Cout, 3, 3), dtype=jnp.float32),
        "b2": 0.05 * jax.random.normal(kb2, (Cout,), dtype=jnp.float32),
        # BatchNorm2d default affine init: gamma=1, beta=0
        "g1": jnp.ones((Cout,), jnp.float32), "beta1": jnp.zeros((Cout,), jnp.float32),
        "g2": jnp.ones((Cout,), jnp.float32), "beta2": jnp.zeros((Cout,), jnp.float32),
    }
    # TODO(synk): BatchNorm running_mean/running_var buffer updates (stateful)
    # are not modeled; forward uses training-mode batch statistics as PyTorch
    # does by default.

    out = jax.block_until_ready(jax.jit(down_forward)(x, params))
    assert out.shape == (N, Cout, H // 2, W // 2), out.shape

    ref = jax.block_until_ready(ref_forward(x, params))
    err = float(jnp.max(jnp.abs(out - ref)))
    # bf16 storage of the inter-conv activation (plus bf16 MXU operands) leaves
    # ~2^-9 relative noise that the second BatchNorm re-amplifies near the ReLU
    # boundary; 1e-2 absorbs it while still catching any structural bug.
    assert jnp.allclose(out, ref, atol=1e-2, rtol=1e-2), err

    print("KERNEL_OK")
</pallas_src>

<mosaic_0001>
module attributes {stable_mosaic.version = 11 : i64} {
  func.func @_pool_conv_stats_kernel(%arg0: i32, %arg1: i32, %arg2: memref<1x16x8x256xbf16, #tpu.memory_space<vmem>>, %arg3: memref<1x2x8x256xbf16, #tpu.memory_space<vmem>>, %arg4: memref<1x2x8x256xbf16, #tpu.memory_space<vmem>>, %arg5: memref<3x384x128xbf16, #tpu.memory_space<vmem>>, %arg6: memref<1x8x8x128xbf16, #tpu.memory_space<vmem>>, %arg7: memref<1x1x1x128xf32, #tpu.memory_space<vmem>>, %arg8: memref<1x1x1x128xf32, #tpu.memory_space<vmem>>, %arg9: memref<10x8x384xbf16, #tpu.memory_space<vmem>>) attributes {dimension_semantics = [#tpu.dimension_semantics<parallel>, #tpu.dimension_semantics<parallel>], iteration_bounds = array<i64: 2, 1>, scalar_prefetch = 0 : i64, scratch_operands = 1 : i64, tpu.core_type = #tpu.core_type<tc>, window_params = [{transform_indices = @transform_0, window_bounds = array<i64: 1, 16, 8, 256>}, {transform_indices = @transform_1, window_bounds = array<i64: 1, 2, 8, 256>}, {transform_indices = @transform_2, window_bounds = array<i64: 1, 2, 8, 256>}, {pipeline_mode = #tpu.pipeline_mode<synchronous>, transform_indices = @transform_3, window_bounds = array<i64: 3, 384, 128>}, {transform_indices = @transform_4, window_bounds = array<i64: 1, 8, 8, 128>}, {transform_indices = @transform_5, window_bounds = array<i64: 1, 1, 1, 128>}, {transform_indices = @transform_6, window_bounds = array<i64: 1, 1, 1, 128>}]} {
    %c0 = arith.constant 0 : index
    %c0_0 = arith.constant 0 : index
    %c0_1 = arith.constant 0 : index
    %c0_2 = arith.constant 0 : index
    %0 = vector.load %arg2[%c0, %c0_0, %c0_1, %c0_2] : memref<1x16x8x256xbf16, #tpu.memory_space<vmem>>, vector<1x16x8x256xbf16>
    %1 = vector.shape_cast %0 : vector<1x16x8x256xbf16> to vector<16x8x256xbf16>
    %2 = vector.shape_cast %1 : vector<16x8x256xbf16> to vector<8x2x8x256xbf16>
    %3 = vector.extract_strided_slice %2 {offsets = [0, 0, 0, 0], sizes = [8, 1, 8, 256], strides = [1, 1, 1, 1]} : vector<8x2x8x256xbf16> to vector<8x1x8x256xbf16>
    %4 = vector.shape_cast %3 : vector<8x1x8x256xbf16> to vector<8x8x256xbf16>
    %5 = vector.extract_strided_slice %2 {offsets = [0, 1, 0, 0], sizes = [8, 1, 8, 256], strides = [1, 1, 1, 1]} : vector<8x2x8x256xbf16> to vector<8x1x8x256xbf16>
    %6 = vector.shape_cast %5 : vector<8x1x8x256xbf16> to vector<8x8x256xbf16>
    %7 = arith.maximumf %4, %6 : vector<8x8x256xbf16>
    %8 = vector.extract_strided_slice %7 {offsets = [0, 0, 0], sizes = [8, 8, 128], strides = [1, 1, 1]} : vector<8x8x256xbf16> to vector<8x8x128xbf16>
    %9 = vector.extract_strided_slice %7 {offsets = [0, 0, 128], sizes = [8, 8, 128], strides = [1, 1, 1]} : vector<8x8x256xbf16> to vector<8x8x128xbf16>
    %10 = arith.maximumf %8, %9 : vector<8x8x128xbf16>
    %cst = arith.constant 0.000000e+00 : bf16
    %11 = vector.broadcast %cst : bf16 to vector<8x1x128xbf16>
    %12 = vector.extract_strided_slice %10 {offsets = [0, 0, 0], sizes = [8, 7, 128], strides = [1, 1, 1]} : vector<8x8x128xbf16> to vector<8x7x128xbf16>
    %13 = tpu.concatenate %11, %12 in 1 : vector<8x1x128xbf16>, vector<8x7x128xbf16> -> vector<8x8x128xbf16>
    %14 = vector.extract_strided_slice %10 {offsets = [0, 1, 0], sizes = [8, 7, 128], strides = [1, 1, 1]} : vector<8x8x128xbf16> to vector<8x7x128xbf16>
    %15 = tpu.concatenate %14, %11 in 1 : vector<8x7x128xbf16>, vector<8x1x128xbf16> -> vector<8x8x128xbf16>
    %16 = tpu.concatenate %13, %10, %15 in 2 : vector<8x8x128xbf16>, vector<8x8x128xbf16>, vector<8x8x128xbf16> -> vector<8x8x384xbf16>
    %c1 = arith.constant 1 : index
    %c0_3 = arith.constant 0 : index
    %c0_4 = arith.constant 0 : index
    %17 = vector.load %arg9[%c1, %c0_3, %c0_4] : memref<10x8x384xbf16, #tpu.memory_space<vmem>>, vector<8x8x384xbf16>
    tpu.vector_store %arg9[%c1, %c0_3, %c0_4], %16 {strides = array<i32>} : memref<10x8x384xbf16, #tpu.memory_space<vmem>>, vector<8x8x384xbf16>,
    %c0_i32 = arith.constant 0 : i32
    %18 = arith.cmpi eq, %arg1, %c0_i32 : i32
    %19 = arith.extui %18 : i1 to i32
    %c0_i32_5 = arith.constant 0 : i32
    %20 = arith.cmpi ne, %19, %c0_i32_5 : i32
    scf.if %20 {
      %cst_49 = arith.constant 0.000000e+00 : bf16
      %69 = vector.broadcast %cst_49 : bf16 to vector<1x8x384xbf16>
      %c0_50 = arith.constant 0 : index
      %c0_51 = arith.constant 0 : index
      %c0_52 = arith.constant 0 : index
      %70 = vector.load %arg9[%c0_50, %c0_51, %c0_52] : memref<10x8x384xbf16, #tpu.memory_space<vmem>>, vector<1x8x384xbf16>
      tpu.vector_store %arg9[%c0_50, %c0_51, %c0_52], %69 {strides = array<i32>} : memref<10x8x384xbf16, #tpu.memory_space<vmem>>, vector<1x8x384xbf16>,
    } else {
    }
    %c0_i32_6 = arith.constant 0 : i32
    %21 = arith.cmpi sgt, %arg1, %c0_i32_6 : i32
    %22 = arith.extui %21 : i1 to i32
    %c0_i32_7 = arith.constant 0 : i32
    %23 = arith.cmpi ne, %22, %c0_i32_7 : i32
    scf.if %23 {
      %c0_49 = arith.constant 0 : index
      %c0_50 = arith.constant 0 : index
      %c0_51 = arith.constant 0 : index
      %c0_52 = arith.constant 0 : index
      %69 = vector.load %arg3[%c0_49, %c0_50, %c0_51, %c0_52] : memref<1x2x8x256xbf16, #tpu.memory_space<vmem>>, vector<1x2x8x256xbf16>
      %70 = vector.shape_cast %69 : vector<1x2x8x256xbf16> to vector<2x8x256xbf16>
      %71 = vector.shape_cast %70 : vector<2x8x256xbf16> to vector<1x2x8x256xbf16>
      %72 = vector.extract_strided_slice %71 {offsets = [0, 0, 0, 0], sizes = [1, 1, 8, 256], strides = [1, 1, 1, 1]} : vector<1x2x8x256xbf16> to vector<1x1x8x256xbf16>
      %73 = vector.shape_cast %72 : vector<1x1x8x256xbf16> to vector<1x8x256xbf16>
      %74 = vector.extract_strided_slice %71 {offsets = [0, 1, 0, 0], sizes = [1, 1, 8, 256], strides = [1, 1, 1, 1]} : vector<1x2x8x256xbf16> to vector<1x1x8x256xbf16>
      %75 = vector.shape_cast %74 : vector<1x1x8x256xbf16> to vector<1x8x256xbf16>
      %76 = arith.maximumf %73, %75 : vector<1x8x256xbf16>
      %77 = vector.extract_strided_slice %76 {offsets = [0, 0, 0], sizes = [1, 8, 128], strides = [1, 1, 1]} : vector<1x8x256xbf16> to vector<1x8x128xbf16>
      %78 = vector.extract_strided_slice %76 {offsets = [0, 0, 128], sizes = [1, 8, 128], strides = [1, 1, 1]} : vector<1x8x256xbf16> to vector<1x8x128xbf16>
      %79 = arith.maximumf %77, %78 : vector<1x8x128xbf16>
      %cst_53 = arith.constant 0.000000e+00 : bf16
      %80 = vector.broadcast %cst_53 : bf16 to vector<1x1x128xbf16>
      %81 = vector.extract_strided_slice %79 {offsets = [0, 0, 0], sizes = [1, 7, 128], strides = [1, 1, 1]} : vector<1x8x128xbf16> to vector<1x7x128xbf16>
      %82 = tpu.concatenate %80, %81 in 1 : vector<1x1x128xbf16>, vector<1x7x128xbf16> -> vector<1x8x128xbf16>
      %83 = vector.extract_strided_slice %79 {offsets = [0, 1, 0], sizes = [1, 7, 128], strides = [1, 1, 1]} : vector<1x8x128xbf16> to vector<1x7x128xbf16>
      %84 = tpu.concatenate %83, %80 in 1 : vector<1x7x128xbf16>, vector<1x1x128xbf16> -> vector<1x8x128xbf16>
      %85 = tpu.concatenate %82, %79, %84 in 2 : vector<1x8x128xbf16>, vector<1x8x128xbf16>, vector<1x8x128xbf16> -> vector<1x8x384xbf16>
      %c0_54 = arith.constant 0 : index
      %c0_55 = arith.constant 0 : index
      %c0_56 = arith.constant 0 : index
      %86 = vector.load %arg9[%c0_54, %c0_55, %c0_56] : memref<10x8x384xbf16, #tpu.memory_space<vmem>>, vector<1x8x384xbf16>
      tpu.vector_store %arg9[%c0_54, %c0_55, %c0_56], %85 {strides = array<i32>} : memref<10x8x384xbf16, #tpu.memory_space<vmem>>, vector<1x8x384xbf16>,
    } else {
    }
    %c0_i32_8 = arith.constant 0 : i32
    %24 = arith.cmpi eq, %arg1, %c0_i32_8 : i32
    %25 = arith.extui %24 : i1 to i32
    %c0_i32_9 = arith.constant 0 : i32
    %26 = arith.cmpi ne, %25, %c0_i32_9 : i32
    scf.if %26 {
      %cst_49 = arith.constant 0.000000e+00 : bf16
      %69 = vector.broadcast %cst_49 : bf16 to vector<1x8x384xbf16>
      %c9 = arith.constant 9 : index
      %c0_50 = arith.constant 0 : index
      %c0_51 = arith.constant 0 : index
      %70 = vector.load %arg9[%c9, %c0_50, %c0_51] : memref<10x8x384xbf16, #tpu.memory_space<vmem>>, vector<1x8x384xbf16>
      tpu.vector_store %arg9[%c9, %c0_50, %c0_51], %69 {strides = array<i32>} : memref<10x8x384xbf16, #tpu.memory_space<vmem>>, vector<1x8x384xbf16>,
    } else {
    }
    %c0_i32_10 = arith.constant 0 : i32
    %27 = arith.cmpi slt, %arg1, %c0_i32_10 : i32
    %28 = arith.extui %27 : i1 to i32
    %c0_i32_11 = arith.constant 0 : i32
    %29 = arith.cmpi ne, %28, %c0_i32_11 : i32
    scf.if %29 {
      %c0_49 = arith.constant 0 : index
      %c0_50 = arith.constant 0 : index
      %c0_51 = arith.constant 0 : index
      %c0_52 = arith.constant 0 : index
      %69 = vector.load %arg4[%c0_49, %c0_50, %c0_51, %c0_52] : memref<1x2x8x256xbf16, #tpu.memory_space<vmem>>, vector<1x2x8x256xbf16>
      %70 = vector.shape_cast %69 : vector<1x2x8x256xbf16> to vector<2x8x256xbf16>
      %71 = vector.shape_cast %70 : vector<2x8x256xbf16> to vector<1x2x8x256xbf16>
      %72 = vector.extract_strided_slice %71 {offsets = [0, 0, 0, 0], sizes = [1, 1, 8, 256], strides = [1, 1, 1, 1]} : vector<1x2x8x256xbf16> to vector<1x1x8x256xbf16>
      %73 = vector.shape_cast %72 : vector<1x1x8x256xbf16> to vector<1x8x256xbf16>
      %74 = vector.extract_strided_slice %71 {offsets = [0, 1, 0, 0], sizes = [1, 1, 8, 256], strides = [1, 1, 1, 1]} : vector<1x2x8x256xbf16> to vector<1x1x8x256xbf16>
      %75 = vector.shape_cast %74 : vector<1x1x8x256xbf16> to vector<1x8x256xbf16>
      %76 = arith.maximumf %73, %75 : vector<1x8x256xbf16>
      %77 = vector.extract_strided_slice %76 {offsets = [0, 0, 0], sizes = [1, 8, 128], strides = [1, 1, 1]} : vector<1x8x256xbf16> to vector<1x8x128xbf16>
      %78 = vector.extract_strided_slice %76 {offsets = [0, 0, 128], sizes = [1, 8, 128], strides = [1, 1, 1]} : vector<1x8x256xbf16> to vector<1x8x128xbf16>
      %79 = arith.maximumf %77, %78 : vector<1x8x128xbf16>
      %cst_53 = arith.constant 0.000000e+00 : bf16
      %80 = vector.broadcast %cst_53 : bf16 to vector<1x1x128xbf16>
      %81 = vector.extract_strided_slice %79 {offsets = [0, 0, 0], sizes = [1, 7, 128], strides = [1, 1, 1]} : vector<1x8x128xbf16> to vector<1x7x128xbf16>
      %82 = tpu.concatenate %80, %81 in 1 : vector<1x1x128xbf16>, vector<1x7x128xbf16> -> vector<1x8x128xbf16>
      %83 = vector.extract_strided_slice %79 {offsets = [0, 1, 0], sizes = [1, 7, 128], strides = [1, 1, 1]} : vector<1x8x128xbf16> to vector<1x7x128xbf16>
      %84 = tpu.concatenate %83, %80 in 1 : vector<1x7x128xbf16>, vector<1x1x128xbf16> -> vector<1x8x128xbf16>
      %85 = tpu.concatenate %82, %79, %84 in 2 : vector<1x8x128xbf16>, vector<1x8x128xbf16>, vector<1x8x128xbf16> -> vector<1x8x384xbf16>
      %c9 = arith.constant 9 : index
      %c0_54 = arith.constant 0 : index
      %c0_55 = arith.constant 0 : index
      %86 = vector.load %arg9[%c9, %c0_54, %c0_55] : memref<10x8x384xbf16, #tpu.memory_space<vmem>>, vector<1x8x384xbf16>
      tpu.vector_store %arg9[%c9, %c0_54, %c0_55], %85 {strides = array<i32>} : memref<10x8x384xbf16, #tpu.memory_space<vmem>>, vector<1x8x384xbf16>,
    } else {
    }
    %cst_12 = arith.constant 0.000000e+00 : f32
    %30 = vector.broadcast %cst_12 : f32 to vector<1x128xf32>
    %cst_13 = arith.constant 0.000000e+00 : f32
    %31 = vector.broadcast %cst_13 : f32 to vector<1x128xf32>
    %cst_14 = arith.constant 0.000000e+00 : f32
    %32 = vector.broadcast %cst_14 : f32 to vector<64x128xf32>
    %c0_15 = arith.constant 0 : index
    %c0_16 = arith.constant 0 : index
    %c0_17 = arith.constant 0 : index
    %33 = vector.load %arg9[%c0_15, %c0_16, %c0_17] : memref<10x8x384xbf16, #tpu.memory_space<vmem>>, vector<8x8x384xbf16>
    %34 = vector.shape_cast %33 : vector<8x8x384xbf16> to vector<64x384xbf16>
    %c0_18 = arith.constant 0 : index
    %c0_19 = arith.constant 0 : index
    %c0_20 = arith.constant 0 : index
    %35 = vector.load %arg5[%c0_18, %c0_19, %c0_20] : memref<3x384x128xbf16, #tpu.memory_space<vmem>>, vector<1x384x128xbf16>
    %36 = vector.shape_cast %35 : vector<1x384x128xbf16> to vector<384x128xbf16>
    %cst_21 = arith.constant dense<0.000000e+00> : vector<64x128xf32>
    %37 = tpu.matmul %34, %36, %cst_21 {dimension_numbers = #tpu.dot_dimension_numbers<[1], [0], [0], [1], [0, 0, 1, 1], [], []>} : vector<64x384xbf16>, vector<384x128xbf16>, vector<64x128xf32> -> vector<64x128xf32>
    %38 = arith.addf %32, %37 : vector<64x128xf32>
    %c1_22 = arith.constant 1 : index
    %c0_23 = arith.constant 0 : index
    %c0_24 = arith.constant 0 : index
    %39 = vector.load %arg9[%c1_22, %c0_23, %c0_24] : memref<10x8x384xbf16, #tpu.memory_space<vmem>>, vector<8x8x384xbf16>
    %40 = vector.shape_cast %39 : vector<8x8x384xbf16> to vector<64x384xbf16>
    %c1_25 = arith.constant 1 : index
    %c0_26 = arith.constant 0 : index
    %c0_27 = arith.constant 0 : index
    %41 = vector.load %arg5[%c1_25, %c0_26, %c0_27] : memref<3x384x128xbf16, #tpu.memory_space<vmem>>, vector<1x384x128xbf16>
    %42 = vector.shape_cast %41 : vector<1x384x128xbf16> to vector<384x128xbf16>
    %cst_28 = arith.constant dense<0.000000e+00> : vector<64x128xf32>
    %43 = tpu.matmul %40, %42, %cst_28 {dimension_numbers = #tpu.dot_dimension_numbers<[1], [0], [0], [1], [0, 0, 1, 1], [], []>} : vector<64x384xbf16>, vector<384x128xbf16>, vector<64x128xf32> -> vector<64x128xf32>
    %44 = arith.addf %38, %43 : vector<64x128xf32>
    %c2 = arith.constant 2 : index
    %c0_29 = arith.constant 0 : index
    %c0_30 = arith.constant 0 : index
    %45 = vector.load %arg9[%c2, %c0_29, %c0_30] : memref<10x8x384xbf16, #tpu.memory_space<vmem>>, vector<8x8x384xbf16>
    %46 = vector.shape_cast %45 : vector<8x8x384xbf16> to vector<64x384xbf16>
    %c2_31 = arith.constant 2 : index
    %c0_32 = arith.constant 0 : index
    %c0_33 = arith.constant 0 : index
    %47 = vector.load %arg5[%c2_31, %c0_32, %c0_33] : memref<3x384x128xbf16, #tpu.memory_space<vmem>>, vector<1x384x128xbf16>
    %48 = vector.shape_cast %47 : vector<1x384x128xbf16> to vector<384x128xbf16>
    %cst_34 = arith.constant dense<0.000000e+00> : vector<64x128xf32>
    %49 = tpu.matmul %46, %48, %cst_34 {dimension_numbers = #tpu.dot_dimension_numbers<[1], [0], [0], [1], [0, 0, 1, 1], [], []>} : vector<64x384xbf16>, vector<384x128xbf16>, vector<64x128xf32> -> vector<64x128xf32>
    %50 = arith.addf %44, %49 : vector<64x128xf32>
    %51 = vector.shape_cast %50 : vector<64x128xf32> to vector<8x8x128xf32>
    %52 = arith.truncf %51 : vector<8x8x128xf32> to vector<8x8x128xbf16>
    %c0_35 = arith.constant 0 : index
    %c0_36 = arith.constant 0 : index
    %c0_37 = arith.constant 0 : index
    %c0_38 = arith.constant 0 : index
    %53 = vector.load %arg6[%c0_35, %c0_36, %c0_37, %c0_38] : memref<1x8x8x128xbf16, #tpu.memory_space<vmem>>, vector<1x8x8x128xbf16>
    %54 = vector.shape_cast %53 : vector<1x8x8x128xbf16> to vector<8x8x128xbf16>
    %55 = vector.shape_cast %52 : vector<8x8x128xbf16> to vector<1x8x8x128xbf16>
    tpu.vector_store %arg6[%c0_35, %c0_36, %c0_37, %c0_38], %55 {strides = array<i32>} : memref<1x8x8x128xbf16, #tpu.memory_space<vmem>>, vector<1x8x8x128xbf16>,
    %cst_39 = arith.constant dense<0.000000e+00> : vector<128xf32>
    %56 = vector.multi_reduction <add>, %50, %cst_39 [0] : vector<64x128xf32> to vector<128xf32>
    %57 = vector.shape_cast %56 : vector<128xf32> to vector<1x128xf32>
    %58 = arith.addf %30, %57 : vector<1x128xf32>
    %59 = arith.mulf %50, %50 : vector<64x128xf32>
    %cst_40 = arith.constant dense<0.000000e+00> : vector<128xf32>
    %60 = vector.multi_reduction <add>, %59, %cst_40 [0] : vector<64x128xf32> to vector<128xf32>
    %61 = vector.shape_cast %60 : vector<128xf32> to vector<1x128xf32>
    %62 = arith.addf %31, %61 : vector<1x128xf32>
    %c0_41 = arith.constant 0 : index
    %c0_42 = arith.constant 0 : index
    %c0_43 = arith.constant 0 : index
    %c0_44 = arith.constant 0 : index
    %63 = vector.load %arg7[%c0_41, %c0_42, %c0_43, %c0_44] : memref<1x1x1x128xf32, #tpu.memory_space<vmem>>, vector<1x1x1x128xf32>
    %64 = vector.shape_cast %63 : vector<1x1x1x128xf32> to vector<1x128xf32>
    %65 = vector.shape_cast %58 : vector<1x128xf32> to vector<1x1x1x128xf32>
    tpu.vector_store %arg7[%c0_41, %c0_42, %c0_43, %c0_44], %65 {strides = array<i32>} : memref<1x1x1x128xf32, #tpu.memory_space<vmem>>, vector<1x1x1x128xf32>,
    %c0_45 = arith.constant 0 : index
    %c0_46 = arith.constant 0 : index
    %c0_47 = arith.constant 0 : index
    %c0_48 = arith.constant 0 : index
    %66 = vector.load %arg8[%c0_45, %c0_46, %c0_47, %c0_48] : memref<1x1x1x128xf32, #tpu.memory_space<vmem>>, vector<1x1x1x128xf32>
    %67 = vector.shape_cast %66 : vector<1x1x1x128xf32> to vector<1x128xf32>
    %68 = vector.shape_cast %62 : vector<1x128xf32> to vector<1x1x1x128xf32>
    tpu.vector_store %arg8[%c0_45, %c0_46, %c0_47, %c0_48], %68 {strides = array<i32>} : memref<1x1x1x128xf32, #tpu.memory_space<vmem>>, vector<1x1x1x128xf32>,
    return
  }
  func.func @transform_0(%arg0: i32, %arg1: i32) -> (i32, i32, i32, i32) {
    %c0_i32 = arith.constant 0 : i32
    %c0_i32_0 = arith.constant 0 : i32
    %c0_i32_1 = arith.constant 0 : i32
    return %arg0, %arg1, %c0_i32, %c0_i32_0 : i32, i32, i32, i32
  }
  func.func @transform_1(%arg0: i32, %arg1: i32) -> (i32, i32, i32, i32) {
    %c8_i32 = arith.constant 8 : i32
    %0 = arith.muli %arg1, %c8_i32 : i32
    %c1_i32 = arith.constant 1 : i32
    %1 = arith.subi %0, %c1_i32 : i32
    %c0_i32 = arith.constant 0 : i32
    %2 = arith.maxsi %1, %c0_i32 : i32
    %c0_i32_0 = arith.constant 0 : i32
    %c0_i32_1 = arith.constant 0 : i32
    %c0_i32_2 = arith.constant 0 : i32
    return %arg0, %2, %c0_i32_0, %c0_i32_1 : i32, i32, i32, i32
  }
  func.func @transform_2(%arg0: i32, %arg1: i32) -> (i32, i32, i32, i32) {
    %c1_i32 = arith.constant 1 : i32
    %0 = arith.addi %arg1, %c1_i32 : i32
    %c8_i32 = arith.constant 8 : i32
    %1 = arith.muli %0, %c8_i32 : i32
    %c7_i32 = arith.constant 7 : i32
    %2 = arith.minsi %1, %c7_i32 : i32
    %c0_i32 = arith.constant 0 : i32
    %c0_i32_0 = arith.constant 0 : i32
    %c0_i32_1 = arith.constant 0 : i32
    return %arg0, %2, %c0_i32, %c0_i32_0 : i32, i32, i32, i32
  }
  func.func @transform_3(%arg0: i32, %arg1: i32) -> (i32, i32, i32) {
    %c0_i32 = arith.constant 0 : i32
    %c0_i32_0 = arith.constant 0 : i32
    %c0_i32_1 = arith.constant 0 : i32
    %c0_i32_2 = arith.constant 0 : i32
    return %c0_i32, %c0_i32_0, %c0_i32_1 : i32, i32, i32
  }
  func.func @transform_4(%arg0: i32, %arg1: i32) -> (i32, i32, i32, i32) {
    %c0_i32 = arith.constant 0 : i32
    %c0_i32_0 = arith.constant 0 : i32
    %c0_i32_1 = arith.constant 0 : i32
    return %arg0, %arg1, %c0_i32, %c0_i32_0 : i32, i32, i32, i32
  }
  func.func @transform_5(%arg0: i32, %arg1: i32) -> (i32, i32, i32, i32) {
    %c0_i32 = arith.constant 0 : i32
    %c0_i32_0 = arith.constant 0 : i32
    %c0_i32_1 = arith.constant 0 : i32
    return %arg0, %arg1, %c0_i32, %c0_i32_0 : i32, i32, i32, i32
  }
  func.func @transform_6(%arg0: i32, %arg1: i32) -> (i32, i32, i32, i32) {
    %c0_i32 = arith.constant 0 : i32
    %c0_i32_0 = arith.constant 0 : i32
    %c0_i32_1 = arith.constant 0 : i32
    return %arg0, %arg1, %c0_i32, %c0_i32_0 : i32, i32, i32, i32
  }
}

module attributes {stable_mosaic.version = 11 : i64} {
  func.func @_bn_relu_kernel(%arg0: i32, %arg1: i32, %arg2: memref<1x8x8x128xf32, #tpu.memory_space<vmem>>, %arg3: memref<1x128xf32, #tpu.memory_space<vmem>>, %arg4: memref<1x128xf32, #tpu.memory_space<vmem>>, %arg5: memref<1x8x8x128xf32, #tpu.memory_space<vmem>>) attributes {dimension_semantics = [#tpu.dimension_semantics<parallel>, #tpu.dimension_semantics<parallel>], iteration_bounds = array<i64: 2, 1>, scalar_prefetch = 0 : i64, scratch_operands = 0 : i64, tpu.core_type = #tpu.core_type<tc>, window_params = [{transform_indices = @transform_0, window_bounds = array<i64: 1, 8, 8, 128>}, {pipeline_mode = #tpu.pipeline_mode<synchronous>, transform_indices = @transform_1, window_bounds = array<i64: 1, 128>}, {pipeline_mode = #tpu.pipeline_mode<synchronous>, transform_indices = @transform_2, window_bounds = array<i64: 1, 128>}, {transform_indices = @transform_3, window_bounds = array<i64: 1, 8, 8, 128>}]} {
    %c0 = arith.constant 0 : index
    %c0_0 = arith.constant 0 : index
    %c0_1 = arith.constant 0 : index
    %c0_2 = arith.constant 0 : index
    %0 = vector.load %arg2[%c0, %c0_0, %c0_1, %c0_2] : memref<1x8x8x128xf32, #tpu.memory_space<vmem>>, vector<1x8x8x128xf32>
    %c0_3 = arith.constant 0 : index
    %c0_4 = arith.constant 0 : index
    %1 = vector.load %arg3[%c0_3, %c0_4] : memref<1x128xf32, #tpu.memory_space<vmem>>, vector<1x128xf32>
    %2 = vector.shape_cast %1 : vector<1x128xf32> to vector<1x1x1x128xf32>
    %3 = vector.broadcast %2 : vector<1x1x1x128xf32> to vector<1x8x8x128xf32>
    %4 = arith.mulf %0, %3 : vector<1x8x8x128xf32>
    %c0_5 = arith.constant 0 : index
    %c0_6 = arith.constant 0 : index
    %5 = vector.load %arg4[%c0_5, %c0_6] : memref<1x128xf32, #tpu.memory_space<vmem>>, vector<1x128xf32>
    %6 = vector.shape_cast %5 : vector<1x128xf32> to vector<1x1x1x128xf32>
    %7 = vector.broadcast %6 : vector<1x1x1x128xf32> to vector<1x8x8x128xf32>
    %8 = arith.addf %4, %7 : vector<1x8x8x128xf32>
    %cst = arith.constant 0.000000e+00 : f32
    %9 = vector.broadcast %cst : f32 to vector<1x8x8x128xf32>
    %10 = arith.maximumf %8, %9 : vector<1x8x8x128xf32>
    %c0_7 = arith.constant 0 : index
    %c0_8 = arith.constant 0 : index
    %c0_9 = arith.constant 0 : index
    %c0_10 = arith.constant 0 : index
    %11 = vector.load %arg5[%c0_7, %c0_8, %c0_9, %c0_10] : memref<1x8x8x128xf32, #tpu.memory_space<vmem>>, vector<1x8x8x128xf32>
    tpu.vector_store %arg5[%c0_7, %c0_8, %c0_9, %c0_10], %10 {strides = array<i32>} : memref<1x8x8x128xf32, #tpu.memory_space<vmem>>, vector<1x8x8x128xf32>,
    return
  }
  func.func @transform_0(%arg0: i32, %arg1: i32) -> (i32, i32, i32, i32) {
    %c0_i32 = arith.constant 0 : i32
    %c0_i32_0 = arith.constant 0 : i32
    %c0_i32_1 = arith.constant 0 : i32
    return %arg0, %arg1, %c0_i32, %c0_i32_0 : i32, i32, i32, i32
  }
  func.func @transform_1(%arg0: i32, %arg1: i32) -> (i32, i32) {
    %c0_i32 = arith.constant 0 : i32
    %c0_i32_0 = arith.constant 0 : i32
    %c0_i32_1 = arith.constant 0 : i32
    return %c0_i32, %c0_i32_0 : i32, i32
  }
  func.func @transform_2(%arg0: i32, %arg1: i32) -> (i32, i32) {
    %c0_i32 = arith.constant 0 : i32
    %c0_i32_0 = arith.constant 0 : i32
    %c0_i32_1 = arith.constant 0 : i32
    return %c0_i32, %c0_i32_0 : i32, i32
  }
  func.func @transform_3(%arg0: i32, %arg1: i32) -> (i32, i32, i32, i32) {
    %c0_i32 = arith.constant 0 : i32
    %c0_i32_0 = arith.constant 0 : i32
    %c0_i32_1 = arith.constant 0 : i32
    return %arg0, %arg1, %c0_i32, %c0_i32_0 : i32, i32, i32, i32
  }
}

module attributes {stable_mosaic.version = 11 : i64} {
  func.func @_bn_conv_stats_kernel(%arg0: i32, %arg1: i32, %arg2: memref<1x8x8x128xbf16, #tpu.memory_space<vmem>>, %arg3: memref<1x1x8x128xbf16, #tpu.memory_space<vmem>>, %arg4: memref<1x1x8x128xbf16, #tpu.memory_space<vmem>>, %arg5: memref<3x384x128xbf16, #tpu.memory_space<vmem>>, %arg6: memref<1x128xf32, #tpu.memory_space<vmem>>, %arg7: memref<1x128xf32, #tpu.memory_space<vmem>>, %arg8: memref<1x8x8x128xf32, #tpu.memory_space<vmem>>, %arg9: memref<1x1x1x128xf32, #tpu.memory_space<vmem>>, %arg10: memref<1x1x1x128xf32, #tpu.memory_space<vmem>>, %arg11: memref<10x8x384xbf16, #tpu.memory_space<vmem>>) attributes {dimension_semantics = [#tpu.dimension_semantics<parallel>, #tpu.dimension_semantics<parallel>], iteration_bounds = array<i64: 2, 1>, scalar_prefetch = 0 : i64, scratch_operands = 1 : i64, tpu.core_type = #tpu.core_type<tc>, window_params = [{transform_indices = @transform_0, window_bounds = array<i64: 1, 8, 8, 128>}, {transform_indices = @transform_1, window_bounds = array<i64: 1, 1, 8, 128>}, {transform_indices = @transform_2, window_bounds = array<i64: 1, 1, 8, 128>}, {pipeline_mode = #tpu.pipeline_mode<synchronous>, transform_indices = @transform_3, window_bounds = array<i64: 3, 384, 128>}, {pipeline_mode = #tpu.pipeline_mode<synchronous>, transform_indices = @transform_4, window_bounds = array<i64: 1, 128>}, {pipeline_mode = #tpu.pipeline_mode<synchronous>, transform_indices = @transform_5, window_bounds = array<i64: 1, 128>}, {transform_indices = @transform_6, window_bounds = array<i64: 1, 8, 8, 128>}, {transform_indices = @transform_7, window_bounds = array<i64: 1, 1, 1, 128>}, {transform_indices = @transform_8, window_bounds = array<i64: 1, 1, 1, 128>}]} {
    %c0 = arith.constant 0 : index
    %c0_0 = arith.constant 0 : index
    %0 = vector.load %arg6[%c0, %c0_0] : memref<1x128xf32, #tpu.memory_space<vmem>>, vector<1x128xf32>
    %c0_1 = arith.constant 0 : index
    %c0_2 = arith.constant 0 : index
    %1 = vector.load %arg7[%c0_1, %c0_2] : memref<1x128xf32, #tpu.memory_space<vmem>>, vector<1x128xf32>
    %c0_3 = arith.constant 0 : index
    %c0_4 = arith.constant 0 : index
    %c0_5 = arith.constant 0 : index
    %c0_6 = arith.constant 0 : index
    %2 = vector.load %arg2[%c0_3, %c0_4, %c0_5, %c0_6] : memref<1x8x8x128xbf16, #tpu.memory_space<vmem>>, vector<1x8x8x128xbf16>
    %3 = vector.shape_cast %2 : vector<1x8x8x128xbf16> to vector<8x8x128xbf16>
    %4 = arith.extf %3 : vector<8x8x128xbf16> to vector<8x8x128xf32>
    %5 = vector.shape_cast %0 : vector<1x128xf32> to vector<1x1x128xf32>
    %6 = vector.broadcast %5 : vector<1x1x128xf32> to vector<8x8x128xf32>
    %7 = arith.mulf %4, %6 : vector<8x8x128xf32>
    %8 = vector.shape_cast %1 : vector<1x128xf32> to vector<1x1x128xf32>
    %9 = vector.broadcast %8 : vector<1x1x128xf32> to vector<8x8x128xf32>
    %10 = arith.addf %7, %9 : vector<8x8x128xf32>
    %cst = arith.constant 0.000000e+00 : f32
    %11 = vector.broadcast %cst : f32 to vector<8x8x128xf32>
    %12 = arith.maximumf %10, %11 : vector<8x8x128xf32>
    %13 = arith.truncf %12 : vector<8x8x128xf32> to vector<8x8x128xbf16>
    %cst_7 = arith.constant 0.000000e+00 : bf16
    %14 = vector.broadcast %cst_7 : bf16 to vector<8x1x128xbf16>
    %15 = vector.extract_strided_slice %13 {offsets = [0, 0, 0], sizes = [8, 7, 128], strides = [1, 1, 1]} : vector<8x8x128xbf16> to vector<8x7x128xbf16>
    %16 = tpu.concatenate %14, %15 in 1 : vector<8x1x128xbf16>, vector<8x7x128xbf16> -> vector<8x8x128xbf16>
    %17 = vector.extract_strided_slice %13 {offsets = [0, 1, 0], sizes = [8, 7, 128], strides = [1, 1, 1]} : vector<8x8x128xbf16> to vector<8x7x128xbf16>
    %18 = tpu.concatenate %17, %14 in 1 : vector<8x7x128xbf16>, vector<8x1x128xbf16> -> vector<8x8x128xbf16>
    %19 = tpu.concatenate %16, %13, %18 in 2 : vector<8x8x128xbf16>, vector<8x8x128xbf16>, vector<8x8x128xbf16> -> vector<8x8x384xbf16>
    %c1 = arith.constant 1 : index
    %c0_8 = arith.constant 0 : index
    %c0_9 = arith.constant 0 : index
    %20 = vector.load %arg11[%c1, %c0_8, %c0_9] : memref<10x8x384xbf16, #tpu.memory_space<vmem>>, vector<8x8x384xbf16>
    tpu.vector_store %arg11[%c1, %c0_8, %c0_9], %19 {strides = array<i32>} : memref<10x8x384xbf16, #tpu.memory_space<vmem>>, vector<8x8x384xbf16>,
    %c0_i32 = arith.constant 0 : i32
    %21 = arith.cmpi eq, %arg1, %c0_i32 : i32
    %22 = arith.extui %21 : i1 to i32
    %c0_i32_10 = arith.constant 0 : i32
    %23 = arith.cmpi ne, %22, %c0_i32_10 : i32
    scf.if %23 {
      %cst_54 = arith.constant 0.000000e+00 : bf16
      %71 = vector.broadcast %cst_54 : bf16 to vector<1x8x384xbf16>
      %c0_55 = arith.constant 0 : index
      %c0_56 = arith.constant 0 : index
      %c0_57 = arith.constant 0 : index
      %72 = vector.load %arg11[%c0_55, %c0_56, %c0_57] : memref<10x8x384xbf16, #tpu.memory_space<vmem>>, vector<1x8x384xbf16>
      tpu.vector_store %arg11[%c0_55, %c0_56, %c0_57], %71 {strides = array<i32>} : memref<10x8x384xbf16, #tpu.memory_space<vmem>>, vector<1x8x384xbf16>,
    } else {
    }
    %c0_i32_11 = arith.constant 0 : i32
    %24 = arith.cmpi sgt, %arg1, %c0_i32_11 : i32
    %25 = arith.extui %24 : i1 to i32
    %c0_i32_12 = arith.constant 0 : i32
    %26 = arith.cmpi ne, %25, %c0_i32_12 : i32
    scf.if %26 {
      %c0_54 = arith.constant 0 : index
      %c0_55 = arith.constant 0 : index
      %c0_56 = arith.constant 0 : index
      %c0_57 = arith.constant 0 : index
      %71 = vector.load %arg3[%c0_54, %c0_55, %c0_56, %c0_57] : memref<1x1x8x128xbf16, #tpu.memory_space<vmem>>, vector<1x1x8x128xbf16>
      %72 = vector.shape_cast %71 : vector<1x1x8x128xbf16> to vector<1x8x128xbf16>
      %73 = arith.extf %72 : vector<1x8x128xbf16> to vector<1x8x128xf32>
      %74 = vector.shape_cast %0 : vector<1x128xf32> to vector<1x1x128xf32>
      %75 = vector.broadcast %74 : vector<1x1x128xf32> to vector<1x8x128xf32>
      %76 = arith.mulf %73, %75 : vector<1x8x128xf32>
      %77 = vector.shape_cast %1 : vector<1x128xf32> to vector<1x1x128xf32>
      %78 = vector.broadcast %77 : vector<1x1x128xf32> to vector<1x8x128xf32>
      %79 = arith.addf %76, %78 : vector<1x8x128xf32>
      %cst_58 = arith.constant 0.000000e+00 : f32
      %80 = vector.broadcast %cst_58 : f32 to vector<1x8x128xf32>
      %81 = arith.maximumf %79, %80 : vector<1x8x128xf32>
      %82 = arith.truncf %81 : vector<1x8x128xf32> to vector<1x8x128xbf16>
      %cst_59 = arith.constant 0.000000e+00 : bf16
      %83 = vector.broadcast %cst_59 : bf16 to vector<1x1x128xbf16>
      %84 = vector.extract_strided_slice %82 {offsets = [0, 0, 0], sizes = [1, 7, 128], strides = [1, 1, 1]} : vector<1x8x128xbf16> to vector<1x7x128xbf16>
      %85 = tpu.concatenate %83, %84 in 1 : vector<1x1x128xbf16>, vector<1x7x128xbf16> -> vector<1x8x128xbf16>
      %86 = vector.extract_strided_slice %82 {offsets = [0, 1, 0], sizes = [1, 7, 128], strides = [1, 1, 1]} : vector<1x8x128xbf16> to vector<1x7x128xbf16>
      %87 = tpu.concatenate %86, %83 in 1 : vector<1x7x128xbf16>, vector<1x1x128xbf16> -> vector<1x8x128xbf16>
      %88 = tpu.concatenate %85, %82, %87 in 2 : vector<1x8x128xbf16>, vector<1x8x128xbf16>, vector<1x8x128xbf16> -> vector<1x8x384xbf16>
      %c0_60 = arith.constant 0 : index
      %c0_61 = arith.constant 0 : index
      %c0_62 = arith.constant 0 : index
      %89 = vector.load %arg11[%c0_60, %c0_61, %c0_62] : memref<10x8x384xbf16, #tpu.memory_space<vmem>>, vector<1x8x384xbf16>
      tpu.vector_store %arg11[%c0_60, %c0_61, %c0_62], %88 {strides = array<i32>} : memref<10x8x384xbf16, #tpu.memory_space<vmem>>, vector<1x8x384xbf16>,
    } else {
    }
    %c0_i32_13 = arith.constant 0 : i32
    %27 = arith.cmpi eq, %arg1, %c0_i32_13 : i32
    %28 = arith.extui %27 : i1 to i32
    %c0_i32_14 = arith.constant 0 : i32
    %29 = arith.cmpi ne, %28, %c0_i32_14 : i32
    scf.if %29 {
      %cst_54 = arith.constant 0.000000e+00 : bf16
      %71 = vector.broadcast %cst_54 : bf16 to vector<1x8x384xbf16>
      %c9 = arith.constant 9 : index
      %c0_55 = arith.constant 0 : index
      %c0_56 = arith.constant 0 : index
      %72 = vector.load %arg11[%c9, %c0_55, %c0_56] : memref<10x8x384xbf16, #tpu.memory_space<vmem>>, vector<1x8x384xbf16>
      tpu.vector_store %arg11[%c9, %c0_55, %c0_56], %71 {strides = array<i32>} : memref<10x8x384xbf16, #tpu.memory_space<vmem>>, vector<1x8x384xbf16>,
    } else {
    }
    %c0_i32_15 = arith.constant 0 : i32
    %30 = arith.cmpi slt, %arg1, %c0_i32_15 : i32
    %31 = arith.extui %30 : i1 to i32
    %c0_i32_16 = arith.constant 0 : i32
    %32 = arith.cmpi ne, %31, %c0_i32_16 : i32
    scf.if %32 {
      %c0_54 = arith.constant 0 : index
      %c0_55 = arith.constant 0 : index
      %c0_56 = arith.constant 0 : index
      %c0_57 = arith.constant 0 : index
      %71 = vector.load %arg4[%c0_54, %c0_55, %c0_56, %c0_57] : memref<1x1x8x128xbf16, #tpu.memory_space<vmem>>, vector<1x1x8x128xbf16>
      %72 = vector.shape_cast %71 : vector<1x1x8x128xbf16> to vector<1x8x128xbf16>
      %73 = arith.extf %72 : vector<1x8x128xbf16> to vector<1x8x128xf32>
      %74 = vector.shape_cast %0 : vector<1x128xf32> to vector<1x1x128xf32>
      %75 = vector.broadcast %74 : vector<1x1x128xf32> to vector<1x8x128xf32>
      %76 = arith.mulf %73, %75 : vector<1x8x128xf32>
      %77 = vector.shape_cast %1 : vector<1x128xf32> to vector<1x1x128xf32>
      %78 = vector.broadcast %77 : vector<1x1x128xf32> to vector<1x8x128xf32>
      %79 = arith.addf %76, %78 : vector<1x8x128xf32>
      %cst_58 = arith.constant 0.000000e+00 : f32
      %80 = vector.broadcast %cst_58 : f32 to vector<1x8x128xf32>
      %81 = arith.maximumf %79, %80 : vector<1x8x128xf32>
      %82 = arith.truncf %81 : vector<1x8x128xf32> to vector<1x8x128xbf16>
      %cst_59 = arith.constant 0.000000e+00 : bf16
      %83 = vector.broadcast %cst_59 : bf16 to vector<1x1x128xbf16>
      %84 = vector.extract_strided_slice %82 {offsets = [0, 0, 0], sizes = [1, 7, 128], strides = [1, 1, 1]} : vector<1x8x128xbf16> to vector<1x7x128xbf16>
      %85 = tpu.concatenate %83, %84 in 1 : vector<1x1x128xbf16>, vector<1x7x128xbf16> -> vector<1x8x128xbf16>
      %86 = vector.extract_strided_slice %82 {offsets = [0, 1, 0], sizes = [1, 7, 128], strides = [1, 1, 1]} : vector<1x8x128xbf16> to vector<1x7x128xbf16>
      %87 = tpu.concatenate %86, %83 in 1 : vector<1x7x128xbf16>, vector<1x1x128xbf16> -> vector<1x8x128xbf16>
      %88 = tpu.concatenate %85, %82, %87 in 2 : vector<1x8x128xbf16>, vector<1x8x128xbf16>, vector<1x8x128xbf16> -> vector<1x8x384xbf16>
      %c9 = arith.constant 9 : index
      %c0_60 = arith.constant 0 : index
      %c0_61 = arith.constant 0 : index
      %89 = vector.load %arg11[%c9, %c0_60, %c0_61] : memref<10x8x384xbf16, #tpu.memory_space<vmem>>, vector<1x8x384xbf16>
      tpu.vector_store %arg11[%c9, %c0_60, %c0_61], %88 {strides = array<i32>} : memref<10x8x384xbf16, #tpu.memory_space<vmem>>, vector<1x8x384xbf16>,
    } else {
    }
    %cst_17 = arith.constant 0.000000e+00 : f32
    %33 = vector.broadcast %cst_17 : f32 to vector<1x128xf32>
    %cst_18 = arith.constant 0.000000e+00 : f32
    %34 = vector.broadcast %cst_18 : f32 to vector<1x128xf32>
    %cst_19 = arith.constant 0.000000e+00 : f32
    %35 = vector.broadcast %cst_19 : f32 to vector<64x128xf32>
    %c0_20 = arith.constant 0 : index
    %c0_21 = arith.constant 0 : index
    %c0_22 = arith.constant 0 : index
    %36 = vector.load %arg11[%c0_20, %c0_21, %c0_22] : memref<10x8x384xbf16, #tpu.memory_space<vmem>>, vector<8x8x384xbf16>
    %37 = vector.shape_cast %36 : vector<8x8x384xbf16> to vector<64x384xbf16>
    %c0_23 = arith.constant 0 : index
    %c0_24 = arith.constant 0 : index
    %c0_25 = arith.constant 0 : index
    %38 = vector.load %arg5[%c0_23, %c0_24, %c0_25] : memref<3x384x128xbf16, #tpu.memory_space<vmem>>, vector<1x384x128xbf16>
    %39 = vector.shape_cast %38 : vector<1x384x128xbf16> to vector<384x128xbf16>
    %cst_26 = arith.constant dense<0.000000e+00> : vector<64x128xf32>
    %40 = tpu.matmul %37, %39, %cst_26 {dimension_numbers = #tpu.dot_dimension_numbers<[1], [0], [0], [1], [0, 0, 1, 1], [], []>} : vector<64x384xbf16>, vector<384x128xbf16>, vector<64x128xf32> -> vector<64x128xf32>
    %41 = arith.addf %35, %40 : vector<64x128xf32>
    %c1_27 = arith.constant 1 : index
    %c0_28 = arith.constant 0 : index
    %c0_29 = arith.constant 0 : index
    %42 = vector.load %arg11[%c1_27, %c0_28, %c0_29] : memref<10x8x384xbf16, #tpu.memory_space<vmem>>, vector<8x8x384xbf16>
    %43 = vector.shape_cast %42 : vector<8x8x384xbf16> to vector<64x384xbf16>
    %c1_30 = arith.constant 1 : index
    %c0_31 = arith.constant 0 : index
    %c0_32 = arith.constant 0 : index
    %44 = vector.load %arg5[%c1_30, %c0_31, %c0_32] : memref<3x384x128xbf16, #tpu.memory_space<vmem>>, vector<1x384x128xbf16>
    %45 = vector.shape_cast %44 : vector<1x384x128xbf16> to vector<384x128xbf16>
    %cst_33 = arith.constant dense<0.000000e+00> : vector<64x128xf32>
    %46 = tpu.matmul %43, %45, %cst_33 {dimension_numbers = #tpu.dot_dimension_numbers<[1], [0], [0], [1], [0, 0, 1, 1], [], []>} : vector<64x384xbf16>, vector<384x128xbf16>, vector<64x128xf32> -> vector<64x128xf32>
    %47 = arith.addf %41, %46 : vector<64x128xf32>
    %c2 = arith.constant 2 : index
    %c0_34 = arith.constant 0 : index
    %c0_35 = arith.constant 0 : index
    %48 = vector.load %arg11[%c2, %c0_34, %c0_35] : memref<10x8x384xbf16, #tpu.memory_space<vmem>>, vector<8x8x384xbf16>
    %49 = vector.shape_cast %48 : vector<8x8x384xbf16> to vector<64x384xbf16>
    %c2_36 = arith.constant 2 : index
    %c0_37 = arith.constant 0 : index
    %c0_38 = arith.constant 0 : index
    %50 = vector.load %arg5[%c2_36, %c0_37, %c0_38] : memref<3x384x128xbf16, #tpu.memory_space<vmem>>, vector<1x384x128xbf16>
    %51 = vector.shape_cast %50 : vector<1x384x128xbf16> to vector<384x128xbf16>
    %cst_39 = arith.constant dense<0.000000e+00> : vector<64x128xf32>
    %52 = tpu.matmul %49, %51, %cst_39 {dimension_numbers = #tpu.dot_dimension_numbers<[1], [0], [0], [1], [0, 0, 1, 1], [], []>} : vector<64x384xbf16>, vector<384x128xbf16>, vector<64x128xf32> -> vector<64x128xf32>
    %53 = arith.addf %47, %52 : vector<64x128xf32>
    %54 = vector.shape_cast %53 : vector<64x128xf32> to vector<8x8x128xf32>
    %c0_40 = arith.constant 0 : index
    %c0_41 = arith.constant 0 : index
    %c0_42 = arith.constant 0 : index
    %c0_43 = arith.constant 0 : index
    %55 = vector.load %arg8[%c0_40, %c0_41, %c0_42, %c0_43] : memref<1x8x8x128xf32, #tpu.memory_space<vmem>>, vector<1x8x8x128xf32>
    %56 = vector.shape_cast %55 : vector<1x8x8x128xf32> to vector<8x8x128xf32>
    %57 = vector.shape_cast %54 : vector<8x8x128xf32> to vector<1x8x8x128xf32>
    tpu.vector_store %arg8[%c0_40, %c0_41, %c0_42, %c0_43], %57 {strides = array<i32>} : memref<1x8x8x128xf32, #tpu.memory_space<vmem>>, vector<1x8x8x128xf32>,
    %cst_44 = arith.constant dense<0.000000e+00> : vector<128xf32>
    %58 = vector.multi_reduction <add>, %53, %cst_44 [0] : vector<64x128xf32> to vector<128xf32>
    %59 = vector.shape_cast %58 : vector<128xf32> to vector<1x128xf32>
    %60 = arith.addf %33, %59 : vector<1x128xf32>
    %61 = arith.mulf %53, %53 : vector<64x128xf32>
    %cst_45 = arith.constant dense<0.000000e+00> : vector<128xf32>
    %62 = vector.multi_reduction <add>, %61, %cst_45 [0] : vector<64x128xf32> to vector<128xf32>
    %63 = vector.shape_cast %62 : vector<128xf32> to vector<1x128xf32>
    %64 = arith.addf %34, %63 : vector<1x128xf32>
    %c0_46 = arith.constant 0 : index
    %c0_47 = arith.constant 0 : index
    %c0_48 = arith.constant 0 : index
    %c0_49 = arith.constant 0 : index
    %65 = vector.load %arg9[%c0_46, %c0_47, %c0_48, %c0_49] : memref<1x1x1x128xf32, #tpu.memory_space<vmem>>, vector<1x1x1x128xf32>
    %66 = vector.shape_cast %65 : vector<1x1x1x128xf32> to vector<1x128xf32>
    %67 = vector.shape_cast %60 : vector<1x128xf32> to vector<1x1x1x128xf32>
    tpu.vector_store %arg9[%c0_46, %c0_47, %c0_48, %c0_49], %67 {strides = array<i32>} : memref<1x1x1x128xf32, #tpu.memory_space<vmem>>, vector<1x1x1x128xf32>,
    %c0_50 = arith.constant 0 : index
    %c0_51 = arith.constant 0 : index
    %c0_52 = arith.constant 0 : index
    %c0_53 = arith.constant 0 : index
    %68 = vector.load %arg10[%c0_50, %c0_51, %c0_52, %c0_53] : memref<1x1x1x128xf32, #tpu.memory_space<vmem>>, vector<1x1x1x128xf32>
    %69 = vector.shape_cast %68 : vector<1x1x1x128xf32> to vector<1x128xf32>
    %70 = vector.shape_cast %64 : vector<1x128xf32> to vector<1x1x1x128xf32>
    tpu.vector_store %arg10[%c0_50, %c0_51, %c0_52, %c0_53], %70 {strides = array<i32>} : memref<1x1x1x128xf32, #tpu.memory_space<vmem>>, vector<1x1x1x128xf32>,
    return
  }
  func.func @transform_0(%arg0: i32, %arg1: i32) -> (i32, i32, i32, i32) {
    %c0_i32 = arith.constant 0 : i32
    %c0_i32_0 = arith.constant 0 : i32
    %c0_i32_1 = arith.constant 0 : i32
    return %arg0, %arg1, %c0_i32, %c0_i32_0 : i32, i32, i32, i32
  }
  func.func @transform_1(%arg0: i32, %arg1: i32) -> (i32, i32, i32, i32) {
    %c8_i32 = arith.constant 8 : i32
    %0 = arith.muli %arg1, %c8_i32 : i32
    %c1_i32 = arith.constant 1 : i32
    %1 = arith.subi %0, %c1_i32 : i32
    %c0_i32 = arith.constant 0 : i32
    %2 = arith.maxsi %1, %c0_i32 : i32
    %c0_i32_0 = arith.constant 0 : i32
    %c0_i32_1 = arith.constant 0 : i32
    %c0_i32_2 = arith.constant 0 : i32
    return %arg0, %2, %c0_i32_0, %c0_i32_1 : i32, i32, i32, i32
  }
  func.func @transform_2(%arg0: i32, %arg1: i32) -> (i32, i32, i32, i32) {
    %c1_i32 = arith.constant 1 : i32
    %0 = arith.addi %arg1, %c1_i32 : i32
    %c8_i32 = arith.constant 8 : i32
    %1 = arith.muli %0, %c8_i32 : i32
    %c7_i32 = arith.constant 7 : i32
    %2 = arith.minsi %1, %c7_i32 : i32
    %c0_i32 = arith.constant 0 : i32
    %c0_i32_0 = arith.constant 0 : i32
    %c0_i32_1 = arith.constant 0 : i32
    return %arg0, %2, %c0_i32, %c0_i32_0 : i32, i32, i32, i32
  }
  func.func @transform_3(%arg0: i32, %arg1: i32) -> (i32, i32, i32) {
    %c0_i32 = arith.constant 0 : i32
    %c0_i32_0 = arith.constant 0 : i32
    %c0_i32_1 = arith.constant 0 : i32
    %c0_i32_2 = arith.constant 0 : i32
    return %c0_i32, %c0_i32_0, %c0_i32_1 : i32, i32, i32
  }
  func.func @transform_4(%arg0: i32, %arg1: i32) -> (i32, i32) {
    %c0_i32 = arith.constant 0 : i32
    %c0_i32_0 = arith.constant 0 : i32
    %c0_i32_1 = arith.constant 0 : i32
    return %c0_i32, %c0_i32_0 : i32, i32
  }
  func.func @transform_5(%arg0: i32, %arg1: i32) -> (i32, i32) {
    %c0_i32 = arith.constant 0 : i32
    %c0_i32_0 = arith.constant 0 : i32
    %c0_i32_1 = arith.constant 0 : i32
    return %c0_i32, %c0_i32_0 : i32, i32
  }
  func.func @transform_6(%arg0: i32, %arg1: i32) -> (i32, i32, i32, i32) {
    %c0_i32 = arith.constant 0 : i32
    %c0_i32_0 = arith.constant 0 : i32
    %c0_i32_1 = arith.constant 0 : i32
    return %arg0, %arg1, %c0_i32, %c0_i32_0 : i32, i32, i32, i32
  }
  func.func @transform_7(%arg0: i32, %arg1: i32) -> (i32, i32, i32, i32) {
    %c0_i32 = arith.constant 0 : i32
    %c0_i32_0 = arith.constant 0 : i32
    %c0_i32_1 = arith.constant 0 : i32
    return %arg0, %arg1, %c0_i32, %c0_i32_0 : i32, i32, i32, i32
  }
  func.func @transform_8(%arg0: i32, %arg1: i32) -> (i32, i32, i32, i32) {
    %c0_i32 = arith.constant 0 : i32
    %c0_i32_0 = arith.constant 0 : i32
    %c0_i32_1 = arith.constant 0 : i32
    return %arg0, %arg1, %c0_i32, %c0_i32_0 : i32, i32, i32, i32
  }
}

</mosaic_0001>

<bundles_post_ra>
// kernel: down_forward.5
= control target key start
LH: loop header
LB: loop body
LE: loop exit
PB: predicated region body
PF: predicated region fallthrough
CT: control target
= control target key end

     0   :  { %s428_s12 = smov 0   ;;  %s430_s13 = smov 0   ;;  %s467_s0 = inlined_call_operand.vmem [shape: f32[2,8,8,128], index: 0, kind: input, shape index: {}, may-alias: {0,3}]   ;;  %s468_s1 = inlined_call_operand.vmem [shape: f32[1,128], index: 1, kind: input, shape index: {}]   ;;  %s469_s2 = inlined_call_operand.vmem [shape: f32[1,128], index: 2, kind: input, shape index: {}]   ;;  %s470_s3 = inlined_call_operand.vmem [shape: f32[2,8,8,128], index: 3, kind: output, shape index: {}, may-alias: {0,3}]  }
   0x1   :  { %s432_s14 = smov 0  }
   0x2 LB: > { %s25_s15 = sadd.s32 1, %s402_s13  ;;  %p349_p0 = scmp.ge.s32.totalorder %s406_s14, 1  ;;  %s406_s14 = sphi %s432_s14, %s13_s14   ;;  %s402_s13 = sphi %s430_s13, %s472_s13   ;;  %s398_s12 = sphi %s428_s12, %s471_s12  }
   0x3   : > { %p27_p1 = scmp.ge.s32.totalorder %s25_s15, 2  ;;  %p158_p2 = scmp.lt.s32.totalorder %s406_s14, 3 }
   0x5   : > { %s474_s15 = smov (%p27_p1, %s25_s15), 0  ;;  %p159_p3 = pnand %p349_p0, %p158_p2 }
   0x6   : > { %p191_p4 = scmp.lt.s32.totalorder (!%p159_p3), %s398_s12, 1 }
   0x7   : > { %162 = sbr.rel (%p159_p3) target bundleno = 30 (0x1e), region = 32 }
   0xc   : > { %s476_s12 = smov (!%p191_p4, %s398_s12), 1  ;;  %v382_v0 = vld [vmem:[%s468_s1] ss:$0 sm:$0xff] }
   0xd   : > { %s356_s18 = sshll.u32 %s476_s12, 6  ;;  %v383_v1 = vld [vmem:[%s469_s2] ss:$0 sm:$0xff] }
   0xe   : > { %s198_s21 = scalar_lea.vmem %s467_s0, %s356_s18  ;;  %s208_s26 = scalar_lea.vmem %s470_s3, %s356_s18 }
   0xf   : > { %v210_v2 = vld [vmem:[%s198_s21] sm:$0xff]  ;;  %v211_v3 = vld [vmem:[%s198_s21 + $0x8] sm:$0xff]  ;;  %v212_v4 = vld [vmem:[%s198_s21 + $0x10] sm:$0xff] }
  0x10   : > { %v213_v5 = vld [vmem:[%s198_s21 + $0x18] sm:$0xff]  ;;  %v214_v6 = vld [vmem:[%s198_s21 + $0x20] sm:$0xff]  ;;  %v215_v7 = vld [vmem:[%s198_s21 + $0x28] sm:$0xff]  ;;  %v222_v8 = vmul.f32 %v382_v0, %v210_v2  ;;  %v223_v9 = vmul.f32 %v382_v0, %v211_v3  ;;  %v224_v10 = vmul.f32 %v382_v0, %v212_v4 }
  0x11   : > { %v216_v11 = vld [vmem:[%s198_s21 + $0x30] sm:$0xff]  ;;  %v217_v12 = vld [vmem:[%s198_s21 + $0x38] sm:$0xff]  ;;  %v225_v13 = vmul.f32 %v382_v0, %v213_v5  ;;  %v226_v14 = vmul.f32 %v382_v0, %v214_v6  ;;  %v227_v15 = vmul.f32 %v382_v0, %v215_v7 }
  0x12   : > { %v228_v16 = vmul.f32 %v382_v0, %v216_v11  ;;  %v229_v17 = vmul.f32 %v382_v0, %v217_v12  ;;  %v234_v18 = vadd.f32 %v383_v1, %v222_v8  ;;  %v235_v19 = vadd.f32 %v383_v1, %v223_v9 }
  0x13   : > { %v236_v20 = vadd.f32 %v383_v1, %v224_v10  ;;  %v237_v21 = vadd.f32 %v383_v1, %v225_v13  ;;  %v238_v22 = vadd.f32 %v383_v1, %v226_v14  ;;  %v239_v23 = vadd.f32 %v383_v1, %v227_v15 }
  0x14   : > { %v240_v24 = vadd.f32 %v383_v1, %v228_v16  ;;  %v242_v25 = vmax.f32 %v234_v18, 0.0  ;;  %v243_v26 = vmax.f32 %v235_v19, 0.0  ;;  %v241_v27 = vadd.f32 %v383_v1, %v229_v17 }
  0x15   : > { %v244_v28 = vmax.f32 %v236_v20, 0.0  ;;  %v245_v29 = vmax.f32 %v237_v21, 0.0  ;;  %v246_v30 = vmax.f32 %v238_v22, 0.0  ;;  %v247_v31 = vmax.f32 %v239_v23, 0.0 }
  0x16   : > { %250 = vst [vmem:[%s208_s26] sm:$0xff] %v242_v25  ;;  %v248_v32 = vmax.f32 %v240_v24, 0.0  ;;  %v249_v33 = vmax.f32 %v241_v27, 0.0 }
  0x17   : > { %251 = vst [vmem:[%s208_s26 + $0x8] sm:$0xff] %v243_v26 }
  0x18   : > { %252 = vst [vmem:[%s208_s26 + $0x10] sm:$0xff] %v244_v28 }
  0x19   : > { %253 = vst [vmem:[%s208_s26 + $0x18] sm:$0xff] %v245_v29 }
  0x1a   : > { %254 = vst [vmem:[%s208_s26 + $0x20] sm:$0xff] %v246_v30 }
  0x1b   : > { %255 = vst [vmem:[%s208_s26 + $0x28] sm:$0xff] %v247_v31 }
  0x1c   : > { %256 = vst [vmem:[%s208_s26 + $0x30] sm:$0xff] %v248_v32 }
  0x1d   : > { %257 = vst [vmem:[%s208_s26 + $0x38] sm:$0xff] %v249_v33 }
  0x1e PF: > { %s13_s14 = sadd.s32 1, %s406_s14   ;;  %s471_s12 = smov %s402_s13 }
  0x1f   : > { %p10_p5 = scmp.ge.s32.totalorder %s13_s14, 4   ;;  %s472_s13 = smov %s474_s15 }
  0x21   :  { %12 = sbr.rel (!%p10_p5) target bundleno = 2 (0x2), region = 62 }

// kernel: down_forward.4
= control target key start
LH: loop header
LB: loop body
LE: loop exit
PB: predicated region body
PF: predicated region fallthrough
CT: control target
= control target key end

     0   :  { %s2968_s26 = smov 0   ;;  %s2970_s2 = smov 0   ;;  %s3438_s0 = inlined_call_operand.vmem [shape: bf16[2,8,8,128], index: 0, kind: input, shape index: {}, may-alias: {0,1,2}]   ;;  %s3439_s1 = inlined_call_operand.vmem [shape: bf16[2,8,8,128], index: 1, kind: input, shape index: {}, may-alias: {0,1,2}]   ;;  %s3440_s2 = inlined_call_operand.vmem [shape: bf16[2,8,8,128], index: 2, kind: input, shape index: {}, may-alias: {0,1,2}]   ;;  %s3441_s3 = inlined_call_operand.vmem [shape: bf16[3,384,128], index: 3, kind: input, shape index: {}]   ;;  %s3442_s4 = inlined_call_operand.vmem [shape: f32[1,128], index: 4, kind: input, shape index: {}]   ;;  %s3443_s5 = inlined_call_operand.vmem [shape: f32[1,128], index: 5, kind: input, shape index: {}]   ;;  %s3444_s6 = inlined_call_operand.vmem [shape: f32[2,8,8,128], index: 6, kind: output, shape index: {0}]   ;;  %s3445_s7 = inlined_call_operand.vmem [shape: f32[2,1,1,128], index: 7, kind: output, shape index: {1}]   ;;  %s3446_s8 = inlined_call_operand.vmem [shape: f32[2,1,1,128], index: 8, kind: output, shape index: {2}]  }
   0x1   :  { %s2972_s27 = smov 0  }
   0x2 LB: > { %s31_s28 = sadd.s32 1, %s2916_s2  ;;  %p2184_p0 = scmp.ge.s32.totalorder %s2920_s27, 1  ;;  %s2920_s27 = sphi %s2972_s27, %s19_s27   ;;  %s2916_s2 = sphi %s2970_s2, %s3452_s2   ;;  %s2912_s26 = sphi %s2968_s26, %s3451_s26  }
   0x3   : > { %p33_p1 = scmp.ge.s32.totalorder %s31_s28, 2  ;;  %p354_p2 = scmp.lt.s32.totalorder %s2920_s27, 3 }
   0x5   : > { %s3454_s28 = smov (%p33_p1, %s31_s28), 0  ;;  %p355_p3 = pnand %p2184_p0, %p354_p2 }
   0x6   : > { %p433_p4 = scmp.lt.s32.totalorder (!%p355_p3), %s2912_s26, 1 }
   0x7   : > { %358 = sbr.rel (%p355_p3) target bundleno = 354 (0x162), region = 44 }
   0xc   : > { %v2783_v0 = vld [vmem:[%s3441_s3 + $0xf8] sm:$0xff]  ;;  %v2782_v3 = vld [vmem:[%s3441_s3 + $0xf0] sm:$0xff]  ;;  %s3456_s26 = smov (!%p433_p4, %s2912_s26), 1  ;;  %v2781_v6 = vld [vmem:[%s3441_s3 + $0xe8] sm:$0xff]  ;;  %v2922_v14 = vmov 0   ;;  %vm641_vm0 = vcmask 1040384  }
   0xd   : > { %v2799_v1 = vld [vmem:[%s3441_s3 + $0x178] sm:$0xff]  ;;  %1190 = vmatpush.bf16.msra.mxu0 %v2783_v0  ;;  %2855 = vmatpush.bf16.msra.mxu1 %v2783_v0  ;;  %v2798_v4 = vld [vmem:[%s3441_s3 + $0x170] sm:$0xff]  ;;  %s2723_s19 = sshll.u32 %s3456_s26, 5  ;;  %v2797_v7 = vld [vmem:[%s3441_s3 + $0x168] sm:$0xff]  ;;  %772 = vst [vmem:[#allocation2] sm:$0xff] %v2922_v14  ;;  %vm676_vm2 = vcmask 1043456   ;;  %s489_s25 = scalar_lea.vmem %s3445_s7, %s3456_s26 }
   0xe   : > { %v2747_v2 = vld [vmem:[%s3441_s3 + $0x38] sm:$0xff]  ;;  %1248 = vmatpush.bf16.msra.mxu2 %v2799_v1  ;;  %v2746_v5 = vld [vmem:[%s3441_s3 + $0x30] sm:$0xff]  ;;  %s440_s22 = scalar_lea.vmem %s3438_s0, %s2723_s19  ;;  %v2745_v8 = vld [vmem:[%s3441_s3 + $0x28] sm:$0xff]  ;;  %773 = vst [vmem:[#allocation2 + $0x8] sm:$0xf] %v2922_v14  ;;  %s2727_s19 = sshll.u32 %s3456_s26, 6 }
   0xf   : > { %1485 = vmatpush.bf16.msra.mxu3 %v2747_v2  ;;  %v2837_v9 = vld [vmem:[%s440_s22] sm:$0xff]   ;;  %v2853_v16 = vld [vmem:[%s440_s22 + $0x10] sm:$0xff]   ;;  %v2852_v17 = vld [vmem:[%s440_s22 + $0x8] sm:$0xff]   ;;  %814 = vst [vmem:[#allocation2 + $0x6c] sm:$0xff] %v2922_v14  ;;  %vm642_vm1 = vsmask.f32 256  ;;  %s495_s30 = scalar_lea.vmem %s3446_s8, %s3456_s26 }
  0x10   : > { %v2838_v10 = vunpack.c.l.bf16 %v2837_v9  ;;  %v2839_v11 = vunpack.c.h.bf16 %v2837_v9  ;;  %v2896_v12 = vld [vmem:[%s3442_s4] ss:$0 sm:$0xff]  ;;  %v2846_v22 = vunpack.c.l.bf16 %v2853_v16  ;;  %v2847_v23 = vunpack.c.h.bf16 %v2853_v16  ;;  %v2854_v24 = vld [vmem:[%s440_s22 + $0x18] sm:$0xff]   ;;  %815 = vst [vmem:[#allocation2 + $0x74] sm:$0xf] %v2922_v14  ;;  %v2778_v51 = vld [vmem:[%s3441_s3 + $0xd0] sm:$0xff]  ;;  %s3394_s22 = scalar_lea.vmem %s3444_s6, %s2727_s19 }
  0x11   : > { %1191 = vmatpush.bf16.msra.mxu0 %v2782_v3  ;;  %2856 = vmatpush.bf16.msra.mxu1 %v2782_v3  ;;  %v2897_v13 = vld [vmem:[%s3443_s5] ss:$0 sm:$0xff]  ;;  %v2842_v25 = vunpack.c.l.bf16 %v2852_v17  ;;  %v2843_v26 = vunpack.c.h.bf16 %v2852_v17  ;;  %v2850_v27 = vunpack.c.l.bf16 %v2854_v24  ;;  %v2851_v28 = vunpack.c.h.bf16 %v2854_v24  ;;  %v2779_v33 = vld [vmem:[%s3441_s3 + $0xd8] sm:$0xff]  ;;  %v2794_v56 = vld [vmem:[%s3441_s3 + $0x150] sm:$0xff] }
  0x12   : > { %1249 = vmatpush.bf16.msra.mxu2 %v2798_v4  ;;  %v2780_v15 = vld [vmem:[%s3441_s3 + $0xe0] sm:$0xff]  ;;  %v518_v20 = vmul.f32 %v2896_v12, %v2838_v10  ;;  %v519_v21 = vmul.f32 %v2896_v12, %v2839_v11  ;;  %v522_v31 = vmul.f32 %v2896_v12, %v2846_v22  ;;  %v523_v32 = vmul.f32 %v2896_v12, %v2847_v23  ;;  %v2795_v37 = vld [vmem:[%s3441_s3 + $0x158] sm:$0xff]  ;;  %v2742_v57 = vld [vmem:[%s3441_s3 + $0x10] sm:$0xff] }
  0x13   : > { %1486 = vmatpush.bf16.msra.mxu3 %v2746_v5  ;;  %v2796_v18 = vld [vmem:[%s3441_s3 + $0x160] sm:$0xff]  ;;  %v520_v34 = vmul.f32 %v2896_v12, %v2842_v25  ;;  %v521_v35 = vmul.f32 %v2896_v12, %v2843_v26  ;;  %v524_v36 = vmul.f32 %v2896_v12, %v2850_v27  ;;  %v2743_v38 = vld [vmem:[%s3441_s3 + $0x18] sm:$0xff]  ;;  %vm677_vm3 = vsmask.f32 3328  ;;  %v2793_v11 = vld [vmem:[%s3441_s3 + $0x148] sm:$0xff] }
  0x14   : > { %v2744_v19 = vld [vmem:[%s3441_s3 + $0x20] sm:$0xff]  ;;  %v529_v29 = vadd.f32 %v2897_v13, %v518_v20  ;;  %v530_v30 = vadd.f32 %v2897_v13, %v519_v21  ;;  %v533_v41 = vadd.f32 %v2897_v13, %v522_v31  ;;  %v534_v42 = vadd.f32 %v2897_v13, %v523_v32  ;;  %vm3099_vm4 = vmand %vm641_vm0, %vm642_vm1  ;;  %v2751_v23 = vld [vmem:[%s3441_s3 + $0x58] sm:$0xff] }
  0x15   : > { %1192 = vmatpush.bf16.msra.mxu0 %v2781_v6  ;;  %2857 = vmatpush.bf16.msra.mxu1 %v2781_v6  ;;  %v531_v43 = vadd.f32 %v2897_v13, %v520_v34  ;;  %v532_v44 = vadd.f32 %v2897_v13, %v521_v35  ;;  %v525_v45 = vmul.f32 %v2896_v12, %v2851_v28  ;;  %v2777_v6 = vld [vmem:[%s3441_s3 + $0xc8] sm:$0xff]  ;;  %v2776_v26 = vld [vmem:[%s3441_s3 + $0xc0] sm:$0xff]  ;;  %vm3112_vm5 = vmand %vm676_vm2, %vm677_vm3 }
  0x16   : > { %1250 = vmatpush.bf16.msra.mxu2 %v2797_v7  ;;  %v537_v39 = vmax.f32 %v529_v29, 0.0  ;;  %v538_v40 = vmax.f32 %v530_v30, 0.0  ;;  %v535_v46 = vadd.f32 %v2897_v13, %v524_v36  ;;  %v541_v49 = vmax.f32 %v533_v41, 0.0  ;;  %v2741_v12 = vld [vmem:[%s3441_s3 + $0x8] sm:$0xff]  ;;  %v2792_v32 = vld [vmem:[%s3441_s3 + $0x140] sm:$0xff] }
  0x17   : > { %1487 = vmatpush.bf16.msra.mxu3 %v2745_v8  ;;  %v542_v50 = vmax.f32 %v534_v42, 0.0  ;;  %v539_v52 = vmax.f32 %v531_v43, 0.0  ;;  %v540_v53 = vmax.f32 %v532_v44, 0.0  ;;  %v536_v54 = vadd.f32 %v2897_v13, %v525_v45  ;;  %v2755_v42 = vld [vmem:[%s3441_s3 + $0x78] sm:$0xff]  ;;  %v2784_v31 = vld [vmem:[%s3441_s3 + $0x100] sm:$0xff] }
  0x18   : > { %v545_v47 = vpack.c.bf16 %v537_v39, %v537_v39  ;;  %v546_v48 = vpack.c.bf16 %v538_v40, %v538_v40  ;;  %v543_v55 = vmax.f32 %v535_v46, 0.0  ;;  %v549_v60 = vpack.c.bf16 %v541_v49, %v541_v49  ;;  %v2791_v40 = vld [vmem:[%s3441_s3 + $0x138] sm:$0xff] }
  0x19   : > { %1193 = vmatpush.bf16.msra.mxu0 %v2780_v15  ;;  %2858 = vmatpush.bf16.msra.mxu1 %v2780_v15  ;;  %v550_v61 = vpack.c.bf16 %v542_v50, %v542_v50  ;;  %v547_v62 = vpack.c.bf16 %v539_v52, %v539_v52  ;;  %v548_v63 = vpack.c.bf16 %v540_v53, %v540_v53  ;;  %v544_v0 = vmax.f32 %v536_v54, 0.0 }
  0x1a   : > { %1251 = vmatpush.bf16.msra.mxu2 %v2796_v18  ;;  %v3052_v58 = vunpack.c.l.b16 %v545_v47  ;;  %v3054_v59 = vunpack.c.l.b16 %v546_v48  ;;  %v551_v1 = vpack.c.bf16 %v543_v55, %v543_v55  ;;  %v3060_v4 = vunpack.c.l.b16 %v549_v60  ;;  %v2819_v47 = vld [vmem:[%s3441_s3 + $0x1b8] sm:$0xff] }
  0x1b   : > { %1488 = vmatpush.bf16.msra.mxu3 %v2744_v19  ;;  %v3062_v5 = vunpack.c.l.b16 %v550_v61  ;;  %v3067_v7 = vunpack.c.l.b16 %v547_v62  ;;  %v3069_v8 = vunpack.c.l.b16 %v548_v63  ;;  %v3071_v9 = vpack.c.bf16 %v544_v0, %v544_v0  ;;  %v2790_v63 = vld [vmem:[%s3441_s3 + $0x130] sm:$0xff] }
  0x1c   : > { %v569_v2 = vpack.c.b16 %v3052_v58, %v3052_v58  ;;  %v570_v3 = vpack.c.b16 %v3054_v59, %v3054_v59  ;;  %v3073_v10 = vunpack.c.l.b16 %v551_v1  ;;  %v3083_v17 = vpack.c.b16 %v3060_v4, %v3060_v4  ;;  %v2754_v0 = vld [vmem:[%s3441_s3 + $0x70] sm:$0xff] }
  0x1d   : > { %1194 = vmatpush.bf16.msra.mxu0 %v2779_v33  ;;  %2859 = vmatpush.bf16.msra.mxu1 %v2779_v33  ;;  %v3087_v18 = vpack.c.b16 %v3062_v5, %v3062_v5  ;;  %v3091_v19 = vpack.c.b16 %v3067_v7, %v3067_v7  ;;  %v3095_v20 = vpack.c.b16 %v3069_v8, %v3069_v8  ;;  %v2740_v33 = vld [vmem:[%s3441_s3] sm:$0xff] }
  0x1e   : > { %1252 = vmatpush.bf16.msra.mxu2 %v2795_v37  ;;  %v578_v13 = vshrl.u32 %v569_v2, 16  ;;  %v581_v14 = vshll.u32 %v569_v2, 16  ;;  %v585_v15 = vshrl.u32 %v570_v3, 16  ;;  %v588_v16 = vshll.u32 %v570_v3, 16  ;;  %v2818_v3 = vld [vmem:[%s3441_s3 + $0x1b0] sm:$0xff] }
  0x1f   : > { %1489 = vmatpush.bf16.msra.mxu3 %v2743_v38  ;;  %v606_v27 = vshrl.u32 %v3083_v17, 16  ;;  %v609_v28 = vshll.u32 %v3083_v17, 16  ;;  %v613_v29 = vshrl.u32 %v3087_v18, 16  ;;  %v616_v30 = vshll.u32 %v3087_v18, 16  ;;  %v2752_v17 = vld [vmem:[%s3441_s3 + $0x60] sm:$0xff]  ;;  %v2787_v18 = vld [vmem:[%s3441_s3 + $0x118] sm:$0xff] }
  0x20   : > { %v580_v21 = vrot.slane %v578_v13, 7  ;;  %v587_v22 = vrot.slane %v585_v15, 7  ;;  %v652_v24 = vrot.slane %v581_v14, 1  ;;  %v654_v25 = vrot.slane %v588_v16, 1 }
  0x21   : > { %1195 = vmatpush.bf16.msra.mxu0 %v2778_v51  ;;  %2860 = vmatpush.bf16.msra.mxu1 %v2778_v51  ;;  %v592_v37 = vshrl.u32 %v3091_v19, 16  ;;  %v608_v38 = vrot.slane %v606_v27, 7  ;;  %v615_v39 = vrot.slane %v613_v29, 7  ;;  %v595_v43 = vshll.u32 %v3091_v19, 16 }
  0x22   : > { %1253 = vmatpush.bf16.msra.mxu2 %v2794_v56  ;;  %v583_v34 = vor.u32 %v581_v14, %v580_v21  ;;  %v590_v35 = vor.u32 %v588_v16, %v587_v22  ;;  %v653_v36 = vor.u32 %v652_v24, %v578_v13  ;;  %v655_v41 = vor.u32 %v654_v25, %v585_v15  ;;  %v2827_v14 = vld [vmem:[%s3441_s3 + $0x1f8] sm:$0xff] }
  0x23   : > { %1490 = vmatpush.bf16.msra.mxu3 %v2742_v57  ;;  %v594_v48 = vrot.slane %v592_v37, 7  ;;  %v611_v51 = vor.u32 %v609_v28, %v608_v38  ;;  %v618_v52 = vor.u32 %v616_v30, %v615_v39  ;;  %v599_v56 = vshrl.u32 %v3095_v20, 16  ;;  %v2387_v39 = vld [vmem:[#allocation2] sm:$0xf] }
  0x24   : > { %v644_v44 = vsel %vm3099_vm4, 0, %v583_v34  ;;  %v645_v45 = vsel %vm3099_vm4, 0, %v590_v35  ;;  %v679_v46 = vsel %vm3112_vm5, %v653_v36, 0  ;;  %v680_v53 = vsel %vm3112_vm5, %v655_v41, 0 }
  0x25   : > { %1196 = vmatpush.bf16.msra.mxu0 %v2777_v6  ;;  %2861 = vmatpush.bf16.msra.mxu1 %v2777_v6  ;;  %v703_v49 = vunpack.c.l.b16 %v644_v44  ;;  %v705_v50 = vunpack.c.l.b16 %v645_v45  ;;  %v704_v54 = vunpack.c.l.b16 %v679_v46  ;;  %v597_v55 = vor.u32 %v595_v43, %v594_v48 }
  0x26   : > { %1254 = vmatpush.bf16.msra.mxu2 %v2793_v11  ;;  %v648_v61 = vsel %vm3099_vm4, 0, %v611_v51  ;;  %v649_v62 = vsel %vm3099_vm4, 0, %v618_v52  ;;  %v706_v2 = vunpack.c.l.b16 %v680_v53  ;;  %v601_v6 = vrot.slane %v599_v56, 7 }
  0x27   : > { %1491 = vmatpush.bf16.msra.mxu3 %v2741_v12  ;;  %v719_v57 = vpack.c.b16 %v3052_v58, %v703_v49  ;;  %v721_v60 = vpack.c.b16 %v3054_v59, %v705_v50  ;;  %v711_v1 = vunpack.c.l.b16 %v648_v61  ;;  %v713_v58 = vunpack.c.l.b16 %v649_v62 }
  0x28   : > { %v720_v59 = vpack.c.b16 %v704_v54, %v704_v54  ;;  %v602_v11 = vshll.u32 %v3095_v20, 16  ;;  %v646_v12 = vsel %vm3099_vm4, 0, %v597_v55  ;;  %v3171_v13 = vunpack.c.l.b16 %v3071_v9  ;;  %v2789_v20 = vld [vmem:[%s3441_s3 + $0x128] sm:$0xff] }
  0x29   : > { %1197 = vmatpush.bf16.msra.mxu0 %v2776_v26  ;;  %2862 = vmatpush.bf16.msra.mxu1 %v2776_v26  ;;  %752 = vst [vmem:[#allocation2 + $0xc] sm:$0xff] %v719_v57  ;;  %v727_v15 = vpack.c.b16 %v3060_v4, %v711_v1  ;;  %v729_v16 = vpack.c.b16 %v3062_v5, %v713_v58  ;;  %v707_v22 = vunpack.c.l.b16 %v646_v12  ;;  %v2753_v9 = vld [vmem:[%s3441_s3 + $0x68] sm:$0xff]  ;;  %v656_v26 = vrot.slane %v595_v43, 1 }
  0x2a   : > { %1255 = vmatpush.bf16.msra.mxu2 %v2792_v32  ;;  %754 = vst [vmem:[#allocation2 + $0x18] sm:$0xff] %v721_v60  ;;  %v722_v21 = vpack.c.b16 %v706_v2, %v706_v2  ;;  %v604_v24 = vor.u32 %v602_v11, %v601_v6  ;;  %v3186_v25 = vpack.c.b16 %v3073_v10, %v3073_v10  ;;  %v658_v32 = vrot.slane %v602_v11, 1 }
  0x2b   : > { %1492 = vmatpush.bf16.msra.mxu3 %v2740_v33  ;;  %753 = vst [vmem:[#allocation2 + $0x14] sm:$0xf] %v720_v59  ;;  %v3190_v4 = vpack.c.b16 %v3171_v13, %v3171_v13  ;;  %v723_v5 = vpack.c.b16 %v3067_v7, %v707_v22  ;;  %v2817_v33 = vld [vmem:[%s3441_s3 + $0x1a8] sm:$0xff]  ;;  %v660_v34 = vrot.slane %v609_v28, 1  ;;  %v2788_v28 = vld [vmem:[%s3441_s3 + $0x120] sm:$0xff]  ;;  %v662_v19 = vrot.slane %v616_v30, 1 }
  0x2c   : > { %760 = vst [vmem:[#allocation2 + $0x3c] sm:$0xff] %v727_v15  ;;  %v647_v35 = vsel %vm3099_vm4, 0, %v604_v24  ;;  %v620_v36 = vshrl.u32 %v3186_v25, 16  ;;  %v623_v38 = vshll.u32 %v3186_v25, 16  ;;  %v659_v43 = vor.u32 %v658_v32, %v599_v56  ;;  %v2750_v24 = vld [vmem:[%s3441_s3 + $0x50] sm:$0xff]  ;;  %v2815_v32 = vld [vmem:[%s3441_s3 + $0x198] sm:$0xff] }
  0x2d   : > { %1219 = vmatpush.bf16.msrb.mxu1 %v2791_v40  ;;  %1514 = vmatpush.bf16.msrb.mxu0 %v2755_v42  ;;  %762 = vst [vmem:[#allocation2 + $0x48] sm:$0xff] %v729_v16  ;;  %v627_v7 = vshrl.u32 %v3190_v4, 16  ;;  %v709_v40 = vunpack.c.l.b16 %v647_v35  ;;  %v630_v41 = vshll.u32 %v3190_v4, 16  ;;  %v657_v42 = vor.u32 %v656_v26, %v592_v37  ;;  %v2825_v26 = vld [vmem:[%s3441_s3 + $0x1e8] sm:$0xff] }
  0x2e   : > { %1846 = vmatpush.bf16.msrb.mxu2 %v2819_v47  ;;  %755 = vst [vmem:[#allocation2 + $0x20] sm:$0xf] %v722_v21  ;;  %v622_v44 = vrot.slane %v620_v36, 7  ;;  %v661_v46 = vor.u32 %v660_v34, %v606_v27  ;;  %v682_v50 = vsel %vm3112_vm5, %v659_v43, 0  ;;  %v664_v22 = vrot.slane %v623_v38, 1  ;;  %v2749_v4 = vld [vmem:[%s3441_s3 + $0x48] sm:$0xff] }
  0x2f   : > { %1875 = vmatpush.bf16.msrb.mxu3 %v2827_v14  ;;  %756 = vst [vmem:[#allocation2 + $0x24] sm:$0xff] %v723_v5  ;;  %v629_v45 = vrot.slane %v627_v7, 7  ;;  %v725_v48 = vpack.c.b16 %v3069_v8, %v709_v40  ;;  %v681_v49 = vsel %vm3112_vm5, %v657_v42, 0  ;;  %v710_v55 = vunpack.c.l.b16 %v682_v50  ;;  %v2824_v42 = vld [vmem:[%s3441_s3 + $0x1e0] sm:$0xff]  ;;  %v2835_v50 = vld [vmem:[%s3441_s3 + $0x238] sm:$0xff] }
  0x30   : > { %v2243_v37 = vld [vmem:[#allocation2 + $0xc] sm:$0xf]  ;;  %v625_v27 = vor.u32 %v623_v38, %v622_v44  ;;  %v708_v30 = vunpack.c.l.b16 %v681_v49  ;;  %v663_v8 = vor.u32 %v662_v19, %v613_v29  ;;  %v683_v56 = vsel %vm3112_vm5, %v661_v46, 0  ;;  %v2748_v44 = vld [vmem:[%s3441_s3 + $0x40] sm:$0xff] }
  0x31   : > { %1220 = vmatpush.bf16.msrb.mxu1 %v2790_v63  ;;  %1515 = vmatpush.bf16.msrb.mxu0 %v2754_v0  ;;  %v2729_v47 = vld [vmem:[#allocation2 + $0x8] sm:$0xf0]  ;;  %v2765_v51 = vld [vmem:[#allocation2 + $0x14] sm:$0xf0]  ;;  %v632_v53 = vor.u32 %v630_v41, %v629_v45  ;;  %758 = vst [vmem:[#allocation2 + $0x30] sm:$0xff] %v725_v48  ;;  %v726_v29 = vpack.c.b16 %v710_v55, %v710_v55  ;;  %v712_v6 = vunpack.c.l.b16 %v683_v56 }
  0x32   : > { %1847 = vmatpush.bf16.msrb.mxu2 %v2818_v3  ;;  %v2388_v52 = vor.u32 %v2729_v47, %v2387_v39  ;;  %v2244_v54 = vor.u32 %v2765_v51, %v2243_v37  ;;  %v2251_v60 = vld [vmem:[#allocation2 + $0x14] sm:$0xf]  ;;  %v650_v61 = vsel %vm3099_vm4, 0, %v625_v27  ;;  %v724_v63 = vpack.c.b16 %v708_v30, %v708_v30  ;;  %v2399_v25 = vld [vmem:[#allocation2 + $0x18] sm:$0xf]  ;;  %v2813_v55 = vld [vmem:[%s3441_s3 + $0x188] sm:$0xff] }
  0x33   : > { %v2267_v57 = vld [vmem:[#allocation2 + $0x3c] sm:$0xf]  ;;  %v651_v62 = vsel %vm3099_vm4, 0, %v632_v53  ;;  %v715_v1 = vunpack.c.l.b16 %v650_v61  ;;  %v684_v2 = vsel %vm3112_vm5, %v663_v8, 0  ;;  %759 = vst [vmem:[#allocation2 + $0x38] sm:$0xf] %v726_v29  ;;  %v728_v16 = vpack.c.b16 %v712_v6, %v712_v6 }
  0x34   : > { %1493 = vmatmul.bf16.vlgmr.msra.gmra.mxu3 %v2388_v52  ;;  %1198 = vmatmul.bf16.vlgmr.msra.gmra.mxu0 %v2244_v54  ;;  %v2771_v0 = vld [vmem:[#allocation2 + $0x44] sm:$0xf0]  ;;  %v717_v58 = vunpack.c.l.b16 %v651_v62  ;;  %757 = vst [vmem:[#allocation2 + $0x2c] sm:$0xf] %v724_v63  ;;  %v714_v11 = vunpack.c.l.b16 %v684_v2  ;;  %v665_v5 = vor.u32 %v664_v22, %v620_v36  ;;  %v2763_v45 = vld [vmem:[%s3441_s3 + $0xb8] sm:$0xff]  ;;  %v2814_v27 = vld [vmem:[%s3441_s3 + $0x190] sm:$0xff] }
  0x35   : > { %1221 = vmatpush.bf16.msrb.mxu1 %v2789_v20  ;;  %1516 = vmatpush.bf16.msrb.mxu0 %v2753_v9  ;;  %v2268_v59 = vor.u32 %v2771_v0, %v2267_v57  ;;  %v2766_v3 = vld [vmem:[#allocation2 + $0x1c] sm:$0xf0]  ;;  %v731_v14 = vpack.c.b16 %v3073_v10, %v715_v1  ;;  %v2786_v20 = vld [vmem:[%s3441_s3 + $0x110] sm:$0xff]  ;;  %761 = vst [vmem:[#allocation2 + $0x44] sm:$0xf] %v728_v16  ;;  %v2785_v36 = vld [vmem:[%s3441_s3 + $0x108] sm:$0xff] }
  0x36   : > { %1848 = vmatpush.bf16.msrb.mxu2 %v2817_v33  ;;  %v2252_v12 = vor.u32 %v2766_v3, %v2251_v60  ;;  %v733_v15 = vpack.c.b16 %v3171_v13, %v717_v58  ;;  %v730_v21 = vpack.c.b16 %v714_v11, %v714_v11  ;;  %v2826_v9 = vld [vmem:[%s3441_s3 + $0x1f0] sm:$0xff]  ;;  %v2816_v10 = vld [vmem:[%s3441_s3 + $0x1a0] sm:$0xff]  ;;  %v666_v13 = vrot.slane %v630_v41, 1  ;;  %v2761_v53 = vld [vmem:[%s3441_s3 + $0xa8] sm:$0xff] }
  0x37   : > { %1208 = vmatmul.bf16.vlgmr.msra.gmra.mxu1 %v2268_v59  ;;  %764 = vst [vmem:[#allocation2 + $0x54] sm:$0xff] %v731_v14  ;;  %1876 = vmatpush.bf16.msrb.mxu3 %v2826_v9  ;;  %v685_v34 = vsel %vm3112_vm5, %v665_v5, 0  ;;  %v2732_v35 = vld [vmem:[#allocation2 + $0x20] sm:$0xf0]  ;;  %v2823_v30 = vld [vmem:[%s3441_s3 + $0x1d8] sm:$0xff]  ;;  %v2834_v54 = vld [vmem:[%s3441_s3 + $0x230] sm:$0xff] }
  0x38   : > { %1256 = vmatmul.bf16.vlgmr.msra.gmra.mxu2 %v2252_v12  ;;  %766 = vst [vmem:[#allocation2 + $0x60] sm:$0xff] %v733_v15  ;;  %v667_v33 = vor.u32 %v666_v13, %v627_v7  ;;  %v716_v39 = vunpack.c.l.b16 %v685_v34  ;;  %v2255_v40 = vld [vmem:[#allocation2 + $0x24] sm:$0xf]  ;;  %v2768_v41 = vld [vmem:[#allocation2 + $0x2c] sm:$0xf0]  ;;  %v2833_v56 = vld [vmem:[%s3441_s3 + $0x228] sm:$0xff] }
  0x39   : > { %1222 = vmatpush.bf16.msrb.mxu1 %v2788_v28  ;;  %1517 = vmatpush.bf16.msrb.mxu0 %v2752_v17  ;;  %763 = vst [vmem:[#allocation2 + $0x50] sm:$0xf] %v730_v21  ;;  %v2400_v28 = vor.u32 %v2732_v35, %v2399_v25  ;;  %v2256_v19 = vor.u32 %v2768_v41, %v2255_v40  ;;  %v2762_v17 = vld [vmem:[%s3441_s3 + $0xb0] sm:$0xff]  ;;  %v2735_v60 = vld [vmem:[#allocation2 + $0x38] sm:$0xf0]  ;;  %v2760_v63 = vld [vmem:[%s3441_s3 + $0xa0] sm:$0xff] }
  0x3a   : > { %1849 = vmatpush.bf16.msrb.mxu2 %v2816_v10  ;;  %v686_v38 = vsel %vm3112_vm5, %v667_v33, 0  ;;  %v732_v43 = vpack.c.b16 %v716_v39, %v716_v39  ;;  %v2769_v49 = vld [vmem:[#allocation2 + $0x34] sm:$0xf0]  ;;  %v2822_v8 = vld [vmem:[%s3441_s3 + $0x1d0] sm:$0xff]  ;;  %v2728_v61 = vld [vmem:[#allocation2 + $0x4] sm:$0xf] }
  0x3b   : > { %v718_v7 = vunpack.c.l.b16 %v686_v38  ;;  %1877 = vmatpush.bf16.msrb.mxu3 %v2825_v26  ;;  %v2263_v48 = vld [vmem:[#allocation2 + $0x2c] sm:$0xf]  ;;  %v2411_v57 = vld [vmem:[#allocation2 + $0x30] sm:$0xf]  ;;  %v2812_v0 = vld [vmem:[%s3441_s3 + $0x180] sm:$0xff] }
  0x3c   : > { %765 = vst [vmem:[#allocation2 + $0x5c] sm:$0xf] %v732_v43  ;;  %v2264_v52 = vor.u32 %v2769_v49, %v2263_v48  ;;  %v2389_v62 = vld [vmem:[#allocation2 + $0xc] sm:$0xf0]  ;;  %v2412_v1 = vor.u32 %v2735_v60, %v2411_v57  ;;  %v2821_v2 = vld [vmem:[%s3441_s3 + $0x1c8] sm:$0xff]  ;;  %v2820_v11 = vld [vmem:[%s3441_s3 + $0x1c0] sm:$0xff] }
  0x3d   : > { %1223 = vmatpush.bf16.msrb.mxu1 %v2787_v18  ;;  %1518 = vmatpush.bf16.msrb.mxu0 %v2751_v23  ;;  %v734_v46 = vpack.c.b16 %v718_v7, %v718_v7  ;;  %v2764_v58 = vld [vmem:[#allocation2 + $0x10] sm:$0xf]  ;;  %v2245_v18 = vld [vmem:[#allocation2 + $0x18] sm:$0xf0]  ;;  %v2392_v29 = vor.u32 %v2728_v61, %v2389_v62  ;;  %v2275_v59 = vld [vmem:[#allocation2 + $0x44] sm:$0xf] }
  0x3e   : > { %1850 = vmatpush.bf16.msrb.mxu2 %v2815_v32  ;;  %v2279_v37 = vld [vmem:[#allocation2 + $0x54] sm:$0xf]  ;;  %v2248_v23 = vor.u32 %v2764_v58, %v2245_v18  ;;  %v2759_v12 = vld [vmem:[%s3441_s3 + $0x98] sm:$0xff]  ;;  %v2832_v14 = vld [vmem:[%s3441_s3 + $0x220] sm:$0xff] }
  0x3f   : > { %v2774_v47 = vld [vmem:[#allocation2 + $0x5c] sm:$0xf0]  ;;  %767 = vst [vmem:[#allocation2 + $0x68] sm:$0xf] %v734_v46  ;;  %1878 = vmatpush.bf16.msrb.mxu3 %v2824_v42  ;;  %v2758_v15 = vld [vmem:[%s3441_s3 + $0x90] sm:$0xff]  ;;  %v2831_v16 = vld [vmem:[%s3441_s3 + $0x218] sm:$0xff] }
  0x40   : > { %v2280_v51 = vor.u32 %v2774_v47, %v2279_v37  ;;  %v2772_v3 = vld [vmem:[#allocation2 + $0x4c] sm:$0xf0]  ;;  %v2423_v21 = vld [vmem:[#allocation2 + $0x48] sm:$0xf]  ;;  %v2738_v22 = vld [vmem:[#allocation2 + $0x50] sm:$0xf0] }
  0x41   : > { %1224 = vmatpush.bf16.msrb.mxu1 %v2786_v20  ;;  %1519 = vmatpush.bf16.msrb.mxu0 %v2750_v24  ;;  %v2276_v6 = vor.u32 %v2772_v3, %v2275_v59  ;;  %v2731_v20 = vld [vmem:[#allocation2 + $0x1c] sm:$0xf]  ;;  %v2401_v9 = vld [vmem:[#allocation2 + $0x24] sm:$0xf0]  ;;  %v2424_v10 = vor.u32 %v2738_v22, %v2423_v21  ;;  %v2257_v24 = vld [vmem:[#allocation2 + $0x30] sm:$0xf0] }
  0x42   : > { %1851 = vmatpush.bf16.msrb.mxu2 %v2814_v27  ;;  %v2767_v13 = vld [vmem:[#allocation2 + $0x28] sm:$0xf]  ;;  %v2404_v5 = vor.u32 %v2731_v20, %v2401_v9  ;;  %v2830_v35 = vld [vmem:[%s3441_s3 + $0x210] sm:$0xff]  ;;  %v2800_v39 = vld [vmem:[#allocation2 + $0x1c] sm:$0xf] }
  0x43   : > { %1879 = vmatpush.bf16.msrb.mxu3 %v2823_v30  ;;  %v2287_v26 = vld [vmem:[#allocation2 + $0x5c] sm:$0xf]  ;;  %v2260_v33 = vor.u32 %v2767_v13, %v2257_v24  ;;  %v2757_v25 = vld [vmem:[%s3441_s3 + $0x88] sm:$0xff]  ;;  %v2734_v41 = vld [vmem:[#allocation2 + $0x34] sm:$0xf] }
  0x44   : > { %1498 = vmatmul.bf16.gmra.mxu3 %v2400_v28  ;;  %1203 = vmatmul.bf16.gmra.mxu0 %v2256_v19  ;;  %v2829_v38 = vld [vmem:[%s3441_s3 + $0x208] sm:$0xff]  ;;  %v2828_v7 = vld [vmem:[%s3441_s3 + $0x200] sm:$0xff]  ;;  %v2803_v37 = vld [vmem:[#allocation2 + $0x34] sm:$0xf] }
  0x45   : > { %1225 = vmatpush.bf16.msrb.mxu1 %v2785_v36  ;;  %1520 = vmatpush.bf16.msrb.mxu0 %v2749_v4  ;;  %v2756_v36 = vld [vmem:[%s3441_s3 + $0x80] sm:$0xff]  ;;  %v2581_v40 = vld [vmem:[#allocation2 + $0x24] sm:$0xf0]  ;;  %v2269_v28 = vld [vmem:[#allocation2 + $0x48] sm:$0xf0] }
  0x46   : > { %1852 = vmatpush.bf16.msrb.mxu2 %v2813_v55  ;;  %v2775_v32 = vld [vmem:[#allocation2 + $0x64] sm:$0xf0]  ;;  %v2413_v4 = vld [vmem:[#allocation2 + $0x3c] sm:$0xf0]  ;;  %v2584_v42 = vor.u32 %v2800_v39, %v2581_v40  ;;  %v2737_v48 = vld [vmem:[#allocation2 + $0x4c] sm:$0xf] }
  0x47   : > { %1213 = vmatmul.bf16.gmra.mxu1 %v2280_v51  ;;  %1880 = vmatpush.bf16.msrb.mxu3 %v2822_v8  ;;  %v2288_v34 = vor.u32 %v2775_v32, %v2287_v26  ;;  %v2770_v43 = vld [vmem:[#allocation2 + $0x40] sm:$0xf]  ;;  %v2425_v49 = vld [vmem:[#allocation2 + $0x54] sm:$0xf0]  ;;  %v2591_v27 = vld [vmem:[#allocation2 + $0x30] sm:$0xf] }
  0x48   : > { %1261 = vmatmul.bf16.gmra.mxu2 %v2264_v52  ;;  %v2272_v46 = vor.u32 %v2770_v43, %v2269_v28  ;;  %v2593_v47 = vld [vmem:[#allocation2 + $0x3c] sm:$0xf0]  ;;  %v2773_v51 = vld [vmem:[#allocation2 + $0x58] sm:$0xf]  ;;  %v2281_v52 = vld [vmem:[#allocation2 + $0x60] sm:$0xf0] }
  0x49   : > { %1226 = vmatpush.bf16.msrb.mxu1 %v2784_v31  ;;  %1521 = vmatpush.bf16.msrb.mxu0 %v2748_v44  ;;  %v2416_v31 = vor.u32 %v2734_v41, %v2413_v4  ;;  %v2579_v44 = vld [vmem:[#allocation2 + $0x18] sm:$0xf]  ;;  %v2284_v30 = vor.u32 %v2773_v51, %v2281_v52  ;;  %v2806_v55 = vld [vmem:[#allocation2 + $0x4c] sm:$0xf]  ;;  %v2395_v61 = vld [vmem:[#allocation2 + $0x8] sm:$0xf] }
  0x4a   : > { %1853 = vmatpush.bf16.msrb.mxu2 %v2812_v0  ;;  %v2605_v8 = vld [vmem:[#allocation2 + $0x54] sm:$0xf0]  ;;  %v2802_v57 = vld [vmem:[#allocation2 + $0x28] sm:$0xf0]  ;;  %v2730_v62 = vld [vmem:[#allocation2 + $0x10] sm:$0xf0] }
  0x4b   : > { %1881 = vmatpush.bf16.msrb.mxu3 %v2821_v2  ;;  %v2608_v60 = vor.u32 %v2806_v55, %v2605_v8  ;;  %v2603_v0 = vld [vmem:[#allocation2 + $0x48] sm:$0xf]  ;;  %v2396_v58 = vor.u32 %v2730_v62, %v2395_v61  ;;  %v2617_v2 = vld [vmem:[#allocation2 + $0x6c] sm:$0xf0]  ;;  %v2599_v59 = vld [vmem:[#allocation2 + $0x38] sm:$0xf] }
  0x4c   : > { %v2805_v3 = vld [vmem:[#allocation2 + $0x40] sm:$0xf0]  ;;  %v2611_v22 = vld [vmem:[#allocation2 + $0x50] sm:$0xf]  ;;  %v2808_v20 = vld [vmem:[#allocation2 + $0x58] sm:$0xf0] }
  0x4d   : > { %1543 = vmatpush.bf16.msra.mxu1 %v2763_v45  ;;  %1904 = vmatpush.bf16.msra.mxu0 %v2835_v50  ;;  %v2801_v45 = vld [vmem:[#allocation2 + $0x20] sm:$0xf0]  ;;  %v2419_v9 = vld [vmem:[#allocation2 + $0x38] sm:$0xf]  ;;  %v2612_v13 = vor.u32 %v2808_v20, %v2611_v22  ;;  %v2811_v26 = vld [vmem:[#allocation2 + $0x70] sm:$0xf0] }
  0x4e   : > { %2863 = vmatpush.bf16.msra.mxu2 %v2835_v50  ;;  %v2580_v19 = vor.u32 %v2801_v45, %v2579_v44  ;;  %v2596_v50 = vor.u32 %v2803_v37, %v2593_v47  ;;  %v2431_v40 = vld [vmem:[#allocation2 + $0x50] sm:$0xf]  ;;  %v2739_v41 = vld [vmem:[#allocation2 + $0x58] sm:$0xf0] }
  0x4f   : > { %1882 = vmatpush.bf16.msrb.mxu3 %v2820_v11  ;;  %v2733_v11 = vld [vmem:[#allocation2 + $0x28] sm:$0xf0] }
  0x51   : > { %1544 = vmatpush.bf16.msra.mxu1 %v2762_v17  ;;  %1905 = vmatpush.bf16.msra.mxu0 %v2834_v54  ;;  %v2428_v17 = vor.u32 %v2737_v48, %v2425_v49 }
  0x52   : > { %2864 = vmatpush.bf16.msra.mxu2 %v2834_v54 }
  0x54   : > { %1503 = vmatmul.bf16.gmra.mxu3 %v2412_v1  ;;  %1522 = vmatmul.bf16.vlgmr.msrb.gmra.mxu0 %v2392_v29  ;;  %v2807_v1 = vld [vmem:[#allocation2 + $0x50] sm:$0xf0]  ;;  %v2809_v29 = vld [vmem:[#allocation2 + $0x64] sm:$0xf] }
  0x55   : > { %1545 = vmatpush.bf16.msra.mxu1 %v2761_v53  ;;  %1906 = vmatpush.bf16.msra.mxu0 %v2833_v56  ;;  %v2804_v53 = vld [vmem:[#allocation2 + $0x38] sm:$0xf0]  ;;  %v2604_v18 = vor.u32 %v2807_v1, %v2603_v0 }
  0x56   : > { %2865 = vmatpush.bf16.msra.mxu2 %v2833_v56  ;;  %v2592_v54 = vor.u32 %v2804_v53, %v2591_v27  ;;  %v2587_v56 = vld [vmem:[#allocation2 + $0x20] sm:$0xf] }
  0x57   : > { %1227 = vmatmul.bf16.vlgmr.msrb.gmra.mxu1 %v2248_v23  ;;  %v2620_v23 = vor.u32 %v2809_v29, %v2617_v2 }
  0x58   : > { %1266 = vmatmul.bf16.gmra.mxu2 %v2276_v6  ;;  %v2407_v6 = vld [vmem:[#allocation2 + $0x20] sm:$0xf] }
  0x59   : > { %1546 = vmatpush.bf16.msra.mxu1 %v2760_v63  ;;  %1907 = vmatpush.bf16.msra.mxu0 %v2832_v14  ;;  %v2588_v63 = vor.u32 %v2802_v57, %v2587_v56 }
  0x5a   : > { %2866 = vmatpush.bf16.msra.mxu2 %v2832_v14  ;;  %v2615_v14 = vld [vmem:[#allocation2 + $0x60] sm:$0xf] }
  0x5d   : > { %1547 = vmatpush.bf16.msra.mxu1 %v2759_v12  ;;  %1908 = vmatpush.bf16.msra.mxu0 %v2831_v16  ;;  %v2600_v12 = vor.u32 %v2805_v3, %v2599_v59 }
  0x5e   : > { %2867 = vmatpush.bf16.msra.mxu2 %v2831_v16  ;;  %v2408_v16 = vor.u32 %v2733_v11, %v2407_v6 }
  0x61   : > { %1548 = vmatpush.bf16.msra.mxu1 %v2758_v15  ;;  %1909 = vmatpush.bf16.msra.mxu0 %v2830_v35  ;;  %v2810_v15 = vld [vmem:[#allocation2 + $0x68] sm:$0xf0] }
  0x62   : > { %2868 = vmatpush.bf16.msra.mxu2 %v2830_v35  ;;  %v2616_v21 = vor.u32 %v2810_v15, %v2615_v14 }
  0x64   : > { %1508 = vmatmul.bf16.gmra.mxu3 %v2424_v10  ;;  %1527 = vmatmul.bf16.gmra.mxu0 %v2404_v5  ;;  %v2736_v10 = vld [vmem:[#allocation2 + $0x40] sm:$0xf0]  ;;  %v2623_v5 = vld [vmem:[#allocation2 + $0x68] sm:$0xf] }
  0x65   : > { %1549 = vmatpush.bf16.msra.mxu1 %v2757_v25  ;;  %1910 = vmatpush.bf16.msra.mxu0 %v2829_v38  ;;  %v2420_v32 = vor.u32 %v2736_v10, %v2419_v9 }
  0x66   : > { %2869 = vmatpush.bf16.msra.mxu2 %v2829_v38 }
  0x67   : > { %1232 = vmatmul.bf16.gmra.mxu1 %v2260_v33 }
  0x68   : > { %1271 = vmatmul.bf16.gmra.mxu2 %v2288_v34  ;;  %v2624_v34 = vor.u32 %v2811_v26, %v2623_v5 }
  0x69   : > { %1550 = vmatpush.bf16.msra.mxu1 %v2756_v36  ;;  %1911 = vmatpush.bf16.msra.mxu0 %v2828_v7 }
  0x6a   : > { %2870 = vmatpush.bf16.msra.mxu2 %v2828_v7 }
  0x74   : > { %1883 = vmatmul.bf16.vlgmr.msrb.gmra.mxu3 %v2584_v42  ;;  %1532 = vmatmul.bf16.gmra.mxu0 %v2416_v31  ;;  %v2432_v42 = vor.u32 %v2739_v41, %v2431_v40 }
  0x77   : > { %1237 = vmatmul.bf16.gmra.mxu1 %v2272_v46 }
  0x78   : > { %1854 = vmatmul.bf16.vlgmr.msrb.gmra.mxu2 %v2580_v19 }
  0x84   : > { %1888 = vmatmul.bf16.gmra.mxu3 %v2596_v50  ;;  %1537 = vmatmul.bf16.gmra.mxu0 %v2428_v17 }
  0x87   : > { %1242 = vmatmul.bf16.gmra.mxu1 %v2284_v30 }
  0x88   : > { %1859 = vmatmul.bf16.gmra.mxu2 %v2592_v54 }
  0x94   : > { %1893 = vmatmul.bf16.gmra.mxu3 %v2608_v60  ;;  %1912 = vmatmul.bf16.vlgmr.msra.gmra.mxu0 %v2588_v63 }
  0x97   : > { %1551 = vmatmul.bf16.vlgmr.msra.gmra.mxu1 %v2396_v58 }
  0x98   : > { %1864 = vmatmul.bf16.gmra.mxu2 %v2604_v18 }
  0xa4   : > { %1898 = vmatmul.bf16.gmra.mxu3 %v2620_v23  ;;  %1917 = vmatmul.bf16.gmra.mxu0 %v2600_v12 }
  0xa7   : > { %1556 = vmatmul.bf16.gmra.mxu1 %v2408_v16 }
  0xa8   : > { %1869 = vmatmul.bf16.gmra.mxu2 %v2616_v21 }
  0xb1   : > { %v1199_v24 = vpop.f32.mrf.mxu0 }
  0xb4   : > { %v1209_v33 = vpop.f32.mrf.mxu1  ;;  %1922 = vmatmul.bf16.gmra.mxu0 %v2612_v13 }
  0xb7   : > { %v3353_v25 = vpop.f32.mrf.mxu3  ;;  %1561 = vmatmul.bf16.gmra.mxu1 %v2420_v32 }
  0xb8   : > { %1927 = vmatmul.bf16.vlgmr.msra.gmra.mxu2 %v2624_v34 }
  0xb9   : > { %v1201_v35 = vpop.f32.mrf.mxu0 }
  0xbb   : > { %v1257_v36 = vpop.f32.mrf.mxu2 }
  0xbc   : > { %v1211_v38 = vpop.f32.mrf.mxu1 }
  0xbf   : > { %v3355_v39 = vpop.f32.mrf.mxu3 }
  0xc1   : > { %v1204_v4 = vpop.f32.mrf.mxu0 }
  0xc3   : > { %v1259_v7 = vpop.f32.mrf.mxu2 }
  0xc4   : > { %v1214_v43 = vpop.f32.mrf.mxu1 }
  0xc7   : > { %v3357_v28 = vpop.f32.mrf.mxu3  ;;  %1566 = vmatmul.bf16.gmra.mxu1 %v2432_v42 }
  0xc9   : > { %v1206_v31 = vpop.f32.mrf.mxu0 }
  0xcb   : > { %v1262_v44 = vpop.f32.mrf.mxu2 }
  0xcc   : > { %v1216_v45 = vpop.f32.mrf.mxu1 }
  0xcf   : > { %v3359_v46 = vpop.f32.mrf.mxu3 }
  0xd1   : > { %v1523_v19 = vpop.f32.mrf.mxu0 }
  0xd3   : > { %v1264_v37 = vpop.f32.mrf.mxu2 }
  0xd4   : > { %v1228_v47 = vpop.f32.mrf.mxu1 }
  0xd5   : > { %v1229_v48 = vadd.f32 %v1228_v47, %v1199_v24 }
  0xd7   : > { %v1258_v49 = vadd.f32 %v1257_v36, %v1229_v48  ;;  %v3361_v51 = vpop.f32.mrf.mxu3 }
  0xd9   : > { %v1525_v50 = vpop.f32.mrf.mxu0  ;;  %v1495_v32 = vadd.f32 %v3353_v25, %v1258_v49 }
  0xdb   : > { %v1267_v52 = vpop.f32.mrf.mxu2  ;;  %v1524_v36 = vadd.f32 %v1523_v19, %v1495_v32 }
  0xdc   : > { %v1230_v17 = vpop.f32.mrf.mxu1 }
  0xdd   : > { %v1231_v27 = vadd.f32 %v1230_v17, %v1201_v35 }
  0xdf   : > { %v1260_v53 = vadd.f32 %v1259_v7, %v1231_v27  ;;  %v3365_v8 = vpop.f32.mrf.mxu3 }
  0xe1   : > { %v3363_v30 = vpop.f32.mrf.mxu0  ;;  %v1497_v25 = vadd.f32 %v3355_v39, %v1260_v53 }
  0xe3   : > { %v1269_v54 = vpop.f32.mrf.mxu2 }
  0xe4   : > { %v1233_v55 = vpop.f32.mrf.mxu1 }
  0xe5   : > { %v1234_v56 = vadd.f32 %v1233_v55, %v1204_v4 }
  0xe7   : > { %v1263_v57 = vadd.f32 %v1262_v44, %v1234_v56  ;;  %v3369_v0 = vpop.f32.mrf.mxu3  ;;  %v1526_v44 = vadd.f32 %v1525_v50, %v1497_v25 }
  0xe9   : > { %v3367_v60 = vpop.f32.mrf.mxu0  ;;  %v1500_v48 = vadd.f32 %v3357_v28, %v1263_v57 }
  0xeb   : > { %v1272_v61 = vpop.f32.mrf.mxu2  ;;  %v1529_v53 = vadd.f32 %v3363_v30, %v1500_v48 }
  0xec   : > { %v1235_v62 = vpop.f32.mrf.mxu1 }
  0xed   : > { %v1236_v63 = vadd.f32 %v1235_v62, %v1206_v31 }
  0xef   : > { %v1265_v1 = vadd.f32 %v1264_v37, %v1236_v63  ;;  %v3375_v3 = vpop.f32.mrf.mxu3 }
  0xf1   : > { %v3371_v58 = vpop.f32.mrf.mxu0 }
  0xf3   : > { %v1274_v18 = vpop.f32.mrf.mxu2 }
  0xf4   : > { %v1238_v29 = vpop.f32.mrf.mxu1 }
  0xf5   : > { %v1239_v2 = vadd.f32 %v1238_v29, %v1209_v33 }
  0xf7   : > { %v3373_v59 = vadd.f32 %v1267_v52, %v1239_v2  ;;  %v1884_v16 = vpop.f32.mrf.mxu3 }
  0xf9   : > { %v3377_v23 = vpop.f32.mrf.mxu0 }
  0xfb   : > { %v1855_v6 = vpop.f32.mrf.mxu2 }
  0xfc   : > { %v1240_v11 = vpop.f32.mrf.mxu1  ;;  %v1885_v34 = vadd.f32 %v1884_v16, %v1855_v6 }
  0xfd   : > { %v1241_v12 = vadd.f32 %v1240_v11, %v1211_v38 }
  0xff   : > { %v3379_v14 = vadd.f32 %v1269_v54, %v1241_v12  ;;  %v1886_v24 = vpop.f32.mrf.mxu3 }
 0x101   : > { %v3381_v15 = vpop.f32.mrf.mxu0 }
 0x103   : > { %v1857_v21 = vpop.f32.mrf.mxu2 }
 0x104   : > { %v1243_v22 = vpop.f32.mrf.mxu1 }
 0x105   : > { %v1244_v20 = vadd.f32 %v1243_v22, %v1214_v43  ;;  %v1887_v43 = vadd.f32 %v1886_v24, %v1857_v21 }
 0x107   : > { %v3383_v9 = vadd.f32 %v1272_v61, %v1244_v20  ;;  %v1889_v7 = vpop.f32.mrf.mxu3 }
 0x109   : > { %v3385_v10 = vpop.f32.mrf.mxu0 }
 0x10b   : > { %v1860_v13 = vpop.f32.mrf.mxu2 }
 0x10c   : > { %v1245_v5 = vpop.f32.mrf.mxu1  ;;  %v1890_v17 = vadd.f32 %v1889_v7, %v1860_v13  ;;  %v1505_v13 = vadd.f32 %v3361_v51, %v3373_v59 }
 0x10d   : > { %v1246_v26 = vadd.f32 %v1245_v5, %v1216_v45 }
 0x10e   : > { %v1534_v32 = vadd.f32 %v3371_v58, %v1505_v13 }
 0x10f   : > { %v3388_v33 = vadd.f32 %v1274_v18, %v1246_v26  ;;  %v1891_v52 = vpop.f32.mrf.mxu3  ;;  %v1502_v18 = vadd.f32 %v3359_v46, %v1265_v1 }
 0x111   : > { %v1913_v35 = vpop.f32.mrf.mxu0  ;;  %v1531_v12 = vadd.f32 %v3367_v60, %v1502_v18 }
 0x112   : > { %v1914_v40 = vadd.f32 %v1913_v35, %v1885_v34 }
 0x113   : > { %v1862_v38 = vpop.f32.mrf.mxu2 }
 0x114   : > { %v1552_v41 = vpop.f32.mrf.mxu1  ;;  %v1892_v28 = vadd.f32 %v1891_v52, %v1862_v38 }
 0x115   : > { %v1553_v4 = vadd.f32 %v1552_v41, %v1524_v36  ;;  %v1507_v41 = vadd.f32 %v3365_v8, %v3379_v14 }
 0x117   : > { %v1933_v42 = vadd.f32 %v1914_v40, %v1553_v4  ;;  %v1894_v11 = vpop.f32.mrf.mxu3 }
 0x119   : > { %1941 = vst [vmem:[%s3394_s22] sm:$0xff] %v1933_v42  ;;  %v1915_v31 = vpop.f32.mrf.mxu0  ;;  %v1963_v27 = vmul.f32 %v1933_v42, %v1933_v42 }
 0x11a   : > { %v1916_v19 = vadd.f32 %v1915_v31, %v1887_v43 }
 0x11b   : > { %v1865_v45 = vpop.f32.mrf.mxu2 }
 0x11c   : > { %v1554_v37 = vpop.f32.mrf.mxu1  ;;  %v1895_v46 = vadd.f32 %v1894_v11, %v1865_v45 }
 0x11d   : > { %v1555_v47 = vadd.f32 %v1554_v37, %v1526_v44 }
 0x11f   : > { %v1934_v49 = vadd.f32 %v1916_v19, %v1555_v47  ;;  %v1896_v60 = vpop.f32.mrf.mxu3  ;;  %v1510_v19 = vadd.f32 %v3369_v0, %v3383_v9 }
 0x121   : > { %1942 = vst [vmem:[%s3394_s22 + $0x8] sm:$0xff] %v1934_v49  ;;  %v1949_v54 = vadd.f32 %v1934_v49, %v1933_v42  ;;  %v1964_v55 = vmul.f32 %v1934_v49, %v1934_v49  ;;  %v1918_v39 = vpop.f32.mrf.mxu0  ;;  %v1536_v42 = vadd.f32 %v3377_v23, %v1507_v41  ;;  %v1539_v48 = vadd.f32 %v3381_v15, %v1510_v19 }
 0x122   : > { %v1919_v50 = vadd.f32 %v1918_v39, %v1890_v17 }
 0x123   : > { %v1971_v56 = vadd.f32 %v1964_v55, %v1963_v27  ;;  %v1867_v61 = vpop.f32.mrf.mxu2 }
 0x124   : > { %v1557_v62 = vpop.f32.mrf.mxu1  ;;  %v1897_v59 = vadd.f32 %v1896_v60, %v1867_v61 }
 0x125   : > { %v1558_v63 = vadd.f32 %v1557_v62, %v1529_v53 }
 0x127   : > { %v1935_v29 = vadd.f32 %v1919_v50, %v1558_v63  ;;  %v1899_v45 = vpop.f32.mrf.mxu3 }
 0x129   : > { %1943 = vst [vmem:[%s3394_s22 + $0x10] sm:$0xff] %v1935_v29  ;;  %v1950_v57 = vadd.f32 %v1949_v54, %v1935_v29  ;;  %v1965_v2 = vmul.f32 %v1935_v29, %v1935_v29  ;;  %v1920_v6 = vpop.f32.mrf.mxu0  ;;  %v1512_v54 = vadd.f32 %v3375_v3, %v3388_v33 }
 0x12a   : > { %v1921_v21 = vadd.f32 %v1920_v6, %v1892_v28 }
 0x12b   : > { %v1972_v16 = vadd.f32 %v1971_v56, %v1965_v2  ;;  %v1870_v30 = vpop.f32.mrf.mxu2  ;;  %v1541_v56 = vadd.f32 %v3385_v10, %v1512_v54 }
 0x12c   : > { %v1559_v22 = vpop.f32.mrf.mxu1  ;;  %v1900_v49 = vadd.f32 %v1899_v45, %v1870_v30 }
 0x12d   : > { %v1560_v20 = vadd.f32 %v1559_v22, %v1531_v12 }
 0x12f   : > { %v1936_v24 = vadd.f32 %v1921_v21, %v1560_v20  ;;  %v1901_v39 = vpop.f32.mrf.mxu3 }
 0x131   : > { %1944 = vst [vmem:[%s3394_s22 + $0x18] sm:$0xff] %v1936_v24  ;;  %v1951_v1 = vadd.f32 %v1950_v57, %v1936_v24  ;;  %v1966_v5 = vmul.f32 %v1936_v24, %v1936_v24  ;;  %v1923_v26 = vpop.f32.mrf.mxu0 }
 0x132   : > { %v1924_v35 = vadd.f32 %v1923_v26, %v1895_v46 }
 0x133   : > { %v1973_v34 = vadd.f32 %v1972_v16, %v1966_v5  ;;  %v1872_v40 = vpop.f32.mrf.mxu2 }
 0x134   : > { %v1562_v36 = vpop.f32.mrf.mxu1  ;;  %v1902_v61 = vadd.f32 %v1901_v39, %v1872_v40 }
 0x135   : > { %v1563_v38 = vadd.f32 %v1562_v36, %v1534_v32 }
 0x137   : > { %v1937_v51 = vadd.f32 %v1924_v35, %v1563_v38 }
 0x139   : > { %1945 = vst [vmem:[%s3394_s22 + $0x20] sm:$0xff] %v1937_v51  ;;  %v1952_v4 = vadd.f32 %v1951_v1, %v1937_v51  ;;  %v1967_v7 = vmul.f32 %v1937_v51, %v1937_v51  ;;  %v1925_v25 = vpop.f32.mrf.mxu0 }
 0x13a   : > { %v1926_v58 = vadd.f32 %v1925_v25, %v1897_v59 }
 0x13b   : > { %v1974_v43 = vadd.f32 %v1973_v34, %v1967_v7  ;;  %v1928_v8 = vpop.f32.mrf.mxu2 }
 0x13c   : > { %v1564_v31 = vpop.f32.mrf.mxu1  ;;  %v1929_v23 = vadd.f32 %v1928_v8, %v1900_v49 }
 0x13d   : > { %v1565_v44 = vadd.f32 %v1564_v31, %v1536_v42 }
 0x13f   : > { %v1938_v37 = vadd.f32 %v1926_v58, %v1565_v44 }
 0x141   : > { %1946 = vst [vmem:[%s3394_s22 + $0x28] sm:$0xff] %v1938_v37  ;;  %v1953_v14 = vadd.f32 %v1952_v4, %v1938_v37  ;;  %v1968_v47 = vmul.f32 %v1938_v37, %v1938_v37 }
 0x143   : > { %v1975_v52 = vadd.f32 %v1974_v43, %v1968_v47  ;;  %v1930_v53 = vpop.f32.mrf.mxu2 }
 0x144   : > { %v1567_v17 = vpop.f32.mrf.mxu1  ;;  %v1931_v62 = vadd.f32 %v1930_v53, %v1902_v61 }
 0x145   : > { %v1568_v27 = vadd.f32 %v1567_v17, %v1539_v48 }
 0x147   : > { %v1939_v55 = vadd.f32 %v1929_v23, %v1568_v27 }
 0x149   : > { %1947 = vst [vmem:[%s3394_s22 + $0x30] sm:$0xff] %v1939_v55  ;;  %v1954_v0 = vadd.f32 %v1953_v14, %v1939_v55  ;;  %v1969_v9 = vmul.f32 %v1939_v55, %v1939_v55 }
 0x14b   : > { %v1976_v50 = vadd.f32 %v1975_v52, %v1969_v9 }
 0x14c   : > { %v1569_v15 = vpop.f32.mrf.mxu1 }
 0x14d   : > { %v1570_v63 = vadd.f32 %v1569_v15, %v1541_v56 }
 0x14f   : > { %v1940_v18 = vadd.f32 %v1931_v62, %v1570_v63 }
 0x151   : > { %1948 = vst [vmem:[%s3394_s22 + $0x38] sm:$0xff] %v1940_v18  ;;  %v1955_v29 = vadd.f32 %v1954_v0, %v1940_v18  ;;  %v1970_v28 = vmul.f32 %v1940_v18, %v1940_v18 }
 0x153   : > { %v1956_v3 = vrot.slane %v1955_v29, 4  ;;  %v1977_v33 = vadd.f32 %v1976_v50, %v1970_v28 }
 0x155   : > { %v1957_v57 = vadd.f32 %v1956_v3, %v1955_v29  ;;  %v1978_v2 = vrot.slane %v1977_v33, 4 }
 0x157   : > { %v1958_v6 = vrot.slane %v1957_v57, 2  ;;  %v1979_v11 = vadd.f32 %v1978_v2, %v1977_v33 }
 0x159   : > { %v1959_v12 = vadd.f32 %v1958_v6, %v1957_v57  ;;  %v1980_v16 = vrot.slane %v1979_v11, 2 }
 0x15b   : > { %v1960_v10 = vrot.slane %v1959_v12, 1  ;;  %v1981_v21 = vadd.f32 %v1980_v16, %v1979_v11 }
 0x15d   : > { %v1961_v30 = vadd.f32 %v1960_v10, %v1959_v12  ;;  %v1982_v22 = vrot.slane %v1981_v21, 1 }
 0x15f   : > { %v1983_v20 = vadd.f32 %v1982_v22, %v1981_v21  ;;  %1985 = vst [vmem:[%s489_s25] sm:$0x1] %v1961_v30 }
 0x161   : > { %1986 = vst [vmem:[%s495_s30] sm:$0x1] %v1983_v20 }
 0x162 PF: > { %s19_s27 = sadd.s32 1, %s2920_s27   ;;  %s3451_s26 = smov %s2916_s2 }
 0x163   : > { %p16_p5 = scmp.ge.s32.totalorder %s19_s27, 4   ;;  %s3452_s2 = smov %s3454_s28 }
 0x165   :  { %18 = sbr.rel (!%p16_p5) target bundleno = 2 (0x2), region = 126 }

// kernel: down_forward.3
= control target key start
LH: loop header
LB: loop body
LE: loop exit
PB: predicated region body
PF: predicated region fallthrough
CT: control target
= control target key end

     0   :  { %s3034_s21 = smov 0   ;;  %s3036_s22 = smov 0   ;;  %s3497_s0 = inlined_call_operand.vmem [shape: bf16[2,16,8,256], index: 0, kind: input, shape index: {}, may-alias: {0,1,2}]   ;;  %s3498_s1 = inlined_call_operand.vmem [shape: bf16[2,16,8,256], index: 1, kind: input, shape index: {}, may-alias: {0,1,2}]   ;;  %s3499_s2 = inlined_call_operand.vmem [shape: bf16[2,16,8,256], index: 2, kind: input, shape index: {}, may-alias: {0,1,2}]   ;;  %s3500_s3 = inlined_call_operand.vmem [shape: bf16[3,384,128], index: 3, kind: input, shape index: {}]   ;;  %s3501_s4 = inlined_call_operand.vmem [shape: bf16[2,8,8,128], index: 4, kind: output, shape index: {0}]   ;;  %s3502_s5 = inlined_call_operand.vmem [shape: f32[2,1,1,128], index: 5, kind: output, shape index: {1}]   ;;  %s3503_s6 = inlined_call_operand.vmem [shape: f32[2,1,1,128], index: 6, kind: output, shape index: {2}]  }
   0x1   :  { %s3038_s1 = smov 0  }
   0x2 LB: > { %s29_s2 = sadd.s32 1, %s2992_s22  ;;  %p2258_p0 = scmp.ge.s32.totalorder %s2996_s1, 1  ;;  %s2996_s1 = sphi %s3038_s1, %s17_s1   ;;  %s2992_s22 = sphi %s3036_s22, %s3509_s22   ;;  %s2988_s21 = sphi %s3034_s21, %s3508_s21  }
   0x3   : > { %p31_p1 = scmp.ge.s32.totalorder %s29_s2, 2  ;;  %p311_p2 = scmp.lt.s32.totalorder %s2996_s1, 3 }
   0x5   : > { %s3511_s2 = smov (%p31_p1, %s29_s2), 0  ;;  %p312_p3 = pnand %p2258_p0, %p311_p2 }
   0x6   : > { %p391_p4 = scmp.lt.s32.totalorder (!%p312_p3), %s2988_s21, 1 }
   0x7   : > { %315 = sbr.rel (%p312_p3) target bundleno = 369 (0x171), region = 36 }
   0xc   : > { %v2857_v0 = vld [vmem:[%s3500_s3 + $0xf8] sm:$0xff]  ;;  %v2856_v3 = vld [vmem:[%s3500_s3 + $0xf0] sm:$0xff]  ;;  %s3513_s21 = smov (!%p391_p4, %s2988_s21), 1  ;;  %v2855_v6 = vld [vmem:[%s3500_s3 + $0xe8] sm:$0xff]  ;;  %v2998_v52 = vmov 0   ;;  %vm678_vm0 = vcmask 1040384  }
   0xd   : > { %v2873_v1 = vld [vmem:[%s3500_s3 + $0x178] sm:$0xff]  ;;  %1247 = vmatpush.bf16.msra.mxu0 %v2857_v0  ;;  %2933 = vmatpush.bf16.msra.mxu1 %v2857_v0  ;;  %v2872_v4 = vld [vmem:[%s3500_s3 + $0x170] sm:$0xff]  ;;  %s2797_s11 = sshll.u32 %s3513_s21, 7  ;;  %v2871_v7 = vld [vmem:[%s3500_s3 + $0x168] sm:$0xff]  ;;  %809 = vst [vmem:[#allocation2] sm:$0xff] %v2998_v52  ;;  %vm713_vm2 = vcmask 1043456   ;;  %s454_s24 = scalar_lea.vmem %s3502_s5, %s3513_s21 }
   0xe   : > { %v2821_v2 = vld [vmem:[%s3500_s3 + $0x38] sm:$0xff]  ;;  %1305 = vmatpush.bf16.msra.mxu2 %v2873_v1  ;;  %v2820_v5 = vld [vmem:[%s3500_s3 + $0x30] sm:$0xff]  ;;  %s3076_s14 = scalar_lea.vmem %s3497_s0, %s2797_s11  ;;  %v2819_v8 = vld [vmem:[%s3500_s3 + $0x28] sm:$0xff]  ;;  %810 = vst [vmem:[#allocation2 + $0x8] sm:$0xf] %v2998_v52  ;;  %s2801_s16 = sshll.u32 %s3513_s21, 5 }
   0xf   : > { %1542 = vmatpush.bf16.msra.mxu3 %v2821_v2  ;;  %v462_v9 = vld [vmem:[%s3076_s14] sm:$0xff]  ;;  %v463_v10 = vld [vmem:[%s3076_s14 + $0x8] sm:$0xff]  ;;  %v464_v11 = vld [vmem:[%s3076_s14 + $0x10] sm:$0xff]  ;;  %861 = vst [vmem:[#allocation2 + $0x6c] sm:$0xff] %v2998_v52  ;;  %vm679_vm1 = vsmask.f32 256  ;;  %s3464_s19 = scalar_lea.vmem %s3501_s4, %s2801_s16  ;;  %s460_s27 = scalar_lea.vmem %s3503_s6, %s3513_s21 }
  0x10   : > { %v2854_v12 = vld [vmem:[%s3500_s3 + $0xe0] sm:$0xff]  ;;  %v465_v13 = vld [vmem:[%s3076_s14 + $0x18] sm:$0xff]  ;;  %v478_v14 = vunpack.c.l.bf16 %v462_v9  ;;  %v479_v15 = vunpack.c.h.bf16 %v462_v9  ;;  %v480_v16 = vunpack.c.l.bf16 %v464_v11  ;;  %v481_v17 = vunpack.c.h.bf16 %v464_v11  ;;  %v471_v23 = vld [vmem:[%s3076_s14 + $0x48] sm:$0xff]  ;;  %862 = vst [vmem:[#allocation2 + $0x74] sm:$0xf] %v2998_v52 }
  0x11   : > { %1248 = vmatpush.bf16.msra.mxu0 %v2856_v3  ;;  %2934 = vmatpush.bf16.msra.mxu1 %v2856_v3  ;;  %v470_v18 = vld [vmem:[%s3076_s14 + $0x40] sm:$0xff]  ;;  %v494_v19 = vunpack.c.l.bf16 %v463_v10  ;;  %v495_v20 = vunpack.c.h.bf16 %v463_v10  ;;  %v496_v21 = vunpack.c.l.bf16 %v465_v13  ;;  %v497_v22 = vunpack.c.h.bf16 %v465_v13  ;;  %v472_v24 = vld [vmem:[%s3076_s14 + $0x50] sm:$0xff]  ;;  %v473_v25 = vld [vmem:[%s3076_s14 + $0x58] sm:$0xff] }
  0x12   : > { %1306 = vmatpush.bf16.msra.mxu2 %v2872_v4  ;;  %v2870_v26 = vld [vmem:[%s3500_s3 + $0x160] sm:$0xff]  ;;  %v486_v28 = vunpack.c.l.bf16 %v470_v18  ;;  %v487_v29 = vunpack.c.h.bf16 %v470_v18  ;;  %v488_v30 = vunpack.c.l.bf16 %v472_v24  ;;  %v489_v31 = vunpack.c.h.bf16 %v472_v24  ;;  %v2853_v41 = vld [vmem:[%s3500_s3 + $0xd8] sm:$0xff]  ;;  %v467_v44 = vld [vmem:[%s3076_s14 + $0x28] sm:$0xff] }
  0x13   : > { %1543 = vmatpush.bf16.msra.mxu3 %v2820_v5  ;;  %v2818_v27 = vld [vmem:[%s3500_s3 + $0x20] sm:$0xff]  ;;  %v510_v33 = vmax.f32 %v478_v14, %v494_v19  ;;  %v511_v34 = vmax.f32 %v479_v15, %v495_v20  ;;  %v512_v35 = vmax.f32 %v480_v16, %v496_v21  ;;  %v513_v36 = vmax.f32 %v481_v17, %v497_v22  ;;  %v468_v45 = vld [vmem:[%s3076_s14 + $0x30] sm:$0xff]  ;;  %v2869_v47 = vld [vmem:[%s3500_s3 + $0x158] sm:$0xff] }
  0x14   : > { %v466_v32 = vld [vmem:[%s3076_s14 + $0x20] sm:$0xff]  ;;  %v502_v37 = vunpack.c.l.bf16 %v471_v23  ;;  %v503_v38 = vunpack.c.h.bf16 %v471_v23  ;;  %v504_v39 = vunpack.c.l.bf16 %v473_v25  ;;  %v505_v40 = vunpack.c.h.bf16 %v473_v25  ;;  %v2817_v48 = vld [vmem:[%s3500_s3 + $0x18] sm:$0xff]  ;;  %v2852_v62 = vld [vmem:[%s3500_s3 + $0xd0] sm:$0xff] }
  0x15   : > { %1249 = vmatpush.bf16.msra.mxu0 %v2855_v6  ;;  %2935 = vmatpush.bf16.msra.mxu1 %v2855_v6  ;;  %v526_v42 = vpack.c.bf16 %v511_v34, %v510_v33  ;;  %v527_v43 = vpack.c.bf16 %v513_v36, %v512_v35  ;;  %v482_v46 = vunpack.c.l.bf16 %v466_v32  ;;  %v469_v56 = vld [vmem:[%s3076_s14 + $0x38] sm:$0xff]  ;;  %v483_v57 = vunpack.c.h.bf16 %v466_v32  ;;  %v3121_v3 = vld [vmem:[%s3076_s14 + $0x60] sm:$0xff]  ;;  %v2868_v4 = vld [vmem:[%s3500_s3 + $0x150] sm:$0xff] }
  0x16   : > { %1307 = vmatpush.bf16.msra.mxu2 %v2871_v7  ;;  %v518_v49 = vmax.f32 %v486_v28, %v502_v37  ;;  %v519_v50 = vmax.f32 %v487_v29, %v503_v38  ;;  %v520_v51 = vmax.f32 %v488_v30, %v504_v39  ;;  %v521_v55 = vmax.f32 %v489_v31, %v505_v40  ;;  %v2816_v5 = vld [vmem:[%s3500_s3 + $0x10] sm:$0xff]  ;;  %v2851_v19 = vld [vmem:[%s3500_s3 + $0xc8] sm:$0xff]  ;;  %v2850_v40 = vld [vmem:[%s3500_s3 + $0xc0] sm:$0xff] }
  0x17   : > { %1544 = vmatpush.bf16.msra.mxu3 %v2819_v8  ;;  %v550_v53 = vrot.slane %v526_v42, 4  ;;  %v551_v54 = vrot.slane %v527_v43, 4  ;;  %v484_v59 = vunpack.c.l.bf16 %v468_v45  ;;  %v485_v60 = vunpack.c.h.bf16 %v468_v45  ;;  %v3130_v14 = vld [vmem:[%s3076_s14 + $0x70] sm:$0xff]  ;;  %v3137_v24 = vld [vmem:[%s3076_s14 + $0x68] sm:$0xff]  ;;  %v2866_v45 = vld [vmem:[%s3500_s3 + $0x140] sm:$0xff] }
  0x18   : > { %v530_v58 = vpack.c.bf16 %v519_v50, %v518_v49  ;;  %v498_v61 = vunpack.c.l.bf16 %v467_v44  ;;  %v531_v1 = vpack.c.bf16 %v521_v55, %v520_v51  ;;  %v499_v2 = vunpack.c.h.bf16 %v467_v44  ;;  %v2867_v25 = vld [vmem:[%s3500_s3 + $0x148] sm:$0xff]  ;;  %v2865_v55 = vld [vmem:[%s3500_s3 + $0x138] sm:$0xff]  ;;  %vm3190_vm4 = vmand %vm678_vm0, %vm679_vm1 }
  0x19   : > { %1250 = vmatpush.bf16.msra.mxu0 %v2854_v12  ;;  %2936 = vmatpush.bf16.msra.mxu1 %v2854_v12  ;;  %v566_v63 = vunpack.c.l.bf16 %v550_v53  ;;  %v567_v0 = vunpack.c.l.bf16 %v551_v54  ;;  %v500_v7 = vunpack.c.l.bf16 %v469_v56  ;;  %v501_v8 = vunpack.c.h.bf16 %v469_v56 }
  0x1a   : > { %1308 = vmatpush.bf16.msra.mxu2 %v2870_v26  ;;  %v554_v6 = vrot.slane %v530_v58, 4  ;;  %v514_v9 = vmax.f32 %v482_v46, %v498_v61  ;;  %v555_v12 = vrot.slane %v531_v1, 4  ;;  %vm714_vm3 = vsmask.f32 3328  ;;  %v2815_v26 = vld [vmem:[%s3500_s3 + $0x8] sm:$0xff]  ;;  %v2814_v46 = vld [vmem:[%s3500_s3] sm:$0xff] }
  0x1b   : > { %1545 = vmatpush.bf16.msra.mxu3 %v2818_v27  ;;  %v574_v10 = vmax.f32 %v510_v33, %v566_v63  ;;  %v575_v11 = vmax.f32 %v512_v35, %v567_v0  ;;  %v515_v13 = vmax.f32 %v483_v57, %v499_v2  ;;  %v516_v16 = vmax.f32 %v484_v59, %v500_v7  ;;  %v3152_v35 = vld [vmem:[%s3076_s14 + $0x78] sm:$0xff]  ;;  %vm3202_vm5 = vmand %vm713_vm2, %vm714_vm3 }
  0x1c   : > { %v570_v15 = vunpack.c.l.bf16 %v554_v6  ;;  %v517_v17 = vmax.f32 %v485_v60, %v501_v8  ;;  %v490_v18 = vunpack.c.l.bf16 %v3121_v3  ;;  %v571_v22 = vunpack.c.l.bf16 %v555_v12  ;;  %v2829_v58 = vld [vmem:[%s3500_s3 + $0x78] sm:$0xff] }
  0x1d   : > { %1251 = vmatpush.bf16.msra.mxu0 %v2853_v41  ;;  %2937 = vmatpush.bf16.msra.mxu1 %v2853_v41  ;;  %v582_v20 = vpack.c.bf16 %v574_v10, %v574_v10  ;;  %v583_v21 = vpack.c.bf16 %v575_v11, %v575_v11  ;;  %v528_v23 = vpack.c.bf16 %v515_v13, %v514_v9  ;;  %v491_v29 = vunpack.c.h.bf16 %v3121_v3  ;;  %v2893_v59 = vld [vmem:[%s3500_s3 + $0x1b8] sm:$0xff]  ;;  %v2864_v13 = vld [vmem:[%s3500_s3 + $0x130] sm:$0xff]  ;;  %v2461_v3 = vld [vmem:[#allocation2] sm:$0xf] }
  0x1e   : > { %1309 = vmatpush.bf16.msra.mxu2 %v2869_v47  ;;  %v578_v27 = vmax.f32 %v518_v49, %v570_v15  ;;  %v529_v28 = vpack.c.bf16 %v517_v17, %v516_v16  ;;  %v492_v30 = vunpack.c.l.bf16 %v3130_v14  ;;  %v579_v33 = vmax.f32 %v520_v51, %v571_v22 }
  0x1f   : > { %1546 = vmatpush.bf16.msra.mxu3 %v2817_v48  ;;  %v3147_v31 = vunpack.c.l.b16 %v582_v20  ;;  %v3149_v32 = vunpack.c.l.b16 %v583_v21  ;;  %v552_v34 = vrot.slane %v528_v23, 4  ;;  %v493_v38 = vunpack.c.h.bf16 %v3130_v14 }
  0x20   : > { %v586_v36 = vpack.c.bf16 %v578_v27, %v578_v27  ;;  %v553_v37 = vrot.slane %v529_v28, 4  ;;  %v506_v39 = vunpack.c.l.bf16 %v3137_v24  ;;  %v587_v43 = vpack.c.bf16 %v579_v33, %v579_v33 }
  0x21   : > { %1252 = vmatpush.bf16.msra.mxu0 %v2852_v62  ;;  %2938 = vmatpush.bf16.msra.mxu1 %v2852_v62  ;;  %v606_v41 = vpack.c.b16 %v3147_v31, %v3147_v31  ;;  %v607_v42 = vpack.c.b16 %v3149_v32, %v3149_v32  ;;  %v568_v44 = vunpack.c.l.bf16 %v552_v34  ;;  %v507_v49 = vunpack.c.h.bf16 %v3137_v24 }
  0x22   : > { %1310 = vmatpush.bf16.msra.mxu2 %v2868_v4  ;;  %v3169_v47 = vunpack.c.l.b16 %v586_v36  ;;  %v569_v48 = vunpack.c.l.bf16 %v553_v37  ;;  %v508_v50 = vunpack.c.l.bf16 %v3152_v35  ;;  %v3176_v56 = vunpack.c.l.b16 %v587_v43  ;;  %v2863_v37 = vld [vmem:[%s3500_s3 + $0x128] sm:$0xff] }
  0x23   : > { %1547 = vmatpush.bf16.msra.mxu3 %v2816_v5  ;;  %v615_v51 = vshrl.u32 %v606_v41, 16  ;;  %v618_v52 = vshll.u32 %v606_v41, 16  ;;  %v622_v53 = vshrl.u32 %v607_v42, 16  ;;  %v625_v54 = vshll.u32 %v607_v42, 16 }
  0x24   : > { %v3180_v57 = vpack.c.b16 %v3169_v47, %v3169_v47  ;;  %v576_v60 = vmax.f32 %v514_v9, %v568_v44  ;;  %v577_v61 = vmax.f32 %v516_v16, %v569_v48  ;;  %v3196_v4 = vpack.c.b16 %v3176_v56, %v3176_v56 }
  0x25   : > { %1253 = vmatpush.bf16.msra.mxu0 %v2851_v19  ;;  %2939 = vmatpush.bf16.msra.mxu1 %v2851_v19  ;;  %v617_v62 = vrot.slane %v615_v51, 7  ;;  %v624_v63 = vrot.slane %v622_v53, 7  ;;  %v689_v1 = vrot.slane %v618_v52, 1  ;;  %v691_v2 = vrot.slane %v625_v54, 1  ;;  %v2828_v19 = vld [vmem:[%s3500_s3 + $0x70] sm:$0xff] }
  0x26   : > { %1311 = vmatpush.bf16.msra.mxu2 %v2867_v25  ;;  %v643_v5 = vshrl.u32 %v3180_v57, 16  ;;  %v646_v6 = vshll.u32 %v3180_v57, 16  ;;  %v584_v8 = vpack.c.bf16 %v576_v60, %v576_v60  ;;  %v650_v16 = vshrl.u32 %v3196_v4, 16  ;;  %v2862_v60 = vld [vmem:[%s3500_s3 + $0x120] sm:$0xff] }
  0x27   : > { %1548 = vmatpush.bf16.msra.mxu3 %v2815_v26  ;;  %v620_v9 = vor.u32 %v618_v52, %v617_v62  ;;  %v627_v10 = vor.u32 %v625_v54, %v624_v63  ;;  %v690_v11 = vor.u32 %v689_v1, %v615_v51  ;;  %v692_v12 = vor.u32 %v691_v2, %v622_v53  ;;  %v2826_v63 = vld [vmem:[%s3500_s3 + $0x60] sm:$0xff] }
  0x28   : > { %v645_v15 = vrot.slane %v643_v5, 7  ;;  %v653_v17 = vshll.u32 %v3196_v4, 16  ;;  %v585_v20 = vpack.c.bf16 %v577_v61, %v577_v61  ;;  %v652_v33 = vrot.slane %v650_v16, 7 }
  0x29   : > { %1254 = vmatpush.bf16.msra.mxu0 %v2850_v40  ;;  %2940 = vmatpush.bf16.msra.mxu1 %v2850_v40  ;;  %v681_v21 = vsel %vm3190_vm4, 0, %v620_v9  ;;  %v682_v22 = vsel %vm3190_vm4, 0, %v627_v10  ;;  %v716_v23 = vsel %vm3202_vm5, %v690_v11, 0  ;;  %v717_v25 = vsel %vm3202_vm5, %v692_v12, 0 }
  0x2a   : > { %1312 = vmatpush.bf16.msra.mxu2 %v2866_v45  ;;  %v740_v26 = vunpack.c.l.b16 %v681_v21  ;;  %v742_v27 = vunpack.c.l.b16 %v682_v22  ;;  %v648_v28 = vor.u32 %v646_v6, %v645_v15  ;;  %v741_v34 = vunpack.c.l.b16 %v716_v23 }
  0x2b   : > { %1549 = vmatpush.bf16.msra.mxu3 %v2814_v46  ;;  %v743_v36 = vunpack.c.l.b16 %v717_v25  ;;  %v3231_v40 = vunpack.c.l.b16 %v584_v8  ;;  %v3233_v41 = vunpack.c.l.b16 %v585_v20  ;;  %v655_v44 = vor.u32 %v653_v17, %v652_v33  ;;  %v2827_v46 = vld [vmem:[%s3500_s3 + $0x68] sm:$0xff] }
  0x2c   : > { %v756_v42 = vpack.c.b16 %v3147_v31, %v740_v26  ;;  %v758_v43 = vpack.c.b16 %v3149_v32, %v742_v27  ;;  %v685_v45 = vsel %vm3190_vm4, 0, %v648_v28  ;;  %v757_v51 = vpack.c.b16 %v741_v34, %v741_v34  ;;  %v2825_v27 = vld [vmem:[%s3500_s3 + $0x58] sm:$0xff] }
  0x2d   : > { %1276 = vmatpush.bf16.msrb.mxu1 %v2865_v55  ;;  %1571 = vmatpush.bf16.msrb.mxu0 %v2829_v58  ;;  %v748_v48 = vunpack.c.l.b16 %v685_v45  ;;  %v759_v52 = vpack.c.b16 %v743_v36, %v743_v36  ;;  %v608_v53 = vpack.c.b16 %v3231_v40, %v3231_v40  ;;  %v686_v31 = vsel %vm3190_vm4, 0, %v655_v44  ;;  %v2892_v36 = vld [vmem:[%s3500_s3 + $0x1b0] sm:$0xff] }
  0x2e   : > { %1903 = vmatpush.bf16.msrb.mxu2 %v2893_v59  ;;  %789 = vst [vmem:[#allocation2 + $0xc] sm:$0xff] %v756_v42  ;;  %v609_v32 = vpack.c.b16 %v3233_v41, %v3233_v41  ;;  %v509_v54 = vunpack.c.h.bf16 %v3152_v35  ;;  %v522_v55 = vmax.f32 %v490_v18, %v506_v39  ;;  %v750_v58 = vunpack.c.l.b16 %v686_v31 }
  0x2f   : > { %791 = vst [vmem:[#allocation2 + $0x18] sm:$0xff] %v758_v43  ;;  %v764_v59 = vpack.c.b16 %v3169_v47, %v748_v48  ;;  %v629_v61 = vshrl.u32 %v608_v53, 16  ;;  %v632_v62 = vshll.u32 %v608_v53, 16  ;;  %v523_v18 = vmax.f32 %v491_v29, %v507_v49 }
  0x30   : > { %790 = vst [vmem:[#allocation2 + $0x14] sm:$0xf] %v757_v51  ;;  %v636_v1 = vshrl.u32 %v609_v32, 16  ;;  %v639_v2 = vshll.u32 %v609_v32, 16  ;;  %v524_v39 = vmax.f32 %v492_v30, %v508_v50  ;;  %v766_v47 = vpack.c.b16 %v3176_v56, %v750_v58 }
  0x31   : > { %1277 = vmatpush.bf16.msrb.mxu1 %v2864_v13  ;;  %1572 = vmatpush.bf16.msrb.mxu0 %v2828_v19  ;;  %797 = vst [vmem:[#allocation2 + $0x3c] sm:$0xff] %v764_v59  ;;  %v631_v8 = vrot.slane %v629_v61, 7  ;;  %v525_v9 = vmax.f32 %v493_v38, %v509_v54  ;;  %v693_v10 = vrot.slane %v632_v62, 1  ;;  %v532_v12 = vpack.c.bf16 %v523_v18, %v522_v55  ;;  %v2891_v59 = vld [vmem:[%s3500_s3 + $0x1a8] sm:$0xff] }
  0x32   : > { %792 = vst [vmem:[#allocation2 + $0x20] sm:$0xf] %v759_v52  ;;  %v638_v11 = vrot.slane %v636_v1, 7  ;;  %v695_v24 = vrot.slane %v639_v2, 1  ;;  %v697_v30 = vrot.slane %v646_v6, 1  ;;  %v699_v14 = vrot.slane %v653_v17, 1  ;;  %1904 = vmatpush.bf16.msrb.mxu2 %v2892_v36 }
  0x33   : > { %799 = vst [vmem:[#allocation2 + $0x48] sm:$0xff] %v766_v47  ;;  %v634_v29 = vor.u32 %v632_v62, %v631_v8  ;;  %v533_v35 = vpack.c.bf16 %v525_v9, %v524_v39  ;;  %v694_v49 = vor.u32 %v693_v10, %v629_v61  ;;  %v556_v56 = vrot.slane %v532_v12, 4  ;;  %v2861_v17 = vld [vmem:[%s3500_s3 + $0x118] sm:$0xff]  ;;  %v2823_v8 = vld [vmem:[%s3500_s3 + $0x48] sm:$0xff] }
  0x34   : > { %v641_v50 = vor.u32 %v639_v2, %v638_v11  ;;  %v696_v13 = vor.u32 %v695_v24, %v636_v1  ;;  %v698_v21 = vor.u32 %v697_v30, %v643_v5  ;;  %v700_v31 = vor.u32 %v699_v14, %v650_v16  ;;  %v2859_v1 = vld [vmem:[%s3500_s3 + $0x108] sm:$0xff]  ;;  %v2822_v14 = vld [vmem:[%s3500_s3 + $0x40] sm:$0xff] }
  0x35   : > { %1278 = vmatpush.bf16.msrb.mxu1 %v2863_v37  ;;  %1573 = vmatpush.bf16.msrb.mxu0 %v2827_v46  ;;  %v2317_v38 = vld [vmem:[#allocation2 + $0xc] sm:$0xf]  ;;  %v683_v19 = vsel %vm3190_vm4, 0, %v634_v29  ;;  %v557_v20 = vrot.slane %v533_v35, 4  ;;  %v572_v26 = vunpack.c.l.bf16 %v556_v56  ;;  %v718_v5 = vsel %vm3202_vm5, %v694_v49, 0  ;;  %v2860_v46 = vld [vmem:[%s3500_s3 + $0x110] sm:$0xff] }
  0x36   : > { %v2803_v15 = vld [vmem:[#allocation2 + $0x8] sm:$0xf0]  ;;  %v2839_v22 = vld [vmem:[#allocation2 + $0x14] sm:$0xf0]  ;;  %v684_v6 = vsel %vm3190_vm4, 0, %v641_v50  ;;  %v744_v25 = vunpack.c.l.b16 %v683_v19  ;;  %v719_v44 = vsel %vm3202_vm5, %v696_v13, 0  ;;  %v745_v45 = vunpack.c.l.b16 %v718_v5  ;;  %1905 = vmatpush.bf16.msrb.mxu2 %v2891_v59 }
  0x37   : > { %v2462_v23 = vor.u32 %v2803_v15, %v2461_v3  ;;  %v2318_v28 = vor.u32 %v2839_v22, %v2317_v38  ;;  %v2325_v33 = vld [vmem:[#allocation2 + $0x14] sm:$0xf]  ;;  %v746_v34 = vunpack.c.l.b16 %v684_v6  ;;  %v573_v57 = vunpack.c.l.bf16 %v557_v20  ;;  %v2473_v12 = vld [vmem:[#allocation2 + $0x18] sm:$0xf]  ;;  %v2858_v29 = vld [vmem:[%s3500_s3 + $0x100] sm:$0xff] }
  0x38   : > { %v2341_v37 = vld [vmem:[#allocation2 + $0x3c] sm:$0xf]  ;;  %v760_v42 = vpack.c.b16 %v3231_v40, %v744_v25  ;;  %v580_v43 = vmax.f32 %v522_v55, %v572_v26  ;;  %v747_v53 = vunpack.c.l.b16 %v719_v44  ;;  %v761_v58 = vpack.c.b16 %v745_v45, %v745_v45 }
  0x39   : > { %1279 = vmatpush.bf16.msrb.mxu1 %v2862_v60  ;;  %1574 = vmatpush.bf16.msrb.mxu0 %v2826_v63  ;;  %v2840_v48 = vld [vmem:[#allocation2 + $0x1c] sm:$0xf0]  ;;  %v762_v51 = vpack.c.b16 %v3233_v41, %v746_v34  ;;  %v581_v52 = vmax.f32 %v524_v39, %v573_v57  ;;  %v2901_v40 = vld [vmem:[%s3500_s3 + $0x1f8] sm:$0xff]  ;;  %v2824_v41 = vld [vmem:[%s3500_s3 + $0x50] sm:$0xff]  ;;  %v720_v60 = vsel %vm3202_vm5, %v698_v21, 0  ;;  %v721_v62 = vsel %vm3202_vm5, %v700_v31, 0 }
  0x3a   : > { %1550 = vmatmul.bf16.vlgmr.msra.gmra.mxu3 %v2462_v23  ;;  %1255 = vmatmul.bf16.vlgmr.msra.gmra.mxu0 %v2318_v28  ;;  %v2845_v32 = vld [vmem:[#allocation2 + $0x44] sm:$0xf0]  ;;  %v2326_v54 = vor.u32 %v2840_v48, %v2325_v33  ;;  %793 = vst [vmem:[#allocation2 + $0x24] sm:$0xff] %v760_v42  ;;  %v588_v55 = vpack.c.bf16 %v580_v43, %v580_v43  ;;  %v749_v2 = vunpack.c.l.b16 %v720_v60  ;;  %v751_v18 = vunpack.c.l.b16 %v721_v62  ;;  %v2900_v28 = vld [vmem:[%s3500_s3 + $0x1f0] sm:$0xff]  ;;  %v2890_v33 = vld [vmem:[%s3500_s3 + $0x1a0] sm:$0xff] }
  0x3b   : > { %v2342_v61 = vor.u32 %v2845_v32, %v2341_v37  ;;  %795 = vst [vmem:[#allocation2 + $0x30] sm:$0xff] %v762_v51  ;;  %v589_v4 = vpack.c.bf16 %v581_v52, %v581_v52  ;;  %v763_v16 = vpack.c.b16 %v747_v53, %v747_v53  ;;  %1932 = vmatpush.bf16.msrb.mxu3 %v2901_v40  ;;  %v2836_v43 = vld [vmem:[%s3500_s3 + $0xb0] sm:$0xff]  ;;  %v3357_v44 = vld [vmem:[%s3500_s3 + $0x238] sm:$0xff]  ;;  %v2899_v48 = vld [vmem:[%s3500_s3 + $0x1e8] sm:$0xff] }
  0x3c   : > { %1313 = vmatmul.bf16.vlgmr.msra.gmra.mxu2 %v2326_v54  ;;  %v3316_v63 = vunpack.c.l.b16 %v588_v55  ;;  %794 = vst [vmem:[#allocation2 + $0x2c] sm:$0xf] %v761_v58  ;;  %v765_v9 = vpack.c.b16 %v749_v2, %v749_v2  ;;  %v767_v10 = vpack.c.b16 %v751_v18, %v751_v18  ;;  %v2889_v53 = vld [vmem:[%s3500_s3 + $0x198] sm:$0xff]  ;;  %v2898_v31 = vld [vmem:[%s3500_s3 + $0x1e0] sm:$0xff]  ;;  %v2908_v18 = vld [vmem:[%s3500_s3 + $0x230] sm:$0xff] }
  0x3d   : > { %1280 = vmatpush.bf16.msrb.mxu1 %v2861_v17  ;;  %1575 = vmatpush.bf16.msrb.mxu0 %v2825_v27  ;;  %v3321_v39 = vunpack.c.l.b16 %v589_v4  ;;  %796 = vst [vmem:[#allocation2 + $0x38] sm:$0xf] %v763_v16  ;;  %v2837_v27 = vld [vmem:[%s3500_s3 + $0xb8] sm:$0xff]  ;;  %v2802_v58 = vld [vmem:[#allocation2 + $0x4] sm:$0xf] }
  0x3e   : > { %1265 = vmatmul.bf16.vlgmr.msra.gmra.mxu1 %v2342_v61  ;;  %v612_v47 = vpack.c.b16 %v3316_v63, %v3316_v63  ;;  %798 = vst [vmem:[#allocation2 + $0x44] sm:$0xf] %v765_v9  ;;  %1906 = vmatpush.bf16.msrb.mxu2 %v2890_v33  ;;  %v2809_v54 = vld [vmem:[#allocation2 + $0x38] sm:$0xf0]  ;;  %v2896_v9 = vld [vmem:[%s3500_s3 + $0x1d0] sm:$0xff] }
  0x3f   : > { %v613_v11 = vpack.c.b16 %v3321_v39, %v3321_v39  ;;  %800 = vst [vmem:[#allocation2 + $0x50] sm:$0xf] %v767_v10  ;;  %1933 = vmatpush.bf16.msrb.mxu3 %v2900_v28  ;;  %v2897_v2 = vld [vmem:[%s3500_s3 + $0x1d8] sm:$0xff]  ;;  %v2907_v10 = vld [vmem:[%s3500_s3 + $0x228] sm:$0xff]  ;;  %v2487_v33 = vld [vmem:[#allocation2 + $0x3c] sm:$0xf0] }
  0x40   : > { %v657_v24 = vshrl.u32 %v612_v47, 16  ;;  %v660_v3 = vshll.u32 %v612_v47, 16  ;;  %v2834_v47 = vld [vmem:[%s3500_s3 + $0xa0] sm:$0xff] }
  0x41   : > { %1281 = vmatpush.bf16.msrb.mxu1 %v2860_v46  ;;  %1576 = vmatpush.bf16.msrb.mxu0 %v2824_v41  ;;  %v2329_v35 = vld [vmem:[#allocation2 + $0x24] sm:$0xf]  ;;  %v664_v49 = vshrl.u32 %v613_v11, 16  ;;  %v667_v30 = vshll.u32 %v613_v11, 16  ;;  %v2463_v41 = vld [vmem:[#allocation2 + $0xc] sm:$0xf0] }
  0x42   : > { %v2806_v50 = vld [vmem:[#allocation2 + $0x20] sm:$0xf0]  ;;  %v2842_v56 = vld [vmem:[#allocation2 + $0x2c] sm:$0xf0]  ;;  %v659_v13 = vrot.slane %v657_v24, 7  ;;  %v701_v15 = vrot.slane %v660_v3, 1  ;;  %1907 = vmatpush.bf16.msrb.mxu2 %v2889_v53  ;;  %v2466_v62 = vor.u32 %v2802_v58, %v2463_v41 }
  0x43   : > { %v666_v38 = vrot.slane %v664_v49, 7  ;;  %v2474_v20 = vor.u32 %v2806_v50, %v2473_v12  ;;  %v703_v21 = vrot.slane %v667_v30, 1  ;;  %v2330_v22 = vor.u32 %v2842_v56, %v2329_v35  ;;  %v2337_v6 = vld [vmem:[#allocation2 + $0x2c] sm:$0xf]  ;;  %1934 = vmatpush.bf16.msrb.mxu3 %v2899_v48  ;;  %v2485_v32 = vld [vmem:[#allocation2 + $0x30] sm:$0xf] }
  0x44   : > { %v662_v19 = vor.u32 %v660_v3, %v659_v13  ;;  %v2843_v25 = vld [vmem:[#allocation2 + $0x34] sm:$0xf0]  ;;  %v702_v26 = vor.u32 %v701_v15, %v657_v24  ;;  %v2486_v61 = vor.u32 %v2809_v54, %v2485_v32  ;;  %v2886_v11 = vld [vmem:[%s3500_s3 + $0x180] sm:$0xff]  ;;  %v2895_v12 = vld [vmem:[%s3500_s3 + $0x1c8] sm:$0xff] }
  0x45   : > { %1282 = vmatpush.bf16.msrb.mxu1 %v2859_v1  ;;  %1577 = vmatpush.bf16.msrb.mxu0 %v2823_v8  ;;  %v669_v23 = vor.u32 %v667_v30, %v666_v38  ;;  %v704_v34 = vor.u32 %v703_v21, %v664_v49  ;;  %v2338_v42 = vor.u32 %v2843_v25, %v2337_v6  ;;  %v2349_v4 = vld [vmem:[#allocation2 + $0x44] sm:$0xf]  ;;  %v2888_v1 = vld [vmem:[%s3500_s3 + $0x190] sm:$0xff]  ;;  %v2887_v8 = vld [vmem:[%s3500_s3 + $0x188] sm:$0xff] }
  0x46   : > { %v687_v17 = vsel %vm3190_vm4, 0, %v662_v19  ;;  %v722_v36 = vsel %vm3202_vm5, %v702_v26, 0  ;;  %v2846_v16 = vld [vmem:[#allocation2 + $0x4c] sm:$0xf0]  ;;  %1908 = vmatpush.bf16.msrb.mxu2 %v2888_v1  ;;  %v2319_v3 = vld [vmem:[#allocation2 + $0x18] sm:$0xf0] }
  0x47   : > { %v688_v57 = vsel %vm3190_vm4, 0, %v669_v23  ;;  %v752_v5 = vunpack.c.l.b16 %v687_v17  ;;  %v723_v0 = vsel %vm3202_vm5, %v704_v34, 0  ;;  %v753_v45 = vunpack.c.l.b16 %v722_v36  ;;  %1935 = vmatpush.bf16.msrb.mxu3 %v2898_v31  ;;  %v2838_v24 = vld [vmem:[#allocation2 + $0x10] sm:$0xf]  ;;  %v2805_v30 = vld [vmem:[#allocation2 + $0x1c] sm:$0xf] }
  0x48   : > { %v754_v37 = vunpack.c.l.b16 %v688_v57  ;;  %v755_v51 = vunpack.c.l.b16 %v723_v0  ;;  %v2322_v49 = vor.u32 %v2838_v24, %v2319_v3  ;;  %v2475_v50 = vld [vmem:[#allocation2 + $0x24] sm:$0xf0]  ;;  %v2894_v56 = vld [vmem:[%s3500_s3 + $0x1c0] sm:$0xff]  ;;  %v2833_v19 = vld [vmem:[%s3500_s3 + $0x98] sm:$0xff] }
  0x49   : > { %1283 = vmatpush.bf16.msrb.mxu1 %v2858_v29  ;;  %1578 = vmatpush.bf16.msrb.mxu0 %v2822_v14  ;;  %v768_v46 = vpack.c.b16 %v3316_v63, %v752_v5  ;;  %v769_v7 = vpack.c.b16 %v753_v45, %v753_v45  ;;  %v2835_v63 = vld [vmem:[%s3500_s3 + $0xa8] sm:$0xff]  ;;  %v2478_v15 = vor.u32 %v2805_v30, %v2475_v50  ;;  %v2905_v23 = vld [vmem:[%s3500_s3 + $0x218] sm:$0xff]  ;;  %v2331_v25 = vld [vmem:[#allocation2 + $0x30] sm:$0xf0] }
  0x4a   : > { %1555 = vmatmul.bf16.gmra.mxu3 %v2474_v20  ;;  %1260 = vmatmul.bf16.gmra.mxu0 %v2330_v22  ;;  %v770_v52 = vpack.c.b16 %v3321_v39, %v754_v37  ;;  %v771_v40 = vpack.c.b16 %v755_v51, %v755_v51  ;;  %v2350_v39 = vor.u32 %v2846_v16, %v2349_v4  ;;  %v2497_v29 = vld [vmem:[#allocation2 + $0x48] sm:$0xf]  ;;  %v2906_v20 = vld [vmem:[%s3500_s3 + $0x220] sm:$0xff]  ;;  %v2832_v22 = vld [vmem:[%s3500_s3 + $0x90] sm:$0xff] }
  0x4b   : > { %801 = vst [vmem:[#allocation2 + $0x54] sm:$0xff] %v768_v46  ;;  %1936 = vmatpush.bf16.msrb.mxu3 %v2897_v2  ;;  %1909 = vmatpush.bf16.msrb.mxu2 %v2887_v8  ;;  %v2841_v6 = vld [vmem:[#allocation2 + $0x28] sm:$0xf]  ;;  %v2874_v26 = vld [vmem:[#allocation2 + $0x1c] sm:$0xf]  ;;  %v2902_v45 = vld [vmem:[%s3500_s3 + $0x200] sm:$0xff] }
  0x4c   : > { %803 = vst [vmem:[#allocation2 + $0x60] sm:$0xff] %v770_v52  ;;  %1318 = vmatmul.bf16.gmra.mxu2 %v2338_v42  ;;  %v2655_v17 = vld [vmem:[#allocation2 + $0x24] sm:$0xf0]  ;;  %v2808_v28 = vld [vmem:[#allocation2 + $0x34] sm:$0xf] }
  0x4d   : > { %1600 = vmatpush.bf16.msra.mxu1 %v2837_v27  ;;  %1961 = vmatpush.bf16.msra.mxu0 %v3357_v44  ;;  %802 = vst [vmem:[#allocation2 + $0x5c] sm:$0xf] %v769_v7  ;;  %v2334_v27 = vor.u32 %v2841_v6, %v2331_v25  ;;  %v2658_v34 = vor.u32 %v2874_v26, %v2655_v17  ;;  %v2653_v5 = vld [vmem:[#allocation2 + $0x18] sm:$0xf]  ;;  %v2875_v36 = vld [vmem:[#allocation2 + $0x20] sm:$0xf0] }
  0x4e   : > { %804 = vst [vmem:[#allocation2 + $0x68] sm:$0xf] %v771_v40  ;;  %v2490_v57 = vor.u32 %v2808_v28, %v2487_v33  ;;  %v2831_v37 = vld [vmem:[%s3500_s3 + $0x88] sm:$0xff]  ;;  %v2904_v42 = vld [vmem:[%s3500_s3 + $0x210] sm:$0xff]  ;;  %v2844_v46 = vld [vmem:[#allocation2 + $0x40] sm:$0xf] }
  0x4f   : > { %1937 = vmatpush.bf16.msrb.mxu3 %v2896_v9  ;;  %1910 = vmatpush.bf16.msrb.mxu2 %v2886_v11  ;;  %v2903_v0 = vld [vmem:[%s3500_s3 + $0x208] sm:$0xff]  ;;  %v2877_v51 = vld [vmem:[#allocation2 + $0x34] sm:$0xf]  ;;  %v2667_v52 = vld [vmem:[#allocation2 + $0x3c] sm:$0xf0] }
  0x50   : > { %v2343_v48 = vld [vmem:[#allocation2 + $0x48] sm:$0xf0]  ;;  %v2670_v31 = vor.u32 %v2877_v51, %v2667_v52  ;;  %v2665_v54 = vld [vmem:[#allocation2 + $0x30] sm:$0xf]  ;;  %v2661_v16 = vld [vmem:[#allocation2 + $0x20] sm:$0xf] }
  0x51   : > { %1601 = vmatpush.bf16.msra.mxu1 %v2836_v43  ;;  %1962 = vmatpush.bf16.msra.mxu0 %v2908_v18  ;;  %v2654_v43 = vor.u32 %v2875_v36, %v2653_v5  ;;  %v2346_v53 = vor.u32 %v2844_v46, %v2343_v48  ;;  %v2811_v7 = vld [vmem:[#allocation2 + $0x4c] sm:$0xf]  ;;  %v2677_v1 = vld [vmem:[#allocation2 + $0x48] sm:$0xf]  ;;  %v2804_v8 = vld [vmem:[#allocation2 + $0x10] sm:$0xf0] }
  0x52   : > { %v2353_v55 = vld [vmem:[#allocation2 + $0x54] sm:$0xf]  ;;  %v2499_v40 = vld [vmem:[#allocation2 + $0x54] sm:$0xf0]  ;;  %v2879_v24 = vld [vmem:[#allocation2 + $0x40] sm:$0xf0] }
  0x53   : > { %v2848_v59 = vld [vmem:[#allocation2 + $0x5c] sm:$0xf0]  ;;  %v2812_v35 = vld [vmem:[#allocation2 + $0x50] sm:$0xf0]  ;;  %1938 = vmatpush.bf16.msrb.mxu3 %v2895_v12  ;;  %2941 = vmatpush.bf16.msra.mxu2 %v3357_v44  ;;  %v2502_v32 = vor.u32 %v2811_v7, %v2499_v40  ;;  %v2847_v41 = vld [vmem:[#allocation2 + $0x58] sm:$0xf] }
  0x54   : > { %v2354_v60 = vor.u32 %v2848_v59, %v2353_v55  ;;  %v2498_v13 = vor.u32 %v2812_v35, %v2497_v29  ;;  %v2361_v14 = vld [vmem:[#allocation2 + $0x5c] sm:$0xf]  ;;  %v2830_v44 = vld [vmem:[%s3500_s3 + $0x80] sm:$0xff]  ;;  %v2881_v2 = vld [vmem:[#allocation2 + $0x50] sm:$0xf0] }
  0x55   : > { %1602 = vmatpush.bf16.msra.mxu1 %v2835_v63  ;;  %1963 = vmatpush.bf16.msra.mxu0 %v2907_v10  ;;  %v2849_v38 = vld [vmem:[#allocation2 + $0x64] sm:$0xf0]  ;;  %v2878_v55 = vld [vmem:[#allocation2 + $0x38] sm:$0xf0]  ;;  %v2355_v59 = vld [vmem:[#allocation2 + $0x60] sm:$0xf0] }
  0x56   : > { %1270 = vmatmul.bf16.gmra.mxu1 %v2354_v60  ;;  %v2362_v21 = vor.u32 %v2849_v38, %v2361_v14  ;;  %v2666_v58 = vor.u32 %v2878_v55, %v2665_v54  ;;  %v2880_v60 = vld [vmem:[#allocation2 + $0x4c] sm:$0xf]  ;;  %v2358_v4 = vor.u32 %v2847_v41, %v2355_v59  ;;  %v2883_v9 = vld [vmem:[#allocation2 + $0x64] sm:$0xf]  ;;  %v2673_v12 = vld [vmem:[#allocation2 + $0x38] sm:$0xf] }
  0x57   : > { %1939 = vmatpush.bf16.msrb.mxu3 %v2894_v56  ;;  %2942 = vmatpush.bf16.msra.mxu2 %v2908_v18  ;;  %v2689_v29 = vld [vmem:[#allocation2 + $0x60] sm:$0xf]  ;;  %v2884_v35 = vld [vmem:[#allocation2 + $0x68] sm:$0xf0]  ;;  %v2685_v14 = vld [vmem:[#allocation2 + $0x50] sm:$0xf] }
  0x58   : > { %v2690_v30 = vor.u32 %v2884_v35, %v2689_v29  ;;  %v2481_v50 = vld [vmem:[#allocation2 + $0x20] sm:$0xf]  ;;  %v2807_v56 = vld [vmem:[#allocation2 + $0x28] sm:$0xf0]  ;;  %v2882_v38 = vld [vmem:[#allocation2 + $0x58] sm:$0xf0] }
  0x59   : > { %1603 = vmatpush.bf16.msra.mxu1 %v2834_v47  ;;  %1964 = vmatpush.bf16.msra.mxu0 %v2906_v20  ;;  %v2469_v47 = vld [vmem:[#allocation2 + $0x8] sm:$0xf]  ;;  %v2493_v25 = vld [vmem:[#allocation2 + $0x38] sm:$0xf]  ;;  %v2810_v26 = vld [vmem:[#allocation2 + $0x40] sm:$0xf0] }
  0x5a   : > { %1560 = vmatmul.bf16.gmra.mxu3 %v2486_v61  ;;  %1579 = vmatmul.bf16.vlgmr.msrb.gmra.mxu0 %v2466_v62  ;;  %v2679_v61 = vld [vmem:[#allocation2 + $0x54] sm:$0xf0]  ;;  %v2876_v62 = vld [vmem:[#allocation2 + $0x28] sm:$0xf0]  ;;  %v2470_v11 = vor.u32 %v2804_v8, %v2469_v47  ;;  %v2494_v28 = vor.u32 %v2810_v26, %v2493_v25 }
  0x5b   : > { %2943 = vmatpush.bf16.msra.mxu2 %v2907_v10  ;;  %v2682_v63 = vor.u32 %v2880_v60, %v2679_v61  ;;  %v2662_v18 = vor.u32 %v2876_v62, %v2661_v16  ;;  %v2691_v10 = vld [vmem:[#allocation2 + $0x6c] sm:$0xf0] }
  0x5c   : > { %1323 = vmatmul.bf16.gmra.mxu2 %v2350_v39  ;;  %v2678_v39 = vor.u32 %v2881_v2, %v2677_v1  ;;  %v2694_v3 = vor.u32 %v2883_v9, %v2691_v10 }
  0x5d   : > { %1604 = vmatpush.bf16.msra.mxu1 %v2833_v19  ;;  %1965 = vmatpush.bf16.msra.mxu0 %v2905_v23  ;;  %v2697_v19 = vld [vmem:[#allocation2 + $0x68] sm:$0xf] }
  0x5f   : > { %2944 = vmatpush.bf16.msra.mxu2 %v2906_v20  ;;  %v2885_v20 = vld [vmem:[#allocation2 + $0x70] sm:$0xf0] }
  0x61   : > { %1605 = vmatpush.bf16.msra.mxu1 %v2832_v22  ;;  %1966 = vmatpush.bf16.msra.mxu0 %v2904_v42  ;;  %v2698_v22 = vor.u32 %v2885_v20, %v2697_v19 }
  0x63   : > { %2945 = vmatpush.bf16.msra.mxu2 %v2905_v23 }
  0x65   : > { %1606 = vmatpush.bf16.msra.mxu1 %v2831_v37  ;;  %1967 = vmatpush.bf16.msra.mxu0 %v2903_v0  ;;  %v2505_v37 = vld [vmem:[#allocation2 + $0x50] sm:$0xf] }
  0x66   : > { %1284 = vmatmul.bf16.vlgmr.msrb.gmra.mxu1 %v2322_v49  ;;  %v2674_v49 = vor.u32 %v2879_v24, %v2673_v12 }
  0x67   : > { %2946 = vmatpush.bf16.msra.mxu2 %v2904_v42  ;;  %v2813_v42 = vld [vmem:[#allocation2 + $0x58] sm:$0xf0] }
  0x69   : > { %1607 = vmatpush.bf16.msra.mxu1 %v2830_v44  ;;  %1968 = vmatpush.bf16.msra.mxu0 %v2902_v45  ;;  %v2506_v44 = vor.u32 %v2813_v42, %v2505_v37 }
  0x6a   : > { %1565 = vmatmul.bf16.gmra.mxu3 %v2498_v13  ;;  %1584 = vmatmul.bf16.gmra.mxu0 %v2478_v15  ;;  %v2482_v13 = vor.u32 %v2807_v56, %v2481_v50  ;;  %v2686_v15 = vor.u32 %v2882_v38, %v2685_v14 }
  0x6b   : > { %2947 = vmatpush.bf16.msra.mxu2 %v2903_v0 }
  0x6c   : > { %1328 = vmatmul.bf16.gmra.mxu2 %v2362_v21 }
  0x6f   : > { %2948 = vmatpush.bf16.msra.mxu2 %v2902_v45 }
  0x76   : > { %1289 = vmatmul.bf16.gmra.mxu1 %v2334_v27 }
  0x7a   : > { %1940 = vmatmul.bf16.vlgmr.msrb.gmra.mxu3 %v2658_v34  ;;  %1589 = vmatmul.bf16.gmra.mxu0 %v2490_v57 }
  0x7c   : > { %1911 = vmatmul.bf16.vlgmr.msrb.gmra.mxu2 %v2654_v43 }
  0x86   : > { %1294 = vmatmul.bf16.gmra.mxu1 %v2346_v53 }
  0x8a   : > { %1945 = vmatmul.bf16.gmra.mxu3 %v2670_v31  ;;  %1594 = vmatmul.bf16.gmra.mxu0 %v2502_v32 }
  0x8c   : > { %1916 = vmatmul.bf16.gmra.mxu2 %v2666_v58 }
  0x96   : > { %1299 = vmatmul.bf16.gmra.mxu1 %v2358_v4 }
  0x9a   : > { %1950 = vmatmul.bf16.gmra.mxu3 %v2682_v63  ;;  %1969 = vmatmul.bf16.vlgmr.msra.gmra.mxu0 %v2662_v18 }
  0x9c   : > { %1921 = vmatmul.bf16.gmra.mxu2 %v2678_v39 }
  0xa6   : > { %1608 = vmatmul.bf16.vlgmr.msra.gmra.mxu1 %v2470_v11 }
  0xaa   : > { %1955 = vmatmul.bf16.gmra.mxu3 %v2694_v3  ;;  %1974 = vmatmul.bf16.gmra.mxu0 %v2674_v49 }
  0xac   : > { %1926 = vmatmul.bf16.gmra.mxu2 %v2690_v30 }
  0xb6   : > { %1613 = vmatmul.bf16.gmra.mxu1 %v2482_v13 }
  0xb7   : > { %v1256_v21 = vpop.f32.mrf.mxu0 }
  0xba   : > { %1979 = vmatmul.bf16.gmra.mxu0 %v2686_v15 }
  0xbb   : > { %v1266_v6 = vpop.f32.mrf.mxu1 }
  0xbc   : > { %1984 = vmatmul.bf16.vlgmr.msra.gmra.mxu2 %v2698_v22 }
  0xbd   : > { %v1551_v27 = vpop.f32.mrf.mxu3 }
  0xbf   : > { %v1258_v23 = vpop.f32.mrf.mxu0  ;;  %v1314_v17 = vpop.f32.mrf.mxu2 }
  0xc3   : > { %v1268_v57 = vpop.f32.mrf.mxu1 }
  0xc5   : > { %v3434_v5 = vpop.f32.mrf.mxu3 }
  0xc6   : > { %1618 = vmatmul.bf16.gmra.mxu1 %v2494_v28 }
  0xc7   : > { %v1261_v33 = vpop.f32.mrf.mxu0  ;;  %v1316_v34 = vpop.f32.mrf.mxu2 }
  0xcd   : > { %v1556_v45 = vpop.f32.mrf.mxu3 }
  0xcf   : > { %v1263_v36 = vpop.f32.mrf.mxu0  ;;  %v1319_v43 = vpop.f32.mrf.mxu2 }
  0xd3   : > { %v1271_v0 = vpop.f32.mrf.mxu1 }
  0xd5   : > { %v3438_v53 = vpop.f32.mrf.mxu3 }
  0xd6   : > { %1623 = vmatmul.bf16.gmra.mxu1 %v2506_v44 }
  0xd7   : > { %v1580_v46 = vpop.f32.mrf.mxu0  ;;  %v1321_v48 = vpop.f32.mrf.mxu2 }
  0xdb   : > { %v1273_v51 = vpop.f32.mrf.mxu1 }
  0xdd   : > { %v1561_v41 = vpop.f32.mrf.mxu3 }
  0xdf   : > { %v3436_v52 = vpop.f32.mrf.mxu0  ;;  %v1324_v7 = vpop.f32.mrf.mxu2 }
  0xe3   : > { %v1285_v40 = vpop.f32.mrf.mxu1 }
  0xe4   : > { %v1286_v31 = vadd.f32 %v1285_v40, %v1256_v21 }
  0xe5   : > { %v3442_v1 = vpop.f32.mrf.mxu3 }
  0xe6   : > { %v1315_v32 = vadd.f32 %v1314_v17, %v1286_v31 }
  0xe7   : > { %v1585_v54 = vpop.f32.mrf.mxu0  ;;  %v1326_v55 = vpop.f32.mrf.mxu2 }
  0xe8   : > { %v1552_v58 = vadd.f32 %v1551_v27, %v1315_v32 }
  0xea   : > { %v1581_v59 = vadd.f32 %v1580_v46, %v1552_v58 }
  0xeb   : > { %v1287_v60 = vpop.f32.mrf.mxu1 }
  0xec   : > { %v1288_v61 = vadd.f32 %v1287_v60, %v1258_v23 }
  0xed   : > { %v1566_v12 = vpop.f32.mrf.mxu3 }
  0xee   : > { %v1317_v4 = vadd.f32 %v1316_v34, %v1288_v61 }
  0xef   : > { %v3440_v16 = vpop.f32.mrf.mxu0  ;;  %v1329_v62 = vpop.f32.mrf.mxu2 }
  0xf3   : > { %v1290_v63 = vpop.f32.mrf.mxu1 }
  0xf4   : > { %v1291_v2 = vadd.f32 %v1290_v63, %v1261_v33 }
  0xf5   : > { %v3446_v56 = vpop.f32.mrf.mxu3 }
  0xf6   : > { %v1320_v18 = vadd.f32 %v1319_v43, %v1291_v2 }
  0xf7   : > { %v1590_v39 = vpop.f32.mrf.mxu0  ;;  %v1331_v47 = vpop.f32.mrf.mxu2 }
  0xf8   : > { %v1557_v8 = vadd.f32 %v1556_v45, %v1320_v18  ;;  %v1554_v45 = vadd.f32 %v3434_v5, %v1317_v4 }
  0xfa   : > { %v1586_v9 = vadd.f32 %v1585_v54, %v1557_v8  ;;  %v1583_v32 = vadd.f32 %v3436_v52, %v1554_v45 }
  0xfb   : > { %v1292_v10 = vpop.f32.mrf.mxu1 }
  0xfc   : > { %v1293_v11 = vadd.f32 %v1292_v10, %v1263_v36 }
  0xfd   : > { %v1941_v22 = vpop.f32.mrf.mxu3 }
  0xfe   : > { %v1322_v24 = vadd.f32 %v1321_v48, %v1293_v11 }
  0xff   : > { %v3444_v3 = vpop.f32.mrf.mxu0  ;;  %v1912_v29 = vpop.f32.mrf.mxu2 }
 0x100   : > { %v1942_v46 = vadd.f32 %v1941_v22, %v1912_v29  ;;  %v1559_v8 = vadd.f32 %v3438_v53, %v1322_v24 }
 0x103   : > { %v1295_v35 = vpop.f32.mrf.mxu1 }
 0x104   : > { %v1296_v49 = vadd.f32 %v1295_v35, %v1266_v6 }
 0x105   : > { %v1943_v33 = vpop.f32.mrf.mxu3 }
 0x106   : > { %v1325_v30 = vadd.f32 %v1324_v7, %v1296_v49  ;;  %v1588_v49 = vadd.f32 %v3440_v16, %v1559_v8 }
 0x107   : > { %v1595_v50 = vpop.f32.mrf.mxu0  ;;  %v1914_v14 = vpop.f32.mrf.mxu2 }
 0x108   : > { %v1562_v13 = vadd.f32 %v1561_v41, %v1325_v30 }
 0x10a   : > { %v3448_v38 = vadd.f32 %v1590_v39, %v1562_v13 }
 0x10b   : > { %v1297_v15 = vpop.f32.mrf.mxu1 }
 0x10c   : > { %v1298_v19 = vadd.f32 %v1297_v15, %v1268_v57 }
 0x10d   : > { %v1946_v44 = vpop.f32.mrf.mxu3 }
 0x10e   : > { %v3450_v20 = vadd.f32 %v1326_v55, %v1298_v19 }
 0x10f   : > { %v3452_v21 = vpop.f32.mrf.mxu0  ;;  %v1917_v25 = vpop.f32.mrf.mxu2 }
 0x110   : > { %v1947_v60 = vadd.f32 %v1946_v44, %v1917_v25  ;;  %v1564_v16 = vadd.f32 %v3442_v1, %v3450_v20 }
 0x112   : > { %v1593_v44 = vadd.f32 %v3444_v3, %v1564_v16 }
 0x113   : > { %v1300_v23 = vpop.f32.mrf.mxu1 }
 0x114   : > { %v1301_v26 = vadd.f32 %v1300_v23, %v1271_v0  ;;  %v1944_v0 = vadd.f32 %v1943_v33, %v1914_v14 }
 0x115   : > { %v1948_v61 = vpop.f32.mrf.mxu3 }
 0x116   : > { %v1330_v17 = vadd.f32 %v1329_v62, %v1301_v26 }
 0x117   : > { %v1970_v6 = vpop.f32.mrf.mxu0  ;;  %v1919_v37 = vpop.f32.mrf.mxu2 }
 0x118   : > { %v1567_v27 = vadd.f32 %v1566_v12, %v1330_v17  ;;  %v1971_v40 = vadd.f32 %v1970_v6, %v1942_v46  ;;  %v1949_v11 = vadd.f32 %v1948_v61, %v1919_v37 }
 0x11a   : > { %v3454_v28 = vadd.f32 %v1595_v50, %v1567_v27 }
 0x11b   : > { %v1302_v34 = vpop.f32.mrf.mxu1 }
 0x11c   : > { %v1303_v36 = vadd.f32 %v1302_v34, %v1273_v51 }
 0x11d   : > { %v1951_v35 = vpop.f32.mrf.mxu3 }
 0x11e   : > { %v3456_v42 = vadd.f32 %v1331_v47, %v1303_v36 }
 0x11f   : > { %v1972_v57 = vpop.f32.mrf.mxu0  ;;  %v1922_v48 = vpop.f32.mrf.mxu2 }
 0x120   : > { %v1973_v54 = vadd.f32 %v1972_v57, %v1944_v0  ;;  %v1952_v23 = vadd.f32 %v1951_v35, %v1922_v48  ;;  %v1569_v3 = vadd.f32 %v3446_v56, %v3456_v42 }
 0x123   : > { %v1609_v43 = vpop.f32.mrf.mxu1 }
 0x124   : > { %v1610_v7 = vadd.f32 %v1609_v43, %v1581_v59 }
 0x125   : > { %v1953_v17 = vpop.f32.mrf.mxu3 }
 0x126   : > { %v1990_v51 = vadd.f32 %v1971_v40, %v1610_v7 }
 0x127   : > { %v1975_v31 = vpop.f32.mrf.mxu0  ;;  %v1924_v63 = vpop.f32.mrf.mxu2 }
 0x128   : > { %v2028_v5 = vmul.f32 %v1990_v51, %v1990_v51  ;;  %v1976_v2 = vadd.f32 %v1975_v31, %v1947_v60  ;;  %v1954_v37 = vadd.f32 %v1953_v17, %v1924_v63 }
 0x12b   : > { %v1611_v55 = vpop.f32.mrf.mxu1 }
 0x12c   : > { %v1612_v58 = vadd.f32 %v1611_v55, %v1583_v32 }
 0x12d   : > { %v1956_v7 = vpop.f32.mrf.mxu3 }
 0x12e   : > { %v1991_v41 = vadd.f32 %v1973_v54, %v1612_v58 }
 0x12f   : > { %v1977_v39 = vpop.f32.mrf.mxu0  ;;  %v1927_v13 = vpop.f32.mrf.mxu2 }
 0x130   : > { %v2913_v59 = vpack.c.bf16 %v1991_v41, %v1990_v51  ;;  %v2014_v4 = vadd.f32 %v1991_v41, %v1990_v51  ;;  %v2029_v62 = vmul.f32 %v1991_v41, %v1991_v41  ;;  %v1978_v50 = vadd.f32 %v1977_v39, %v1949_v11 }
 0x131   : > { %v1957_v55 = vadd.f32 %v1956_v7, %v1927_v13 }
 0x132   : > { %2914 = vst [vmem:[%s3464_s19] sm:$0xff] %v2913_v59   ;;  %v2036_v52 = vadd.f32 %v2029_v62, %v2028_v5 }
 0x133   : > { %v1614_v18 = vpop.f32.mrf.mxu1 }
 0x134   : > { %v1615_v47 = vadd.f32 %v1614_v18, %v1586_v9 }
 0x135   : > { %v1958_v60 = vpop.f32.mrf.mxu3 }
 0x136   : > { %v1992_v10 = vadd.f32 %v1976_v2, %v1615_v47 }
 0x137   : > { %v1980_v19 = vpop.f32.mrf.mxu0  ;;  %v1929_v33 = vpop.f32.mrf.mxu2 }
 0x138   : > { %v2015_v12 = vadd.f32 %v2014_v4, %v1992_v10  ;;  %v2030_v29 = vmul.f32 %v1992_v10, %v1992_v10  ;;  %v1981_v24 = vadd.f32 %v1980_v19, %v1952_v23  ;;  %v1598_v4 = vadd.f32 %v3452_v21, %v1569_v3 }
 0x139   : > { %v1959_v62 = vadd.f32 %v1958_v60, %v1929_v33 }
 0x13a   : > { %v2037_v30 = vadd.f32 %v2036_v52, %v2030_v29 }
 0x13b   : > { %v1616_v14 = vpop.f32.mrf.mxu1 }
 0x13c   : > { %v1617_v15 = vadd.f32 %v1616_v14, %v1588_v49 }
 0x13e   : > { %v1993_v22 = vadd.f32 %v1978_v50, %v1617_v15 }
 0x13f   : > { %v1982_v36 = vpop.f32.mrf.mxu0  ;;  %v1985_v31 = vpop.f32.mrf.mxu2 }
 0x140   : > { %v2918_v25 = vpack.c.bf16 %v1993_v22, %v1992_v10  ;;  %v2016_v9 = vadd.f32 %v2015_v12, %v1993_v22  ;;  %v2031_v26 = vmul.f32 %v1993_v22, %v1993_v22  ;;  %v1983_v46 = vadd.f32 %v1982_v36, %v1954_v37 }
 0x141   : > { %v1986_v51 = vadd.f32 %v1985_v31, %v1957_v55 }
 0x142   : > { %2930 = vst [vmem:[%s3464_s19 + $0x8] sm:$0xff] %v2918_v25   ;;  %v2038_v53 = vadd.f32 %v2037_v30, %v2031_v26 }
 0x143   : > { %v1619_v6 = vpop.f32.mrf.mxu1 }
 0x144   : > { %v1620_v27 = vadd.f32 %v1619_v6, %v3448_v38 }
 0x146   : > { %v1994_v34 = vadd.f32 %v1981_v24, %v1620_v27 }
 0x147   : > { %v1987_v59 = vpop.f32.mrf.mxu2 }
 0x148   : > { %v2017_v57 = vadd.f32 %v2016_v9, %v1994_v34  ;;  %v2032_v43 = vmul.f32 %v1994_v34, %v1994_v34  ;;  %v1988_v2 = vadd.f32 %v1987_v59, %v1959_v62 }
 0x14a   : > { %v2039_v45 = vadd.f32 %v2038_v53, %v2032_v43 }
 0x14b   : > { %v1621_v48 = vpop.f32.mrf.mxu1 }
 0x14c   : > { %v1622_v0 = vadd.f32 %v1621_v48, %v1593_v44 }
 0x14e   : > { %v1995_v40 = vadd.f32 %v1983_v46, %v1622_v0 }
 0x150   : > { %v2923_v38 = vpack.c.bf16 %v1995_v40, %v1994_v34  ;;  %v2018_v32 = vadd.f32 %v2017_v57, %v1995_v40  ;;  %v2033_v54 = vmul.f32 %v1995_v40, %v1995_v40 }
 0x152   : > { %2931 = vst [vmem:[%s3464_s19 + $0x10] sm:$0xff] %v2923_v38   ;;  %v2040_v1 = vadd.f32 %v2039_v45, %v2033_v54 }
 0x153   : > { %v1624_v20 = vpop.f32.mrf.mxu1 }
 0x154   : > { %v1625_v58 = vadd.f32 %v1624_v20, %v3454_v28 }
 0x156   : > { %v1996_v41 = vadd.f32 %v1986_v51, %v1625_v58 }
 0x158   : > { %v2019_v61 = vadd.f32 %v2018_v32, %v1996_v41  ;;  %v2034_v5 = vmul.f32 %v1996_v41, %v1996_v41 }
 0x15a   : > { %v2041_v63 = vadd.f32 %v2040_v1, %v2034_v5 }
 0x15b   : > { %v1626_v52 = vpop.f32.mrf.mxu1 }
 0x15c   : > { %v1627_v18 = vadd.f32 %v1626_v52, %v1598_v4 }
 0x15e   : > { %v1997_v39 = vadd.f32 %v1988_v2, %v1627_v18 }
 0x160   : > { %v2928_v47 = vpack.c.bf16 %v1997_v39, %v1996_v41  ;;  %v2020_v28 = vadd.f32 %v2019_v61, %v1997_v39  ;;  %v2035_v8 = vmul.f32 %v1997_v39, %v1997_v39 }
 0x162   : > { %2932 = vst [vmem:[%s3464_s19 + $0x18] sm:$0xff] %v2928_v47   ;;  %v2021_v56 = vrot.slane %v2020_v28, 4  ;;  %v2042_v42 = vadd.f32 %v2041_v63, %v2035_v8 }
 0x164   : > { %v2022_v10 = vadd.f32 %v2021_v56, %v2020_v28  ;;  %v2043_v11 = vrot.slane %v2042_v42, 4 }
 0x166   : > { %v2023_v12 = vrot.slane %v2022_v10, 2  ;;  %v2044_v29 = vadd.f32 %v2043_v11, %v2042_v42 }
 0x168   : > { %v2024_v35 = vadd.f32 %v2023_v12, %v2022_v10  ;;  %v2045_v21 = vrot.slane %v2044_v29, 2 }
 0x16a   : > { %v2025_v49 = vrot.slane %v2024_v35, 1  ;;  %v2046_v30 = vadd.f32 %v2045_v21, %v2044_v29 }
 0x16c   : > { %v2026_v50 = vadd.f32 %v2025_v49, %v2024_v35  ;;  %v2047_v13 = vrot.slane %v2046_v30, 1 }
 0x16e   : > { %v2048_v14 = vadd.f32 %v2047_v13, %v2046_v30  ;;  %2050 = vst [vmem:[%s454_s24] sm:$0x1] %v2026_v50 }
 0x170   : > { %2051 = vst [vmem:[%s460_s27] sm:$0x1] %v2048_v14 }
 0x171 PF: > { %s17_s1 = sadd.s32 1, %s2996_s1   ;;  %s3508_s21 = smov %s2992_s22 }
 0x172   : > { %p14_p5 = scmp.ge.s32.totalorder %s17_s1, 4   ;;  %s3509_s22 = smov %s3511_s2 }
 0x174   :  { %16 = sbr.rel (!%p14_p5) target bundleno = 2 (0x2), region = 118 }

</bundles_post_ra>
